<compile_context>
chip_gen: v6e
topology: v6e:2x2x1
jax: 0.10.0
libtpu: 0.0.40
codegen_flags: <defaults>
</compile_context>

<pallas_src>
import jax
import jax.numpy as jnp
from jax.experimental import pallas as pl
from jax.experimental.pallas import tpu as pltpu

LANE = 128


def _round_up(x, m):
    return (x + m - 1) // m * m


def _pick_batch_tile(batch, seq, vocab_p, budget_bytes=8 * 2**20):
    """Batch tile (multiple of 128): keep the (TB, S, VP) one-hot temp ~under budget."""
    tb = (budget_bytes // max(1, seq * vocab_p * 4)) // LANE * LANE
    tb = int(max(LANE, min(1024, tb)))
    return min(tb, _round_up(batch, LANE))


def baseline_kernel(ids_ref, thi_ref, tlo_ref, ind_ref,
                    w1_ref, b1_ref, w2_ref, b2_ref, w3t_ref, b3_ref,
                    out_ref):
    ids = ids_ref[...]                               # (TB, S) int32
    tb, s = ids.shape
    vp = thi_ref.shape[0]

    # ---- fused embedding gather + masked-mean pool (as in the PyTorch forward):
    #   x = embeds.sum(1) / (embeds != 0).sum(1).clamp(min=1)
    # One-hot histogram over the (padded) vocab; counts are small exact integers.
    vocab = jax.lax.broadcasted_iota(jnp.int32, (tb, s, vp), 2)
    counts = jnp.sum((ids[:, :, None] == vocab).astype(jnp.float32), axis=1)  # (TB, VP)

    # hi/lo split keeps f32 accuracy through the bf16 MXU passes.
    summed = (jnp.dot(counts, thi_ref[...], preferred_element_type=jnp.float32)
              + jnp.dot(counts, tlo_ref[...], preferred_element_type=jnp.float32))
    nonzero = jnp.dot(counts, ind_ref[...], preferred_element_type=jnp.float32)
    pooled = summed / jnp.maximum(nonzero, 1.0)      # padded lanes: 0 / 1 = 0  (TB, EP)

    # ---- fc1 -> ReLU -> fc2 -> ReLU (lane-dense padded widths; pad rows/cols are zero)
    h = jnp.maximum(
        jnp.dot(pooled, w1_ref[...], preferred_element_type=jnp.float32) + b1_ref[...],
        0.0)                                         # (TB, HP)
    h = jnp.maximum(
        jnp.dot(h, w2_ref[...], preferred_element_type=jnp.float32) + b2_ref[...],
        0.0)                                         # (TB, HP)

    # ---- fc3, emitted as a lane-dense transposed (8, TB) block; row 0 is the output.
    y = jax.lax.dot_general(w3t_ref[...], h, (((1,), (1,)), ((), ())),
                            preferred_element_type=jnp.float32)   # (8, TB)
    out_ref[...] = y + b3_ref[0]


def baseline_forward(x_ids, embed_table, w1, b1, w2, b2, w3, b3):
    """Forward pass of BaselineModel.

    x_ids:       (B, S) int32 token ids
    embed_table: (V, E) f32
    w1,b1,w2,b2,w3,b3: PyTorch nn.Linear layout, i.e. w* is (out, in), b* is (out,)
    Returns (B, 1) f32.
    """
    B, S = x_ids.shape
    V, E = embed_table.shape
    H = w1.shape[0]
    f32 = jnp.float32

    EP = _round_up(max(E, LANE), LANE)   # lane-dense embedding width
    HP = _round_up(max(H, LANE), LANE)   # lane-dense hidden width
    VP = _round_up(max(V, LANE), LANE)   # padded vocab (contracting dim of the pooling matmuls)

    TB = _pick_batch_tile(B, S, VP)
    B_pad = pl.cdiv(B, TB) * TB

    ids = x_ids.astype(jnp.int32)
    if B_pad != B:
        # Padded rows compute garbage that is sliced off below (no memory is indexed
        # by ids in-kernel, so padding with 0 is always safe).
        ids = jnp.pad(ids, ((0, B_pad - B), (0, 0)))

    # Repack table/weights once, zero-padded to lane-dense widths (padding is exact:
    # padded embedding lanes pool to 0, padded hidden units see zero weights/bias).
    t_f32 = embed_table.astype(f32)
    t_hi = t_f32.astype(jnp.bfloat16).astype(f32)
    t_lo = t_f32 - t_hi
    thi_p = jnp.zeros((VP, EP), f32).at[:V, :E].set(t_hi)
    tlo_p = jnp.zeros((VP, EP), f32).at[:V, :E].set(t_lo)
    ind_p = jnp.zeros((VP, EP), f32).at[:V, :E].set((embed_table != 0).astype(f32))

    w1p = jnp.zeros((EP, HP), f32).at[:E, :H].set(w1.T.astype(f32))
    b1p = jnp.zeros((1, HP), f32).at[0, :H].set(b1.astype(f32))
    w2p = jnp.zeros((HP, HP), f32).at[:H, :H].set(w2.T.astype(f32))
    b2p = jnp.zeros((1, HP), f32).at[0, :H].set(b2.astype(f32))
    # fc3 weight replicated over 8 sublanes -> aligned (8, HP) x (TB, HP)^T matmul.
    w3t_p = jnp.zeros((8, HP), f32).at[:, :H].set(jnp.broadcast_to(w3.astype(f32), (8, H)))
    b3s = b3.astype(f32).reshape((1,))

    const = lambda i: (0, 0)   # resident operands: same block every grid step -> no re-DMA

    out = pl.pallas_call(
        baseline_kernel,
        out_shape=jax.ShapeDtypeStruct((8, B_pad), f32),
        grid=(B_pad // TB,),
        in_specs=[
            pl.BlockSpec((TB, S), lambda i: (i, 0)),      # streamed int32 id tiles
            pl.BlockSpec((VP, EP), const),                # table (hi part), resident
            pl.BlockSpec((VP, EP), const),                # table (lo part), resident
            pl.BlockSpec((VP, EP), const),                # nonzero indicator, resident
            pl.BlockSpec((EP, HP), const),                # fc1 W
            pl.BlockSpec((1, HP), const),                 # fc1 b
            pl.BlockSpec((HP, HP), const),                # fc2 W
            pl.BlockSpec((1, HP), const),                 # fc2 b
            pl.BlockSpec((8, HP), const),                 # fc3 W (row-replicated)
            pl.BlockSpec(memory_space=pltpu.MemorySpace.SMEM),   # fc3 bias scalar
        ],
        out_specs=pl.BlockSpec((8, TB), lambda i: (0, i)),
        compiler_params=pltpu.CompilerParams(
            dimension_semantics=("parallel",),   # batch tiles shard across TCs (v7x)
            vmem_limit_bytes=48 * 1024 * 1024,
        ),
    )(ids, thi_p, tlo_p, ind_p, w1p, b1p, w2p, b2p, w3t_p, b3s)

    return out[0, :B].reshape(B, 1)


def reference_forward(x_ids, embed_table, w1, b1, w2, b2, w3, b3):
    embeds = jnp.take(embed_table, x_ids, axis=0)
    pooled = embeds.sum(axis=1) / jnp.maximum(
        (embeds != 0).astype(jnp.float32).sum(axis=1), 1.0)
    h = jnp.maximum(pooled @ w1.T + b1, 0.0)
    h = jnp.maximum(h @ w2.T + b2, 0.0)
    return h @ w3.T + b3


if __name__ == "__main__":
    # Small shapes consistent with the module: batch=8, seq=8, embed=hidden=32.
    B, S = 8, 8
    VOCAB = 32
    E = 32      # input_size (embedding dim)
    H = 32      # hidden_size

    key = jax.random.PRNGKey(0)
    k_emb, k_w1, k_b1, k_w2, k_b2, k_w3, k_b3, k_x = jax.random.split(key, 8)

    # Embedding row 0 = padding (all zeros) -> exercises the nonzero-count denominator.
    embed_table = jax.random.normal(k_emb, (VOCAB, E), jnp.float32) * 0.1
    embed_table = embed_table.at[0].set(0.0)

    # PyTorch nn.Linear layout: W (out, in), b (out,)
    W1 = jax.random.normal(k_w1, (H, E), jnp.float32) * 0.1
    B1 = jax.random.normal(k_b1, (H,), jnp.float32) * 0.1
    W2 = jax.random.normal(k_w2, (H, H), jnp.float32) * 0.1
    B2 = jax.random.normal(k_b2, (H,), jnp.float32) * 0.1
    W3 = jax.random.normal(k_w3, (1, H), jnp.float32) * 0.1
    B3 = jax.random.normal(k_b3, (1,), jnp.float32) * 0.1

    x_ids = jax.random.randint(k_x, (B, S), 0, VOCAB, dtype=jnp.int32)

    out = baseline_forward(x_ids, embed_table, W1, B1, W2, B2, W3, B3)
    out = jax.block_until_ready(out)

    ref = reference_forward(x_ids, embed_table, W1, B1, W2, B2, W3, B3)
    assert out.shape == (B, 1)
    # Pooling is f32-exact in the kernel (hi/lo table split, exact divide); remaining
    # difference is the default TPU matmul precision noise present in both paths.
    assert jnp.allclose(out, ref, atol=2e-3, rtol=2e-3)

    print("KERNEL_OK")
</pallas_src>

<mosaic_0001>
module attributes {stable_mosaic.version = 11 : i64} {
  func.func @baseline_kernel(%arg0: i32, %arg1: memref<128x8xi32, #tpu.memory_space<vmem>>, %arg2: memref<128x128xf32, #tpu.memory_space<vmem>>, %arg3: memref<128x128xf32, #tpu.memory_space<vmem>>, %arg4: memref<128x128xf32, #tpu.memory_space<vmem>>, %arg5: memref<128x128xf32, #tpu.memory_space<vmem>>, %arg6: memref<1x128xf32, #tpu.memory_space<vmem>>, %arg7: memref<128x128xf32, #tpu.memory_space<vmem>>, %arg8: memref<1x128xf32, #tpu.memory_space<vmem>>, %arg9: memref<8x128xf32, #tpu.memory_space<vmem>>, %arg10: memref<1xf32, #tpu.memory_space<smem>>, %arg11: memref<8x128xf32, #tpu.memory_space<vmem>>) attributes {dimension_semantics = [#tpu.dimension_semantics<parallel>], iteration_bounds = array<i64: 1>, scalar_prefetch = 0 : i64, scratch_operands = 0 : i64, tpu.core_type = #tpu.core_type<tc>, window_params = [{transform_indices = @transform_0, window_bounds = array<i64: 128, 8>}, {pipeline_mode = #tpu.pipeline_mode<synchronous>, transform_indices = @transform_1, window_bounds = array<i64: 128, 128>}, {pipeline_mode = #tpu.pipeline_mode<synchronous>, transform_indices = @transform_2, window_bounds = array<i64: 128, 128>}, {pipeline_mode = #tpu.pipeline_mode<synchronous>, transform_indices = @transform_3, window_bounds = array<i64: 128, 128>}, {pipeline_mode = #tpu.pipeline_mode<synchronous>, transform_indices = @transform_4, window_bounds = array<i64: 128, 128>}, {pipeline_mode = #tpu.pipeline_mode<synchronous>, transform_indices = @transform_5, window_bounds = array<i64: 1, 128>}, {pipeline_mode = #tpu.pipeline_mode<synchronous>, transform_indices = @transform_6, window_bounds = array<i64: 128, 128>}, {pipeline_mode = #tpu.pipeline_mode<synchronous>, transform_indices = @transform_7, window_bounds = array<i64: 1, 128>}, {pipeline_mode = #tpu.pipeline_mode<synchronous>, transform_indices = @transform_8, window_bounds = array<i64: 8, 128>}, {transform_indices = @transform_9, window_bounds = array<i64: 1>}, {transform_indices = @transform_10, window_bounds = array<i64: 8, 128>}]} {
    %c0 = arith.constant 0 : index
    %c0_0 = arith.constant 0 : index
    %0 = vector.load %arg1[%c0, %c0_0] : memref<128x8xi32, #tpu.memory_space<vmem>>, vector<128x8xi32>
    %1 = tpu.iota {dimensions = array<i32: 2>} : vector<128x8x128xi32>
    %2 = vector.shape_cast %0 : vector<128x8xi32> to vector<128x8x1xi32>
    %3 = vector.broadcast %2 : vector<128x8x1xi32> to vector<128x8x128xi32>
    %4 = arith.cmpi eq, %3, %1 : vector<128x8x128xi32>
    %5 = arith.extui %4 : vector<128x8x128xi1> to vector<128x8x128xi32>
    %6 = arith.sitofp %5 : vector<128x8x128xi32> to vector<128x8x128xf32>
    %cst = arith.constant dense<0.000000e+00> : vector<128x128xf32>
    %7 = vector.multi_reduction <add>, %6, %cst [1] : vector<128x8x128xf32> to vector<128x128xf32>
    %c0_1 = arith.constant 0 : index
    %c0_2 = arith.constant 0 : index
    %8 = vector.load %arg2[%c0_1, %c0_2] : memref<128x128xf32, #tpu.memory_space<vmem>>, vector<128x128xf32>
    %cst_3 = arith.constant dense<0.000000e+00> : vector<128x128xf32>
    %9 = tpu.matmul %7, %8, %cst_3 {dimension_numbers = #tpu.dot_dimension_numbers<[1], [0], [0], [1], [0, 0, 1, 1], [], []>} : vector<128x128xf32>, vector<128x128xf32>, vector<128x128xf32> -> vector<128x128xf32>
    %c0_4 = arith.constant 0 : index
    %c0_5 = arith.constant 0 : index
    %10 = vector.load %arg3[%c0_4, %c0_5] : memref<128x128xf32, #tpu.memory_space<vmem>>, vector<128x128xf32>
    %cst_6 = arith.constant dense<0.000000e+00> : vector<128x128xf32>
    %11 = tpu.matmul %7, %10, %cst_6 {dimension_numbers = #tpu.dot_dimension_numbers<[1], [0], [0], [1], [0, 0, 1, 1], [], []>} : vector<128x128xf32>, vector<128x128xf32>, vector<128x128xf32> -> vector<128x128xf32>
    %12 = arith.addf %9, %11 : vector<128x128xf32>
    %c0_7 = arith.constant 0 : index
    %c0_8 = arith.constant 0 : index
    %13 = vector.load %arg4[%c0_7, %c0_8] : memref<128x128xf32, #tpu.memory_space<vmem>>, vector<128x128xf32>
    %cst_9 = arith.constant dense<0.000000e+00> : vector<128x128xf32>
    %14 = tpu.matmul %7, %13, %cst_9 {dimension_numbers = #tpu.dot_dimension_numbers<[1], [0], [0], [1], [0, 0, 1, 1], [], []>} : vector<128x128xf32>, vector<128x128xf32>, vector<128x128xf32> -> vector<128x128xf32>
    %cst_10 = arith.constant 1.000000e+00 : f32
    %15 = vector.broadcast %cst_10 : f32 to vector<128x128xf32>
    %16 = arith.maximumf %14, %15 : vector<128x128xf32>
    %17 = arith.divf %12, %16 : vector<128x128xf32>
    %c0_11 = arith.constant 0 : index
    %c0_12 = arith.constant 0 : index
    %18 = vector.load %arg5[%c0_11, %c0_12] : memref<128x128xf32, #tpu.memory_space<vmem>>, vector<128x128xf32>
    %cst_13 = arith.constant dense<0.000000e+00> : vector<128x128xf32>
    %19 = tpu.matmul %17, %18, %cst_13 {dimension_numbers = #tpu.dot_dimension_numbers<[1], [0], [0], [1], [0, 0, 1, 1], [], []>} : vector<128x128xf32>, vector<128x128xf32>, vector<128x128xf32> -> vector<128x128xf32>
    %c0_14 = arith.constant 0 : index
    %c0_15 = arith.constant 0 : index
    %20 = vector.load %arg6[%c0_14, %c0_15] : memref<1x128xf32, #tpu.memory_space<vmem>>, vector<1x128xf32>
    %21 = vector.broadcast %20 : vector<1x128xf32> to vector<128x128xf32>
    %22 = arith.addf %19, %21 : vector<128x128xf32>
    %cst_16 = arith.constant 0.000000e+00 : f32
    %23 = vector.broadcast %cst_16 : f32 to vector<128x128xf32>
    %24 = arith.maximumf %22, %23 : vector<128x128xf32>
    %c0_17 = arith.constant 0 : index
    %c0_18 = arith.constant 0 : index
    %25 = vector.load %arg7[%c0_17, %c0_18] : memref<128x128xf32, #tpu.memory_space<vmem>>, vector<128x128xf32>
    %cst_19 = arith.constant dense<0.000000e+00> : vector<128x128xf32>
    %26 = tpu.matmul %24, %25, %cst_19 {dimension_numbers = #tpu.dot_dimension_numbers<[1], [0], [0], [1], [0, 0, 1, 1], [], []>} : vector<128x128xf32>, vector<128x128xf32>, vector<128x128xf32> -> vector<128x128xf32>
    %c0_20 = arith.constant 0 : index
    %c0_21 = arith.constant 0 : index
    %27 = vector.load %arg8[%c0_20, %c0_21] : memref<1x128xf32, #tpu.memory_space<vmem>>, vector<1x128xf32>
    %28 = vector.broadcast %27 : vector<1x128xf32> to vector<128x128xf32>
    %29 = arith.addf %26, %28 : vector<128x128xf32>
    %cst_22 = arith.constant 0.000000e+00 : f32
    %30 = vector.broadcast %cst_22 : f32 to vector<128x128xf32>
    %31 = arith.maximumf %29, %30 : vector<128x128xf32>
    %c0_23 = arith.constant 0 : index
    %c0_24 = arith.constant 0 : index
    %32 = vector.load %arg9[%c0_23, %c0_24] : memref<8x128xf32, #tpu.memory_space<vmem>>, vector<8x128xf32>
    %cst_25 = arith.constant dense<0.000000e+00> : vector<8x128xf32>
    %33 = tpu.matmul %32, %31, %cst_25 {dimension_numbers = #tpu.dot_dimension_numbers<[1], [1], [0], [0], [0, 0, 1, 0], [], []>} : vector<8x128xf32>, vector<128x128xf32>, vector<8x128xf32> -> vector<8x128xf32>
    %c0_26 = arith.constant 0 : index
    %34 = memref.load %arg10[%c0_26] : memref<1xf32, #tpu.memory_space<smem>>
    %35 = vector.broadcast %34 : f32 to vector<8x128xf32>
    %36 = arith.addf %33, %35 : vector<8x128xf32>
    %c0_27 = arith.constant 0 : index
    %c0_28 = arith.constant 0 : index
    %37 = vector.load %arg11[%c0_27, %c0_28] : memref<8x128xf32, #tpu.memory_space<vmem>>, vector<8x128xf32>
    tpu.vector_store %arg11[%c0_27, %c0_28], %36 {strides = array<i32>} : memref<8x128xf32, #tpu.memory_space<vmem>>, vector<8x128xf32>,
    return
  }
  func.func @transform_0(%arg0: i32) -> (i32, i32) {
    %c0_i32 = arith.constant 0 : i32
    %c0_i32_0 = arith.constant 0 : i32
    return %arg0, %c0_i32 : i32, i32
  }
  func.func @transform_1(%arg0: i32) -> (i32, i32) {
    %c0_i32 = arith.constant 0 : i32
    %c0_i32_0 = arith.constant 0 : i32
    %c0_i32_1 = arith.constant 0 : i32
    return %c0_i32, %c0_i32_0 : i32, i32
  }
  func.func @transform_2(%arg0: i32) -> (i32, i32) {
    %c0_i32 = arith.constant 0 : i32
    %c0_i32_0 = arith.constant 0 : i32
    %c0_i32_1 = arith.constant 0 : i32
    return %c0_i32, %c0_i32_0 : i32, i32
  }
  func.func @transform_3(%arg0: i32) -> (i32, i32) {
    %c0_i32 = arith.constant 0 : i32
    %c0_i32_0 = arith.constant 0 : i32
    %c0_i32_1 = arith.constant 0 : i32
    return %c0_i32, %c0_i32_0 : i32, i32
  }
  func.func @transform_4(%arg0: i32) -> (i32, i32) {
    %c0_i32 = arith.constant 0 : i32
    %c0_i32_0 = arith.constant 0 : i32
    %c0_i32_1 = arith.constant 0 : i32
    return %c0_i32, %c0_i32_0 : i32, i32
  }
  func.func @transform_5(%arg0: i32) -> (i32, i32) {
    %c0_i32 = arith.constant 0 : i32
    %c0_i32_0 = arith.constant 0 : i32
    %c0_i32_1 = arith.constant 0 : i32
    return %c0_i32, %c0_i32_0 : i32, i32
  }
  func.func @transform_6(%arg0: i32) -> (i32, i32) {
    %c0_i32 = arith.constant 0 : i32
    %c0_i32_0 = arith.constant 0 : i32
    %c0_i32_1 = arith.constant 0 : i32
    return %c0_i32, %c0_i32_0 : i32, i32
  }
  func.func @transform_7(%arg0: i32) -> (i32, i32) {
    %c0_i32 = arith.constant 0 : i32
    %c0_i32_0 = arith.constant 0 : i32
    %c0_i32_1 = arith.constant 0 : i32
    return %c0_i32, %c0_i32_0 : i32, i32
  }
  func.func @transform_8(%arg0: i32) -> (i32, i32) {
    %c0_i32 = arith.constant 0 : i32
    %c0_i32_0 = arith.constant 0 : i32
    %c0_i32_1 = arith.constant 0 : i32
    return %c0_i32, %c0_i32_0 : i32, i32
  }
  func.func @transform_9(%arg0: i32) -> i32 {
    %c0_i32 = arith.constant 0 : i32
    %c0_i32_0 = arith.constant 0 : i32
    return %c0_i32 : i32
  }
  func.func @transform_10(%arg0: i32) -> (i32, i32) {
    %c0_i32 = arith.constant 0 : i32
    %c0_i32_0 = arith.constant 0 : i32
    return %c0_i32, %arg0 : i32, i32
  }
}

</mosaic_0001>

<bundles_post_ra>
// kernel: tpu_custom_call.1
= control target key start
LH: loop header
LB: loop body
LE: loop exit
PB: predicated region body
PF: predicated region fallthrough
CT: control target
= control target key end

     0   :  { %16 = vsyncpa [#allocation4], 0  ;;  %s5796_s0 = inlined_call_operand.vmem [shape: s32[128,8], index: 0, kind: input, shape index: {}]   ;;  %s5797_s1 = inlined_call_operand.vmem [shape: f32[128,128], index: 1, kind: input, shape index: {}]   ;;  %s5798_s2 = inlined_call_operand.hbm [shape: f32[128,128], index: 2, kind: input, shape index: {}]   ;;  %s5799_s3 = inlined_call_operand.hbm [shape: f32[128,128], index: 3, kind: input, shape index: {}]   ;;  %s5800_s4 = inlined_call_operand.hbm [shape: f32[128,128], index: 4, kind: input, shape index: {}]   ;;  %s5801_s5 = inlined_call_operand.vmem [shape: f32[1,128], index: 5, kind: input, shape index: {}]   ;;  %s5802_s6 = inlined_call_operand.hbm [shape: f32[128,128], index: 6, kind: input, shape index: {}]   ;;  %s5803_s7 = inlined_call_operand.vmem [shape: f32[1,128], index: 7, kind: input, shape index: {}]   ;;  %s5804_s8 = inlined_call_operand.vmem [shape: f32[8,128], index: 8, kind: input, shape index: {}]   ;;  %s5805_s9 = inlined_call_operand.<no memory space> [shape: f32[1], index: 9, kind: input, shape index: {}]   ;;  %s5806_s10 = inlined_call_operand.hbm [shape: f32[8,128], index: 10, kind: output, shape index: {}]  }
   0x1   :  { %17 = vsyncpa [#allocation7], 0 }
   0x2   :  { %18 = vsyncpa [#allocation10], 0 }
   0x3   :  { %19 = vsyncpa [#allocation5], 0  ;;  %s4185_s13 = smov [#allocation6]   ;;  %s4186_s15 = smov [#allocation3]  }
   0x4   :  { %s41_s14 = sshll.u32 %s4185_s13, 4  ;;  %s29_s16 = sshll.u32 %s4186_s15, 4  ;;  %s42_s14 = int_to_ptr.vmem [resolvable:$true] %s41_s14  ;;  %s30_s16 = int_to_ptr.vmem [resolvable:$true] %s29_s16 }
   0x5   :  { %s4085_s17 = scalar_lea.vmem %s42_s14, 2048  ;;  %p4090_p1 = scmp.lt.s32.totalorder %s42_s14, %s42_s14 }
   0x6   :  { %p4086_p0 = scmp.ne.s32.totalorder %s42_s14, %s4085_s17  ;;  %p4091_p2 = scmp.lt.s32.totalorder %s4085_s17, %s4085_s17 }
   0x8   :  { %p4092_p3 = por %p4091_p2, %p4090_p1 }
   0xa   :  { %p4093_p4 = pnand %p4092_p3, %p4086_p0 }
   0xc   :  { %4096 = shalt.err (!%p4093_p4)
}
   0xd   :  { %s4187_s18 = smov 128   ;;  %s4188_s19 = smov 8  }
   0xe   :  { %47 = dma.hbm_to_vmem [thread:$0]  %s5799_s3, 2048, %s42_s14, [#allocation7], %s4187_s18, %s4187_s18, %s4188_s19  }
   0xf   :  { %s4105_s22 = scalar_lea.vmem %s30_s16, 2048  ;;  %p4110_p6 = scmp.lt.s32.totalorder %s30_s16, %s30_s16 }
  0x10   :  { %p4106_p5 = scmp.ne.s32.totalorder %s30_s16, %s4105_s22  ;;  %p4111_p7 = scmp.lt.s32.totalorder %s4105_s22, %s4105_s22 }
  0x12   :  { %p4112_p8 = por %p4111_p7, %p4110_p6 }
  0x14   :  { %p4113_p9 = pnand %p4112_p8, %p4106_p5 }
  0x16   :  { %4116 = shalt.err (!%p4113_p9)
}
  0x17   :  { %35 = dma.hbm_to_vmem [thread:$0]  %s5798_s2, 2048, %s30_s16, [#allocation4], %s4187_s18, %s4187_s18, %s4188_s19  }
  0x18   :  { %s4189_s25 = smov [#allocation8]   ;;  %s4190_s27 = smov [#allocation9]  }
  0x19   :  { %s53_s26 = sshll.u32 %s4189_s25, 4  ;;  %s67_s28 = sshll.u32 %s4190_s27, 4  ;;  %s54_s26 = int_to_ptr.vmem [resolvable:$true] %s53_s26  ;;  %s68_s28 = int_to_ptr.vmem [resolvable:$true] %s67_s28 }
  0x1a   :  { %s4125_s3 = scalar_lea.vmem %s54_s26, 2048  ;;  %p4130_p11 = scmp.lt.s32.totalorder %s54_s26, %s54_s26 }
  0x1b   :  { %p4126_p10 = scmp.ne.s32.totalorder %s54_s26, %s4125_s3  ;;  %p4131_p12 = scmp.lt.s32.totalorder %s4125_s3, %s4125_s3 }
  0x1d   :  { %p4132_p13 = por %p4131_p12, %p4130_p11 }
  0x1f   :  { %p4133_p0 = pnand %p4132_p13, %p4126_p10 }
  0x21   :  { %4136 = shalt.err (!%p4133_p0)
}
  0x22   :  { %59 = dma.hbm_to_vmem [thread:$0]  %s5800_s4, 2048, %s54_s26, [#allocation7], %s4187_s18, %s4187_s18, %s4188_s19  }
  0x23   :  { %s4145_s2 = scalar_lea.vmem %s68_s28, 2048  ;;  %p4150_p2 = scmp.lt.s32.totalorder %s68_s28, %s68_s28 }
  0x24   :  { %p4146_p1 = scmp.ne.s32.totalorder %s68_s28, %s4145_s2  ;;  %p4151_p3 = scmp.lt.s32.totalorder %s4145_s2, %s4145_s2 }
  0x26   :  { %p4152_p4 = por %p4151_p3, %p4150_p2 }
  0x28   :  { %p4153_p5 = pnand %p4152_p4, %p4146_p1 }
  0x2a   :  { %4156 = shalt.err (!%p4153_p5)
}
  0x2b   :  { %73 = dma.hbm_to_vmem [thread:$0]  %s5802_s6, 2048, %s68_s28, [#allocation10], %s4187_s18, %s4187_s18, %s4188_s19  }
  0x2c   :  { %4177 = dma.done.wait [#allocation4], 2048  }
  0x2d   :  { %4178 = vsyncadd [#allocation4], 4294965248 }
  0x2e   :  { %4179 = dma.done.wait [#allocation7], 4096  }
  0x2f   :  { %4180 = vsyncadd [#allocation7], 4294963200 }
  0x30   :  { %4181 = dma.done.wait [#allocation10], 2048  }
  0x31   :  { %4182 = vsyncadd [#allocation10], 4294965248  ;;  %v108_v0 = vlaneseq  ;;  %v4288_v5 = vld [vmem:[%s5796_s0] sm:$0xff]  ;;  %v4293_v6 = vld [vmem:[%s5796_s0 + $0x8] sm:$0xff]  ;;  %vm2318_vm8 = vcmask 1041409   ;;  %vm2320_vm13 = vcmask 1042434  }
  0x32   :  { %v4327_v20 = vld [vmem:[%s5796_s0 + $0x10] sm:$0xff]  ;;  %v2189_v24 = vld [vmem:[#allocation3 + $0x78] sm:$0xff]  ;;  %v2187_v30 = vld [vmem:[#allocation3 + $0x68] sm:$0xff]  ;;  %s4193_s6 = smov [#allocation11]  }
  0x33   :  { %v4274_v1 = vshrl.u32 %v108_v0, 7  ;;  %v2173_v25 = vld [vmem:[%s5797_s1 + $0x78] sm:$0xff]  ;;  %3718 = vmatprep.subr.mxu0 %v2189_v24  ;;  %v2188_v28 = vld [vmem:[#allocation3 + $0x70] sm:$0xff]  ;;  %v2171_v31 = vld [vmem:[%s5797_s1 + $0x68] sm:$0xff]  ;;  %s3400_s13 = sshll.u32 %s4193_s6, 4  ;;  %s3401_s13 = int_to_ptr.vmem [resolvable:$true] %s3400_s13 }
  0x34   :  { %3774 = vmatprep.subr.mxu1 %v2173_v25  ;;  %v2172_v29 = vld [vmem:[%s5797_s1 + $0x70] sm:$0xff]  ;;  %3719 = vmatpush3.msra.mxu0 %v2189_v24  ;;  %v2186_v34 = vld [vmem:[#allocation3 + $0x60] sm:$0xff]  ;;  %v4359_v36 = vld [vmem:[%s5796_s0 + $0x18] sm:$0xff]  ;;  %s4157_s14 = scalar_lea.vmem %s3401_s13, 128  ;;  %p4162_p7 = scmp.lt.s32.totalorder %s3401_s13, %s3401_s13 }
  0x35   :  { %v4277_v2 = vsub.s32 2, %v4274_v1  ;;  %v4280_v3 = vsub.s32 0, %v4274_v1  ;;  %v4283_v4 = vsub.s32 1, %v4274_v1  ;;  %v4304_v11 = vsub.s32 3, %v4274_v1  ;;  %3775 = vmatpush3.msra.mxu1 %v2173_v25  ;;  %3720 = vmatprep.subr.mxu0 %v2188_v28  ;;  %v2170_v35 = vld [vmem:[%s5797_s1 + $0x60] sm:$0xff]  ;;  %v2185_v37 = vld [vmem:[#allocation3 + $0x58] sm:$0xff]  ;;  %p4158_p6 = scmp.ne.s32.totalorder %s3401_s13, %s4157_s14  ;;  %p4163_p8 = scmp.lt.s32.totalorder %s4157_s14, %s4157_s14 }
  0x36   :  { %v4311_v14 = vsub.s32 4, %v4274_v1  ;;  %v4318_v17 = vsub.s32 5, %v4274_v1  ;;  %v4334_v23 = vsub.s32 6, %v4274_v1  ;;  %3776 = vmatprep.subr.mxu1 %v2172_v29  ;;  %3721 = vmatpush3.msra.mxu0 %v2188_v28  ;;  %v2169_v38 = vld [vmem:[%s5797_s1 + $0x58] sm:$0xff]  ;;  %v4369_v41 = vsub.s32 7, %v4274_v1  ;;  %v2184_v42 = vld [vmem:[#allocation3 + $0x50] sm:$0xff] }
  0x37   :  { %v127_v7 = vrot.slane %v4288_v5, %v4277_v2  ;;  %v113_v8 = vrot.slane %v4288_v5, %v4280_v3  ;;  %v169_v9 = vrot.slane %v4293_v6, %v4280_v3  ;;  %v120_v10 = vrot.slane %v4288_v5, %v4283_v4  ;;  %3777 = vmatpush3.msra.mxu1 %v2172_v29  ;;  %v2168_v43 = vld [vmem:[%s5797_s1 + $0x50] sm:$0xff]  ;;  %v2183_v46 = vld [vmem:[#allocation3 + $0x48] sm:$0xff]  ;;  %v2182_v48 = vld [vmem:[#allocation3 + $0x40] sm:$0xff]  ;;  %p4164_p9 = por %p4163_p8, %p4162_p7 }
  0x38   :  { %v134_v12 = vrot.slane %v4288_v5, %v4304_v11  ;;  %v176_v13 = vrot.slane %v4293_v6, %v4283_v4  ;;  %v141_v15 = vrot.slane %v4288_v5, %v4311_v14  ;;  %v183_v16 = vrot.slane %v4293_v6, %v4277_v2  ;;  %3722 = vmatprep.subr.mxu0 %v2187_v30  ;;  %v2167_v47 = vld [vmem:[%s5797_s1 + $0x48] sm:$0xff]  ;;  %v2166_v49 = vld [vmem:[%s5797_s1 + $0x40] sm:$0xff]  ;;  %v2181_v52 = vld [vmem:[#allocation3 + $0x38] sm:$0xff] }
  0x39   :  { %129 = vbcast.lane.b32.xlu1 %v127_v7, 256  ;;  %115 = vbcast.lane.b32.xlu0 %v113_v8, 256  ;;  %v148_v18 = vrot.slane %v4288_v5, %v4318_v17  ;;  %v190_v19 = vrot.slane %v4293_v6, %v4304_v11  ;;  %v225_v21 = vrot.slane %v4327_v20, %v4280_v3  ;;  %v2165_v53 = vld [vmem:[%s5797_s1 + $0x38] sm:$0xff]  ;;  %v2180_v56 = vld [vmem:[#allocation3 + $0x30] sm:$0xff]  ;;  %v2179_v58 = vld [vmem:[#allocation3 + $0x28] sm:$0xff]  ;;  %p4165_p10 = pnand %p4164_p9, %p4158_p6 }
  0x3a   :  { %v197_v22 = vrot.slane %v4293_v6, %v4311_v14  ;;  %v155_v26 = vrot.slane %v4288_v5, %v4334_v23  ;;  %v232_v27 = vrot.slane %v4327_v20, %v4283_v4  ;;  %v239_v32 = vrot.slane %v4327_v20, %v4277_v2  ;;  %3778 = vmatprep.subr.mxu1 %v2171_v31  ;;  %v2164_v57 = vld [vmem:[%s5797_s1 + $0x30] sm:$0xff]  ;;  %v2163_v59 = vld [vmem:[%s5797_s1 + $0x28] sm:$0xff]  ;;  %v4408_v62 = vld [vmem:[%s5796_s0 + $0x20] sm:$0xff] }
  0x3b   :  { %v204_v33 = vrot.slane %v4293_v6, %v4318_v17  ;;  %3723 = vmatpush3.msra.mxu0 %v2187_v30  ;;  %3779 = vmatpush3.msra.mxu1 %v2171_v31  ;;  %v288_v39 = vrot.slane %v4359_v36, %v4283_v4  ;;  %v281_v40 = vrot.slane %v4359_v36, %v4280_v3  ;;  %v2178_v63 = vld [vmem:[#allocation3 + $0x20] sm:$0xff]  ;;  %v2177_v7 = vld [vmem:[#allocation3 + $0x18] sm:$0xff] }
  0x3c   :  { %3724 = vmatprep.subr.mxu0 %v2186_v34  ;;  %3780 = vmatprep.subr.mxu1 %v2170_v35  ;;  %v211_v44 = vrot.slane %v4293_v6, %v4334_v23  ;;  %v162_v45 = vrot.slane %v4288_v5, %v4369_v41  ;;  %v295_v50 = vrot.slane %v4359_v36, %v4277_v2  ;;  %v2162_v1 = vld [vmem:[%s5797_s1 + $0x20] sm:$0xff]  ;;  %v2161_v8 = vld [vmem:[%s5797_s1 + $0x18] sm:$0xff] }
  0x3d   :  { %171 = vbcast.lane.b32.xlu1 %v169_v9, 256  ;;  %122 = vbcast.lane.b32.xlu0 %v120_v10, 256  ;;  %v246_v51 = vrot.slane %v4327_v20, %v4304_v11  ;;  %v253_v54 = vrot.slane %v4327_v20, %v4311_v14  ;;  %v218_v55 = vrot.slane %v4293_v6, %v4369_v41  ;;  %v2174_v25 = vld [vmem:[#allocation3] sm:$0xff] }
  0x3e   :  { %3725 = vmatpush3.msra.mxu0 %v2186_v34  ;;  %3781 = vmatpush3.msra.mxu1 %v2170_v35  ;;  %v260_v60 = vrot.slane %v4327_v20, %v4318_v17  ;;  %v302_v61 = vrot.slane %v4359_v36, %v4304_v11  ;;  %v337_v5 = vrot.slane %v4408_v62, %v4280_v3  ;;  %v4465_v34 = vld [vmem:[%s5796_s0 + $0x30] sm:$0xff] }
  0x3f   :  { %3726 = vmatprep.subr.mxu0 %v2185_v37  ;;  %3782 = vmatprep.subr.mxu1 %v2169_v38  ;;  %v309_v6 = vrot.slane %v4359_v36, %v4311_v14  ;;  %v267_v9 = vrot.slane %v4327_v20, %v4334_v23  ;;  %v344_v10 = vrot.slane %v4408_v62, %v4283_v4 }
  0x40   :  { %3727 = vmatpush3.msra.mxu0 %v2185_v37  ;;  %3783 = vmatpush3.msra.mxu1 %v2169_v38  ;;  %v274_v28 = vrot.slane %v4327_v20, %v4369_v41  ;;  %v358_v30 = vrot.slane %v4408_v62, %v4304_v11  ;;  %v365_v31 = vrot.slane %v4408_v62, %v4311_v14 }
  0x41   :  { %136 = vbcast.lane.b32.xlu1 %v134_v12, 256  ;;  %178 = vbcast.lane.b32.xlu0 %v176_v13, 256  ;;  %v351_v12 = vrot.slane %v4408_v62, %v4277_v2  ;;  %v316_v13 = vrot.slane %v4359_v36, %v4318_v17  ;;  %v330_v20 = vrot.slane %v4359_v36, %v4369_v41 }
  0x42   :  { %3728 = vmatprep.subr.mxu0 %v2184_v42  ;;  %3784 = vmatprep.subr.mxu1 %v2168_v43  ;;  %v449_v35 = vrot.slane %v4465_v34, %v4280_v3  ;;  %v379_v37 = vrot.slane %v4408_v62, %v4334_v23  ;;  %v456_v38 = vrot.slane %v4465_v34, %v4283_v4 }
  0x43   :  { %3729 = vmatpush3.msra.mxu0 %v2184_v42  ;;  %3785 = vmatpush3.msra.mxu1 %v2168_v43  ;;  %v4482_v42 = vld [vmem:[%s5796_s0 + $0x38] sm:$0xff] }
  0x44   :  { %3730 = vmatprep.subr.mxu0 %v2183_v46  ;;  %3786 = vmatprep.subr.mxu1 %v2167_v47  ;;  %v512_v43 = vrot.slane %v4482_v42, %v4283_v4 }
  0x45   :  { %143 = vbcast.lane.b32.xlu1 %v141_v15, 256  ;;  %185 = vbcast.lane.b32.xlu0 %v183_v16, 256  ;;  %v4431_v15 = vld [vmem:[%s5796_s0 + $0x28] sm:$0xff]  ;;  %v2176_v16 = vld [vmem:[#allocation3 + $0x10] sm:$0xff] }
  0x46   :  { %3731 = vmatpush3.msra.mxu0 %v2183_v46  ;;  %3787 = vmatpush3.msra.mxu1 %v2167_v47  ;;  %v393_v24 = vrot.slane %v4431_v15, %v4280_v3  ;;  %v407_v29 = vrot.slane %v4431_v15, %v4277_v2  ;;  %v386_v46 = vrot.slane %v4408_v62, %v4369_v41 }
  0x47   :  { %3732 = vmatprep.subr.mxu0 %v2182_v48  ;;  %3788 = vmatprep.subr.mxu1 %v2166_v49  ;;  %v519_v47 = vrot.slane %v4482_v42, %v4277_v2 }
  0x48   :  { %3733 = vmatpush3.msra.mxu0 %v2182_v48  ;;  %3789 = vmatpush3.msra.mxu1 %v2166_v49  ;;  %v470_v48 = vrot.slane %v4465_v34, %v4304_v11  ;;  %v4499_v49 = vld [vmem:[%s5796_s0 + $0x40] sm:$0xff] }
  0x49   :  { %150 = vbcast.lane.b32.xlu1 %v148_v18, 256  ;;  %192 = vbcast.lane.b32.xlu0 %v190_v19, 256  ;;  %v2160_v18 = vld [vmem:[%s5797_s1 + $0x10] sm:$0xff]  ;;  %v2175_v19 = vld [vmem:[#allocation3 + $0x8] sm:$0xff] }
  0x4a   :  { %3734 = vmatprep.subr.mxu0 %v2181_v52  ;;  %3790 = vmatprep.subr.mxu1 %v2165_v53 }
  0x4b   :  { %3735 = vmatpush3.msra.mxu0 %v2181_v52  ;;  %3791 = vmatpush3.msra.mxu1 %v2165_v53  ;;  %v4508_v52 = vld [vmem:[%s5796_s0 + $0x48] sm:$0xff]  ;;  %v484_v53 = vrot.slane %v4465_v34, %v4318_v17 }
  0x4c   :  { %3736 = vmatprep.subr.mxu0 %v2180_v56  ;;  %3792 = vmatprep.subr.mxu1 %v2164_v57 }
  0x4d   :  { %227 = vbcast.lane.b32.xlu1 %v225_v21, 256  ;;  %199 = vbcast.lane.b32.xlu0 %v197_v22, 256  ;;  %v2159_v21 = vld [vmem:[%s5797_s1 + $0x8] sm:$0xff]  ;;  %v400_v22 = vrot.slane %v4431_v15, %v4283_v4 }
  0x4e   :  { %3737 = vmatpush3.msra.mxu0 %v2180_v56  ;;  %3793 = vmatpush3.msra.mxu1 %v2164_v57  ;;  %v533_v56 = vrot.slane %v4482_v42, %v4311_v14  ;;  %v491_v57 = vrot.slane %v4465_v34, %v4334_v23 }
  0x4f   :  { %3738 = vmatprep.subr.mxu0 %v2179_v58  ;;  %3794 = vmatprep.subr.mxu1 %v2163_v59 }
  0x50   :  { %3739 = vmatpush3.msra.mxu0 %v2179_v58  ;;  %3795 = vmatpush3.msra.mxu1 %v2163_v59  ;;  %v568_v58 = vrot.slane %v4499_v49, %v4283_v4  ;;  %v575_v59 = vrot.slane %v4499_v49, %v4277_v2 }
  0x51   :  { %157 = vbcast.lane.b32.xlu1 %v155_v26, 256  ;;  %234 = vbcast.lane.b32.xlu0 %v232_v27, 256  ;;  %v2158_v26 = vld [vmem:[%s5797_s1] sm:$0xff]  ;;  %v323_v27 = vrot.slane %v4359_v36, %v4334_v23  ;;  %v421_v36 = vrot.slane %v4431_v15, %v4311_v14 }
  0x52   :  { %3740 = vmatprep.subr.mxu0 %v2178_v63  ;;  %3796 = vmatprep.subr.mxu1 %v2162_v1 }
  0x53   :  { %3741 = vmatpush3.msra.mxu0 %v2178_v63  ;;  %3797 = vmatpush3.msra.mxu1 %v2162_v1  ;;  %v617_v63 = vrot.slane %v4508_v52, %v4280_v3  ;;  %v4536_v1 = vld [vmem:[%s5796_s0 + $0x50] sm:$0xff] }
  0x54   :  { %3742 = vmatprep.subr.mxu0 %v2177_v7  ;;  %3798 = vmatprep.subr.mxu1 %v2161_v8 }
  0x55   :  { %241 = vbcast.lane.b32.xlu1 %v239_v32, 256  ;;  %206 = vbcast.lane.b32.xlu0 %v204_v33, 256  ;;  %v372_v32 = vrot.slane %v4408_v62, %v4318_v17  ;;  %v414_v33 = vrot.slane %v4431_v15, %v4304_v11  ;;  %v624_v62 = vrot.slane %v4508_v52, %v4283_v4 }
  0x56   :  { %3743 = vmatpush3.msra.mxu0 %v2177_v7  ;;  %3799 = vmatpush3.msra.mxu1 %v2161_v8  ;;  %v582_v7 = vrot.slane %v4499_v49, %v4304_v11  ;;  %v4549_v8 = vld [vmem:[%s5796_s0 + $0x58] sm:$0xff] }
  0x57   :  { %3744 = vmatprep.subr.mxu0 %v2176_v16  ;;  %3800 = vmatprep.subr.mxu1 %v2160_v18 }
  0x58   :  { %3745 = vmatpush3.msra.mxu0 %v2176_v16  ;;  %3801 = vmatpush3.msra.mxu1 %v2160_v18  ;;  %v645_v16 = vrot.slane %v4508_v52, %v4311_v14  ;;  %v603_v18 = vrot.slane %v4499_v49, %v4334_v23 }
  0x59   :  { %290 = vbcast.lane.b32.xlu1 %v288_v39, 256  ;;  %283 = vbcast.lane.b32.xlu0 %v281_v40, 256  ;;  %v463_v39 = vrot.slane %v4465_v34, %v4277_v2  ;;  %v428_v40 = vrot.slane %v4431_v15, %v4318_v17 }
  0x5a   :  { %3746 = vmatprep.subr.mxu0 %v2175_v19  ;;  %3802 = vmatprep.subr.mxu1 %v2159_v21 }
  0x5b   :  { %3747 = vmatpush3.msra.mxu0 %v2175_v19  ;;  %3803 = vmatpush3.msra.mxu1 %v2159_v21  ;;  %v680_v19 = vrot.slane %v4536_v1, %v4283_v4  ;;  %v687_v21 = vrot.slane %v4536_v1, %v4277_v2 }
  0x5c   :  { %3748 = vmatprep.subr.mxu0 %v2174_v25  ;;  %3804 = vmatprep.subr.mxu1 %v2158_v26 }
  0x5d   :  { %213 = vbcast.lane.b32.xlu1 %v211_v44, 256  ;;  %164 = vbcast.lane.b32.xlu0 %v162_v45, 256  ;;  %v505_v44 = vrot.slane %v4482_v42, %v4280_v3  ;;  %v435_v45 = vrot.slane %v4431_v15, %v4334_v23 }
  0x5e   :  { %3749 = vmatpush3.msra.mxu0 %v2174_v25  ;;  %3805 = vmatpush3.msra.mxu1 %v2158_v26  ;;  %v729_v25 = vrot.slane %v4549_v8, %v4280_v3  ;;  %v659_v26 = vrot.slane %v4508_v52, %v4334_v23 }
  0x61   :  { %297 = vbcast.lane.b32.xlu1 %v295_v50, 256  ;;  %248 = vbcast.lane.b32.xlu0 %v246_v51, 256  ;;  %v477_v50 = vrot.slane %v4465_v34, %v4311_v14  ;;  %v442_v51 = vrot.slane %v4431_v15, %v4369_v41  ;;  %v673_v15 = vrot.slane %v4536_v1, %v4280_v3 }
  0x65   :  { %255 = vbcast.lane.b32.xlu1 %v253_v54, 256  ;;  %220 = vbcast.lane.b32.xlu0 %v218_v55, 256  ;;  %v526_v54 = vrot.slane %v4482_v42, %v4304_v11  ;;  %v561_v55 = vrot.slane %v4499_v49, %v4280_v3 }
  0x69   :  { %262 = vbcast.lane.b32.xlu1 %v260_v60, 256  ;;  %304 = vbcast.lane.b32.xlu0 %v302_v61, 256  ;;  %v4525_v60 = vand.u32 127, %v108_v0  ;;  %v540_v61 = vrot.slane %v4482_v42, %v4318_v17  ;;  %v547_v0 = vrot.slane %v4482_v42, %v4334_v23 }
  0x6d   :  { %339 = vbcast.lane.b32.xlu1 %v337_v5, 256  ;;  %311 = vbcast.lane.b32.xlu0 %v309_v6, 256  ;;  %v498_v5 = vrot.slane %v4465_v34, %v4369_v41  ;;  %v631_v6 = vrot.slane %v4508_v52, %v4277_v2 }
  0x71   :  { %269 = vbcast.lane.b32.xlu1 %v267_v9, 256  ;;  %346 = vbcast.lane.b32.xlu0 %v344_v10, 256  ;;  %v589_v9 = vrot.slane %v4499_v49, %v4311_v14  ;;  %v554_v10 = vrot.slane %v4482_v42, %v4369_v41 }
  0x75   :  { %353 = vbcast.lane.b32.xlu1 %v351_v12, 256  ;;  %318 = vbcast.lane.b32.xlu0 %v316_v13, 256  ;;  %v596_v12 = vrot.slane %v4499_v49, %v4318_v17  ;;  %v638_v13 = vrot.slane %v4508_v52, %v4304_v11 }
  0x79   :  { %402 = vbcast.lane.b32.xlu1 %v400_v22, 256  ;;  %395 = vbcast.lane.b32.xlu0 %v393_v24, 256  ;;  %v652_v22 = vrot.slane %v4508_v52, %v4318_v17  ;;  %v736_v24 = vrot.slane %v4549_v8, %v4283_v4 }
  0x7d   :  { %325 = vbcast.lane.b32.xlu1 %v323_v27, 256  ;;  %276 = vbcast.lane.b32.xlu0 %v274_v28, 256 }
  0x81   :  { %409 = vbcast.lane.b32.xlu1 %v407_v29, 256  ;;  %360 = vbcast.lane.b32.xlu0 %v358_v30, 256  ;;  %v4584_v29 = vld [vmem:[%s5796_s0 + $0x60] sm:$0xff] }
  0x85   :  { %367 = vbcast.lane.b32.xlu1 %v365_v31, 256  ;;  %332 = vbcast.lane.b32.xlu0 %v330_v20, 256 }
  0x89   :  { %374 = vbcast.lane.b32.xlu1 %v372_v32, 256  ;;  %416 = vbcast.lane.b32.xlu0 %v414_v33, 256 }
  0x8d   :  { %451 = vbcast.lane.b32.xlu1 %v449_v35, 256  ;;  %423 = vbcast.lane.b32.xlu0 %v421_v36, 256 }
  0x91   :  { %381 = vbcast.lane.b32.xlu1 %v379_v37, 256  ;;  %458 = vbcast.lane.b32.xlu0 %v456_v38, 256  ;;  %v4603_v38 = vld [vmem:[%s5796_s0 + $0x68] sm:$0xff] }
  0x95   :  { %465 = vbcast.lane.b32.xlu1 %v463_v39, 256  ;;  %430 = vbcast.lane.b32.xlu0 %v428_v40, 256  ;;  %v4191_v39 = vmov 0.0  }
  0x99   :  { %514 = vbcast.lane.b32.xlu1 %v512_v43, 256  ;;  %507 = vbcast.lane.b32.xlu0 %v505_v44, 256  ;;  %v4659_v44 = vld [vmem:[%s5796_s0 + $0x78] sm:$0xff] }
  0x9d   :  { %437 = vbcast.lane.b32.xlu1 %v435_v45, 256  ;;  %388 = vbcast.lane.b32.xlu0 %v386_v46, 256 }
  0xa1   :  { %521 = vbcast.lane.b32.xlu1 %v519_v47, 256  ;;  %472 = vbcast.lane.b32.xlu0 %v470_v48, 256 }
  0xa5   :  { %479 = vbcast.lane.b32.xlu1 %v477_v50, 256  ;;  %444 = vbcast.lane.b32.xlu0 %v442_v51, 256 }
  0xa9   :  { %486 = vbcast.lane.b32.xlu1 %v484_v53, 256  ;;  %528 = vbcast.lane.b32.xlu0 %v526_v54, 256 }
  0xab   :  { %v130_v30 = vpop.permute.xlu1 %129  ;;  %v116_v31 = vpop.permute.xlu0 %115 }
  0xac   :  { %vm1008_vm0 = vcmp.eq.s32.totalorder %v130_v30, %v4525_v60  ;;  %vm1006_vm1 = vcmp.eq.s32.totalorder %v116_v31, %v4525_v60 }
  0xad   :  { %v3413_v40 = vsel %vm1008_vm0, 1.0, %v4191_v39  ;;  %v3411_v43 = vsel %vm1006_vm1, 1.0, %v4191_v39  ;;  %563 = vbcast.lane.b32.xlu1 %v561_v55, 256  ;;  %535 = vbcast.lane.b32.xlu0 %v533_v56, 256 }
  0xae   :  { %v1402_v46 = vrot.slane %v3413_v40, 4  ;;  %v1390_v47 = vrot.slane %v3411_v43, 4 }
  0xaf   :  { %v172_v51 = vpop.permute.xlu1 %171  ;;  %v123_v53 = vpop.permute.xlu0 %122 }
  0xb0   :  { %v1403_v31 = vadd.f32 %v3413_v40, %v1402_v46  ;;  %vm1014_vm2 = vcmp.eq.s32.totalorder %v172_v51, %v4525_v60  ;;  %vm1007_vm3 = vcmp.eq.s32.totalorder %v123_v53, %v4525_v60  ;;  %v4642_v51 = vld [vmem:[%s5796_s0 + $0x70] sm:$0xff]  ;;  %v1391_v53 = vadd.f32 %v3411_v43, %v1390_v47 }
  0xb1   :  { %v3419_v48 = vsel %vm1014_vm2, 1.0, %v4191_v39  ;;  %v3412_v54 = vsel %vm1007_vm3, 1.0, %v4191_v39  ;;  %493 = vbcast.lane.b32.xlu1 %v491_v57, 256  ;;  %570 = vbcast.lane.b32.xlu0 %v568_v58, 256 }
  0xb2   :  { %v1438_v50 = vrot.slane %v3419_v48, 4  ;;  %v1396_v30 = vrot.slane %v3412_v54, 4  ;;  %v1404_v43 = vrot.slane %v1403_v31, 2 }
  0xb3   :  { %v137_v56 = vpop.permute.xlu1 %136  ;;  %v179_v55 = vpop.permute.xlu0 %178 }
  0xb4   :  { %v1439_v47 = vadd.f32 %v3419_v48, %v1438_v50  ;;  %v1397_v37 = vadd.f32 %v3412_v54, %v1396_v30  ;;  %vm1009_vm4 = vcmp.eq.s32.totalorder %v137_v56, %v4525_v60  ;;  %vm1015_vm5 = vcmp.eq.s32.totalorder %v179_v55, %v4525_v60 }
  0xb5   :  { %577 = vbcast.lane.b32.xlu1 %v575_v59, 256  ;;  %542 = vbcast.lane.b32.xlu0 %v540_v61, 256  ;;  %v1392_v50 = vrot.slane %v1391_v53, 2  ;;  %v3414_v55 = vsel %vm1009_vm4, 1.0, %v4191_v39  ;;  %v3420_v45 = vsel %vm1015_vm5, 1.0, %v4191_v39  ;;  %v1405_v46 = vadd.f32 %v1404_v43, %v1403_v31 }
  0xb6   :  { %v1398_v54 = vrot.slane %v1397_v37, 2  ;;  %v1440_v40 = vrot.slane %v1439_v47, 2  ;;  %v1408_v58 = vrot.slane %v3414_v55, 4  ;;  %v1444_v36 = vrot.slane %v3420_v45, 4 }
  0xb7   :  { %v144_v59 = vpop.permute.xlu1 %143  ;;  %v186_v57 = vpop.permute.xlu0 %185  ;;  %v1393_v31 = vadd.f32 %v1392_v50, %v1391_v53  ;;  %v1406_v32 = vrot.slane %v1405_v46, 1 }
  0xb8   :  { %vm1010_vm6 = vcmp.eq.s32.totalorder %v144_v59, %v4525_v60  ;;  %vm1016_vm7 = vcmp.eq.s32.totalorder %v186_v57, %v4525_v60  ;;  %v1399_v43 = vadd.f32 %v1398_v54, %v1397_v37  ;;  %v1409_v48 = vadd.f32 %v3414_v55, %v1408_v58 }
  0xb9   :  { %626 = vbcast.lane.b32.xlu1 %v624_v62, 256  ;;  %619 = vbcast.lane.b32.xlu0 %v617_v63, 256  ;;  %v3415_v30 = vsel %vm1010_vm6, 1.0, %v4191_v39  ;;  %v3421_v56 = vsel %vm1016_vm7, 1.0, %v4191_v39  ;;  %v1445_v61 = vadd.f32 %v3420_v45, %v1444_v36  ;;  %v1441_v20 = vadd.f32 %v1440_v40, %v1439_v47 }
  0xba   :  { %v1414_v35 = vrot.slane %v3415_v30, 4  ;;  %v1450_v59 = vrot.slane %v3421_v56, 4  ;;  %v1410_v62 = vrot.slane %v1409_v48, 2  ;;  %v1394_v36 = vrot.slane %v1393_v31, 1 }
  0xbb   :  { %v151_v33 = vpop.permute.xlu1 %150  ;;  %v193_v57 = vpop.permute.xlu0 %192  ;;  %v1446_v63 = vrot.slane %v1445_v61, 2  ;;  %v1400_v45 = vrot.slane %v1399_v43, 1  ;;  %v1442_v34 = vrot.slane %v1441_v20, 1 }
  0xbc   :  { %vm1011_vm9 = vcmp.eq.s32.totalorder %v151_v33, %v4525_v60  ;;  %vm1017_vm10 = vcmp.eq.s32.totalorder %v193_v57, %v4525_v60  ;;  %v1415_v37 = vadd.f32 %v3415_v30, %v1414_v35  ;;  %v1451_v53 = vadd.f32 %v3421_v56, %v1450_v59 }
  0xbd   :  { %549 = vbcast.lane.b32.xlu1 %v547_v0, 256  ;;  %500 = vbcast.lane.b32.xlu0 %v498_v5, 256  ;;  %v3416_v40 = vsel %vm1011_vm9, 1.0, %v4191_v39  ;;  %v3422_v33 = vsel %vm1017_vm10, 1.0, %v4191_v39  ;;  %v1411_v58 = vadd.f32 %v1410_v62, %v1409_v48  ;;  %v1447_v47 = vadd.f32 %v1446_v63, %v1445_v61 }
  0xbe   :  { %v1416_v50 = vrot.slane %v1415_v37, 2  ;;  %v1452_v54 = vrot.slane %v1451_v53, 2  ;;  %v1420_v56 = vrot.slane %v3416_v40, 4  ;;  %v1456_v55 = vrot.slane %v3422_v33, 4 }
  0xbf   :  { %v228_v35 = vpop.permute.xlu1 %227  ;;  %v200_v30 = vpop.permute.xlu0 %199  ;;  %v1448_v0 = vrot.slane %v1447_v47, 1  ;;  %v1407_v63 = vadd.f32 %v1406_v32, %v1405_v46  ;;  %vm2322_vm10 = vcmask 1043459  }
  0xc0   :  { %vm1022_vm11 = vcmp.eq.s32.totalorder %v228_v35, %v4525_v60  ;;  %vm1018_vm12 = vcmp.eq.s32.totalorder %v200_v30, %v4525_v60  ;;  %v1417_v5 = vadd.f32 %v1416_v50, %v1415_v37  ;;  %v1453_v59 = vadd.f32 %v1452_v54, %v1451_v53 }
  0xc1   :  { %633 = vbcast.lane.b32.xlu1 %v631_v6, 256  ;;  %584 = vbcast.lane.b32.xlu0 %v582_v7, 256  ;;  %v1421_v48 = vadd.f32 %v3416_v40, %v1420_v56  ;;  %v1457_v61 = vadd.f32 %v3422_v33, %v1456_v55  ;;  %v3427_v57 = vsel %vm1022_vm11, 1.0, %v4191_v39  ;;  %v3423_v62 = vsel %vm1018_vm12, 1.0, %v4191_v39 }
  0xc2   :  { %v1401_v35 = vadd.f32 %v1400_v45, %v1399_v43  ;;  %v1412_v30 = vrot.slane %v1411_v58, 1  ;;  %v834_v50 = vrot.slane %v4584_v29, %v4369_v41  ;;  %v1449_v6 = vadd.f32 %v1448_v0, %v1447_v47 }
  0xc3   :  { %v158_v37 = vpop.permute.xlu1 %157  ;;  %v235_v53 = vpop.permute.xlu0 %234  ;;  %v1454_v54 = vrot.slane %v1453_v59, 1  ;;  %v1486_v28 = vrot.slane %v3427_v57, 4  ;;  %v1462_v27 = vrot.slane %v3423_v62, 4  ;;  %v1395_v7 = vadd.f32 %v1394_v36, %v1393_v31 }
  0xc4   :  { %v1443_v40 = vadd.f32 %v1442_v34, %v1441_v20  ;;  %v1418_v33 = vrot.slane %v1417_v5, 1  ;;  %vm1012_vm14 = vcmp.eq.s32.totalorder %v158_v37, %v4525_v60  ;;  %v1422_v32 = vrot.slane %v1421_v48, 2 }
  0xc5   :  { %591 = vbcast.lane.b32.xlu1 %v589_v9, 256  ;;  %v1458_v46 = vrot.slane %v1457_v61, 2  ;;  %v1487_v43 = vadd.f32 %v3427_v57, %v1486_v28  ;;  %v1463_v45 = vadd.f32 %v3423_v62, %v1462_v27  ;;  %556 = vbcast.lane.b32.xlu0 %v554_v10, 256  ;;  %v2319_v47 = vsel %vm2318_vm8, %v1401_v35, %v1395_v7 }
  0xc6   :  { %v3417_v31 = vsel %vm1012_vm14, 1.0, %v4191_v39  ;;  %vm1023_vm15 = vcmp.eq.s32.totalorder %v235_v53, %v4525_v60  ;;  %v967_v56 = vrot.slane %v4659_v44, %v4277_v2  ;;  %v4729_v9 = vadd.f32 %v1412_v30, %v1411_v58 }
  0xc7   :  { %v242_v20 = vpop.permute.xlu1 %241  ;;  %v207_v36 = vpop.permute.xlu0 %206  ;;  %v2332_v28 = vsel %vm2318_vm8, %v1449_v6, %v1443_v40  ;;  %v1455_v27 = vadd.f32 %v1454_v54, %v1453_v59  ;;  %v1488_v55 = vrot.slane %v1487_v43, 2  ;;  %v1426_v34 = vrot.slane %v3417_v31, 4 }
  0xc8   :  { %v3428_v42 = vsel %vm1023_vm15, 1.0, %v4191_v39  ;;  %vm1024_vm0 = vcmp.eq.s32.totalorder %v242_v20, %v4525_v60  ;;  %vm1019_vm1 = vcmp.eq.s32.totalorder %v207_v36, %v4525_v60  ;;  %v4738_v10 = vadd.f32 %v1418_v33, %v1417_v5 }
  0xc9   :  { %598 = vbcast.lane.b32.xlu1 %v596_v12, 256  ;;  %v1423_v0 = vadd.f32 %v1422_v32, %v1421_v48  ;;  %v1459_v58 = vadd.f32 %v1458_v46, %v1457_v61  ;;  %v1464_v57 = vrot.slane %v1463_v45, 2  ;;  %640 = vbcast.lane.b32.xlu0 %v638_v13, 256  ;;  %v1427_v59 = vadd.f32 %v3417_v31, %v1426_v34 }
  0xca   :  { %v1492_v62 = vrot.slane %v3428_v42, 4  ;;  %v3429_v35 = vsel %vm1024_vm0, 1.0, %v4191_v39  ;;  %v3424_v30 = vsel %vm1019_vm1, 1.0, %v4191_v39  ;;  %v4746_v6 = vsel %vm2320_vm13, %v1455_v27, %v2332_v28 }
  0xcb   :  { %v291_v37 = vpop.permute.xlu1 %290  ;;  %v284_v53 = vpop.permute.xlu0 %283  ;;  %v1489_v12 = vadd.f32 %v1488_v55, %v1487_v43  ;;  %v1498_v5 = vrot.slane %v3429_v35, 4  ;;  %v1468_v48 = vrot.slane %v3424_v30, 4  ;;  %v1428_v61 = vrot.slane %v1427_v59, 2 }
  0xcc   :  { %v1493_v54 = vadd.f32 %v3428_v42, %v1492_v62  ;;  %vm1031_vm2 = vcmp.eq.s32.totalorder %v291_v37, %v4525_v60  ;;  %vm1030_vm3 = vcmp.eq.s32.totalorder %v284_v53, %v4525_v60  ;;  %v1424_v13 = vrot.slane %v1423_v0, 1 }
  0xcd   :  { %675 = vbcast.lane.b32.xlu1 %v673_v15, 256  ;;  %v1499_v7 = vadd.f32 %v3429_v35, %v1498_v5  ;;  %v1469_v40 = vadd.f32 %v3424_v30, %v1468_v48  ;;  %647 = vbcast.lane.b32.xlu0 %v645_v16, 256  ;;  %v4757_v33 = vsel %vm2320_vm13, %v1407_v63, %v2319_v47  ;;  %v3436_v43 = vsel %vm1031_vm2, 1.0, %v4191_v39 }
  0xce   :  { %v1465_v32 = vadd.f32 %v1464_v57, %v1463_v45  ;;  %v1494_v46 = vrot.slane %v1493_v54, 2  ;;  %v3435_v31 = vsel %vm1030_vm3, 1.0, %v4191_v39  ;;  %v1429_v28 = vadd.f32 %v1428_v61, %v1427_v59 }
  0xcf   :  { %v214_v20 = vpop.permute.xlu1 %213  ;;  %v165_v36 = vpop.permute.xlu0 %164  ;;  %v1500_v15 = vrot.slane %v1499_v7, 2  ;;  %v1540_v27 = vrot.slane %v3436_v43, 4  ;;  %v1534_v55 = vrot.slane %v3435_v31, 4  ;;  %v1460_v34 = vrot.slane %v1459_v58, 1 }
  0xd0   :  { %v1490_v42 = vrot.slane %v1489_v12, 1  ;;  %vm1020_vm4 = vcmp.eq.s32.totalorder %v214_v20, %v4525_v60  ;;  %vm1013_vm5 = vcmp.eq.s32.totalorder %v165_v36, %v4525_v60  ;;  %v1495_v16 = vadd.f32 %v1494_v46, %v1493_v54 }
  0xd1   :  { %605 = vbcast.lane.b32.xlu1 %v603_v18, 256  ;;  %v1470_v63 = vrot.slane %v1469_v40, 2  ;;  %v1541_v45 = vadd.f32 %v3436_v43, %v1540_v27  ;;  %v1535_v47 = vadd.f32 %v3435_v31, %v1534_v55  ;;  %682 = vbcast.lane.b32.xlu0 %v680_v19, 256  ;;  %v4769_v57 = vadd.f32 %v1424_v13, %v1423_v0 }
  0xd2   :  { %v1466_v59 = vrot.slane %v1465_v32, 1  ;;  %v3425_v62 = vsel %vm1020_vm4, 1.0, %v4191_v39  ;;  %v3418_v35 = vsel %vm1013_vm5, 1.0, %v4191_v39  ;;  %v1430_v53 = vrot.slane %v1429_v28, 1 }
  0xd3   :  { %v298_v30 = vpop.permute.xlu1 %297  ;;  %v249_v37 = vpop.permute.xlu0 %248  ;;  %v1501_v5 = vadd.f32 %v1500_v15, %v1499_v7  ;;  %v1542_v18 = vrot.slane %v1541_v45, 2  ;;  %v1536_v48 = vrot.slane %v1535_v47, 2  ;;  %v4773_v61 = vadd.f32 %v1460_v34, %v1459_v58 }
  0xd4   :  { %v1474_v54 = vrot.slane %v3425_v62, 4  ;;  %v1432_v46 = vrot.slane %v3418_v35, 4  ;;  %vm1032_vm6 = vcmp.eq.s32.totalorder %v298_v30, %v4525_v60  ;;  %v1491_v19 = vadd.f32 %v1490_v42, %v1489_v12 }
  0xd5   :  { %689 = vbcast.lane.b32.xlu1 %v687_v21, 256  ;;  %v1496_v0 = vrot.slane %v1495_v16, 1  ;;  %v4779_v13 = vadd.f32 %v1470_v63, %v1469_v40  ;;  %v1543_v43 = vadd.f32 %v1542_v18, %v1541_v45  ;;  %654 = vbcast.lane.b32.xlu0 %v652_v22, 256  ;;  %v1537_v7 = vadd.f32 %v1536_v48, %v1535_v47 }
  0xd6   :  { %v1475_v58 = vadd.f32 %v3425_v62, %v1474_v54  ;;  %v1433_v31 = vadd.f32 %v3418_v35, %v1432_v46  ;;  %v3437_v20 = vsel %vm1032_vm6, 1.0, %v4191_v39  ;;  %v4785_v27 = vadd.f32 %v1466_v59, %v1465_v32 }
  0xd7   :  { %v256_v36 = vpop.permute.xlu1 %255  ;;  %v221_v15 = vpop.permute.xlu0 %220  ;;  %v4787_v55 = vadd.f32 %v1430_v53, %v1429_v28  ;;  %v1502_v21 = vrot.slane %v1501_v5, 1  ;;  %v1546_v12 = vrot.slane %v3437_v20, 4  ;;  %vm1025_vm7 = vcmp.eq.s32.totalorder %v249_v37, %v4525_v60 }
  0xd8   :  { %v1476_v40 = vrot.slane %v1475_v58, 2  ;;  %v1434_v34 = vrot.slane %v1433_v31, 2  ;;  %vm1026_vm9 = vcmp.eq.s32.totalorder %v256_v36, %v4525_v60  ;;  %v1497_v22 = vadd.f32 %v1496_v0, %v1495_v16 }
  0xd9   :  { %738 = vbcast.lane.b32.xlu1 %v736_v24, 256  ;;  %v1472_v42 = vrot.slane %v4779_v13, 1  ;;  %v1547_v32 = vadd.f32 %v3437_v20, %v1546_v12  ;;  %v3430_v28 = vsel %vm1025_vm7, 1.0, %v4191_v39  ;;  %731 = vbcast.lane.b32.xlu0 %v729_v25, 256  ;;  %vm2324_vm11 = vcmask 1044484  }
  0xda   :  { %v1544_v63 = vrot.slane %v1543_v43, 1  ;;  %v1538_v45 = vrot.slane %v1537_v7, 1  ;;  %v1504_v47 = vrot.slane %v3430_v28, 4  ;;  %v3431_v59 = vsel %vm1026_vm9, 1.0, %v4191_v39 }
  0xdb   :  { %v263_v62 = vpop.permute.xlu1 %262  ;;  %v305_v35 = vpop.permute.xlu0 %304  ;;  %vm2326_vm12 = vcmask 1045509   ;;  %v1435_v24 = vadd.f32 %v1434_v34, %v1433_v31  ;;  %v1548_v16 = vrot.slane %v1547_v32, 2  ;;  %v1510_v30 = vrot.slane %v3431_v59, 4 }
  0xdc   :  { %vm1021_vm14 = vcmp.eq.s32.totalorder %v221_v15, %v4525_v60  ;;  %vm2328_vm15 = vcmask 1046534   ;;  %v1503_v37 = vadd.f32 %v1502_v21, %v1501_v5  ;;  %v1477_v53 = vadd.f32 %v1476_v40, %v1475_v58 }
  0xdd   :  { %v1505_v18 = vadd.f32 %v3430_v28, %v1504_v47  ;;  %v3426_v25 = vsel %vm1021_vm14, 1.0, %v4191_v39  ;;  %661 = vbcast.lane.b32.xlu1 %v659_v26, 256  ;;  %vm2330_vm0 = vcmask 1047559   ;;  %v1549_v48 = vadd.f32 %v1548_v16, %v1547_v32 }
  0xde   :  { %v1511_v54 = vadd.f32 %v3431_v59, %v1510_v30  ;;  %v1480_v46 = vrot.slane %v3426_v25, 4  ;;  %vm1027_vm1 = vcmp.eq.s32.totalorder %v263_v62, %v4525_v60  ;;  %v5807_v0 = vrot.slane %v4499_v49, %v4369_v41 }
  0xdf   :  { %v1545_v31 = vadd.f32 %v1544_v63, %v1543_v43  ;;  %v1539_v5 = vadd.f32 %v1538_v45, %v1537_v7  ;;  %v3432_v58 = vsel %vm1027_vm1, 1.0, %v4191_v39  ;;  %vm1033_vm2 = vcmp.eq.s32.totalorder %v305_v35, %v4525_v60  ;;  %v340_v20 = vpop.permute.xlu1 %339  ;;  %v312_v36 = vpop.permute.xlu0 %311 }
  0xe0   :  { %612 = vbcast.lane.b32.xlu0 %v5807_v0, 256  ;;  %v1436_v15 = vrot.slane %v1435_v24, 1  ;;  %v1506_v26 = vrot.slane %v1505_v18, 2  ;;  %v1481_v21 = vadd.f32 %v3426_v25, %v1480_v46  ;;  %v1516_v12 = vrot.slane %v3432_v58, 4 }
  0xe1   :  { %v2339_v40 = vsel %vm2318_vm8, %v1497_v22, %v1491_v19  ;;  %v1512_v34 = vrot.slane %v1511_v54, 2  ;;  %v3438_v32 = vsel %vm1033_vm2, 1.0, %v4191_v39  ;;  %vm1038_vm3 = vcmp.eq.s32.totalorder %v340_v20, %v4525_v60 }
  0xe2   :  { %v5808_v49 = vrot.slane %v4549_v8, %v4277_v2  ;;  %v1478_v43 = vrot.slane %v1477_v53, 1  ;;  %v1550_v7 = vrot.slane %v1549_v48, 1  ;;  %v1482_v28 = vrot.slane %v1481_v21, 2 }
  0xe3   :  { %v1517_v63 = vadd.f32 %v3432_v58, %v1516_v12  ;;  %v5809_v45 = vrot.slane %v4536_v1, %v4304_v11  ;;  %v4821_v47 = vsel %vm2320_vm13, %v1503_v37, %v2339_v40  ;;  %v4824_v19 = vadd.f32 %v1472_v42, %v4779_v13  ;;  %v270_v62 = vpop.permute.xlu1 %269  ;;  %v347_v35 = vpop.permute.xlu0 %346 }
  0xe4   :  { %745 = vbcast.lane.b32.xlu1 %v5808_v49, 256  ;;  %v1552_v22 = vrot.slane %v3438_v32, 4  ;;  %v3443_v59 = vsel %vm1038_vm3, 1.0, %v4191_v39  ;;  %v2346_v16 = vsel %vm2318_vm8, %v1545_v31, %v1539_v5  ;;  %v1507_v30 = vadd.f32 %v1506_v26, %v1505_v18 }
  0xe5   :  { %696 = vbcast.lane.b32.xlu0 %v5809_v45, 256  ;;  %v1437_v25 = vadd.f32 %v1436_v15, %v1435_v24  ;;  %v2323_v46 = vsel %vm2322_vm10, %v4729_v9, %v4757_v33  ;;  %v1513_v0 = vadd.f32 %v1512_v34, %v1511_v54  ;;  %v1483_v58 = vadd.f32 %v1482_v28, %v1481_v21 }
  0xe6   :  { %v1582_v37 = vrot.slane %v3443_v59, 4  ;;  %v2325_v13 = vsel %vm2324_vm11, %v4738_v10, %v2323_v46  ;;  %v5810_v42 = vrot.slane %v4536_v1, %v4311_v14  ;;  %v1479_v20 = vadd.f32 %v1478_v43, %v1477_v53 }
  0xe7   :  { %v1551_v12 = vadd.f32 %v1550_v7, %v1549_v48  ;;  %v1518_v40 = vrot.slane %v1517_v63, 2  ;;  %v2327_v24 = vsel %vm2326_vm12, %v4769_v57, %v2325_v13  ;;  %v5811_v18 = vrot.slane %v4508_v52, %v4369_v41  ;;  %v354_v10 = vpop.permute.xlu1 %353  ;;  %v319_v31 = vpop.permute.xlu0 %318 }
  0xe8   :  { %703 = vbcast.lane.b32.xlu1 %v5810_v42, 256  ;;  %v1553_v9 = vadd.f32 %v3438_v32, %v1552_v22  ;;  %v1583_v33 = vadd.f32 %v3443_v59, %v1582_v37  ;;  %v2329_v54 = vsel %vm2328_vm15, %v4787_v55, %v2327_v24  ;;  %vm1034_vm4 = vcmp.eq.s32.totalorder %v312_v36, %v4525_v60 }
  0xe9   :  { %668 = vbcast.lane.b32.xlu0 %v5811_v18, 256  ;;  %v1508_v5 = vrot.slane %v1507_v30, 1  ;;  %v4845_v53 = vsel %vm2330_vm0, %v1437_v25, %v2329_v54  ;;  %v3439_v48 = vsel %vm1034_vm4, 1.0, %v4191_v39  ;;  %vm1028_vm5 = vcmp.eq.s32.totalorder %v270_v62, %v4525_v60 }
  0xea   :  { %v1514_v57 = vrot.slane %v1513_v0, 1  ;;  %v1484_v52 = vrot.slane %v1483_v58, 1  ;;  %3750 = vmatprep.mubr.f32.mxu0 %v4845_v53  ;;  %3806 = vmatprep.mubr.f32.mxu1 %v4845_v53  ;;  %v1558_v15 = vrot.slane %v3439_v48, 4  ;;  %v3433_v55 = vsel %vm1028_vm5, 1.0, %v4191_v39 }
  0xeb   :  { %v1519_v36 = vadd.f32 %v1518_v40, %v1517_v63  ;;  %v1522_v26 = vrot.slane %v3433_v55, 4  ;;  %vm1039_vm6 = vcmp.eq.s32.totalorder %v347_v35, %v4525_v60  ;;  %vm1040_vm7 = vcmp.eq.s32.totalorder %v354_v10, %v4525_v60  ;;  %v403_v28 = vpop.permute.xlu1 %402  ;;  %v396_v63 = vpop.permute.xlu0 %395 }
  0xec   :  { %v5812_v21 = vrot.slane %v4536_v1, %v4318_v17  ;;  %v5813_v34 = vrot.slane %v4549_v8, %v4304_v11  ;;  %v4861_v32 = vsel %vm2320_vm13, %v1551_v12, %v2346_v16  ;;  %v1554_v49 = vrot.slane %v1553_v9, 2 }
  0xed   :  { %v1584_v43 = vrot.slane %v1583_v33, 2  ;;  %v3444_v7 = vsel %vm1039_vm6, 1.0, %v4191_v39  ;;  %v4864_v45 = vadd.f32 %v1508_v5, %v1507_v30  ;;  %v1559_v22 = vadd.f32 %v3439_v48, %v1558_v15 }
  0xee   :  { %710 = vbcast.lane.b32.xlu1 %v5812_v21, 256  ;;  %752 = vbcast.lane.b32.xlu0 %v5813_v34, 256  ;;  %v1588_v59 = vrot.slane %v3444_v7, 4  ;;  %v3445_v62 = vsel %vm1040_vm7, 1.0, %v4191_v39  ;;  %v4867_v35 = vadd.f32 %v1514_v57, %v1513_v0  ;;  %v1523_v25 = vadd.f32 %v3433_v55, %v1522_v26 }
  0xef   :  { %v1594_v46 = vrot.slane %v3445_v62, 4  ;;  %v1485_v37 = vadd.f32 %v1484_v52, %v1483_v58  ;;  %v1520_v13 = vrot.slane %v1519_v36, 1  ;;  %v2334_v42 = vsel %vm2322_vm10, %v4773_v61, %v4746_v6  ;;  %v326_v18 = vpop.permute.xlu1 %325  ;;  %v277_v54 = vpop.permute.xlu0 %276 }
  0xf0   :  { %v1589_v16 = vadd.f32 %v3444_v7, %v1588_v59  ;;  %vm1035_vm9 = vcmp.eq.s32.totalorder %v319_v31, %v4525_v60  ;;  %v5814_v30 = vrot.slane %v4584_v29, %v4280_v3  ;;  %v5815_v12 = vrot.slane %v4549_v8, %v4311_v14 }
  0xf1   :  { %v4879_v0 = vadd.f32 %v1554_v49, %v1553_v9  ;;  %v1585_v40 = vadd.f32 %v1584_v43, %v1583_v33  ;;  %v1595_v58 = vadd.f32 %v3445_v62, %v1594_v46  ;;  %v2335_v24 = vsel %vm2324_vm11, %v4785_v27, %v2334_v42 }
  0xf2   :  { %787 = vbcast.lane.b32.xlu1 %v5814_v30, 256  ;;  %759 = vbcast.lane.b32.xlu0 %v5815_v12, 256  ;;  %v1560_v6 = vrot.slane %v1559_v22, 2  ;;  %v1590_v61 = vrot.slane %v1589_v16, 2  ;;  %v2336_v10 = vsel %vm2326_vm12, %v4824_v19, %v2335_v24  ;;  %v3440_v31 = vsel %vm1035_vm9, 1.0, %v4191_v39 }
  0xf3   :  { %v1524_v5 = vrot.slane %v1523_v25, 2  ;;  %v1596_v48 = vrot.slane %v1595_v58, 2  ;;  %v2337_v57 = vsel %vm2328_vm15, %v1479_v20, %v2336_v10  ;;  %v1564_v9 = vrot.slane %v3440_v31, 4  ;;  %v410_v21 = vpop.permute.xlu1 %409  ;;  %v361_v34 = vpop.permute.xlu0 %360 }
  0xf4   :  { %v1591_v52 = vadd.f32 %v1590_v61, %v1589_v16  ;;  %v4888_v33 = vsel %vm2330_vm0, %v1485_v37, %v2337_v57  ;;  %vm1047_vm14 = vcmp.eq.s32.totalorder %v403_v28, %v4525_v60  ;;  %v5816_v27 = vrot.slane %v4536_v1, %v4334_v23 }
  0xf5   :  { %v5817_v19 = vrot.slane %v4584_v29, %v4283_v4  ;;  %v4897_v15 = vadd.f32 %v1520_v13, %v1519_v36  ;;  %v1586_v55 = vrot.slane %v1585_v40, 1  ;;  %v1597_v26 = vadd.f32 %v1596_v48, %v1595_v58  ;;  %3751 = vmatmul.mubr.f32.vlgmr.msra.gmra.mxu0 %v4888_v33  ;;  %3807 = vmatmul.mubr.f32.vlgmr.msra.gmra.mxu1 %v4888_v33 }
  0xf6   :  { %717 = vbcast.lane.b32.xlu1 %v5816_v27, 256  ;;  %v3452_v20 = vsel %vm1047_vm14, 1.0, %v4191_v39  ;;  %v1556_v49 = vrot.slane %v4879_v0, 1  ;;  %v1561_v43 = vadd.f32 %v1560_v6, %v1559_v22  ;;  %vm1046_vm1 = vcmp.eq.s32.totalorder %v396_v63, %v4525_v60 }
  0xf7   :  { %794 = vbcast.lane.b32.xlu0 %v5817_v19, 256  ;;  %v1636_v7 = vrot.slane %v3452_v20, 4  ;;  %v1525_v28 = vadd.f32 %v1524_v5, %v1523_v25  ;;  %v1565_v59 = vadd.f32 %v3440_v31, %v1564_v9  ;;  %v3451_v36 = vsel %vm1046_vm1, 1.0, %v4191_v39  ;;  %v368_v30 = vpop.permute.xlu1 %367  ;;  %v333_v12 = vpop.permute.xlu0 %332 }
  0xf8   :  { %vm1036_vm2 = vcmp.eq.s32.totalorder %v326_v18, %v4525_v60  ;;  %v1592_v62 = vrot.slane %v1591_v52, 1  ;;  %v1630_v37 = vrot.slane %v3451_v36, 4  ;;  %v5818_v16 = vrot.slane %v4584_v29, %v4277_v2 }
  0xf9   :  { %v1637_v46 = vadd.f32 %v3452_v20, %v1636_v7  ;;  %v3441_v13 = vsel %vm1036_vm2, 1.0, %v4191_v39  ;;  %v5819_v22 = vrot.slane %v4549_v8, %v4318_v17  ;;  %v1587_v63 = vadd.f32 %v1586_v55, %v1585_v40 }
  0xfa   :  { %801 = vbcast.lane.b32.xlu1 %v5818_v16, 256  ;;  %v1598_v25 = vrot.slane %v1597_v26, 1  ;;  %v1570_v42 = vrot.slane %v3441_v13, 4  ;;  %vm1029_vm3 = vcmp.eq.s32.totalorder %v277_v54, %v4525_v60  ;;  %v1562_v58 = vrot.slane %v1561_v43, 1 }
  0xfb   :  { %766 = vbcast.lane.b32.xlu0 %v5819_v22, 256  ;;  %v1638_v24 = vrot.slane %v1637_v46, 2  ;;  %v1631_v18 = vadd.f32 %v3451_v36, %v1630_v37  ;;  %v3434_v6 = vsel %vm1029_vm3, 1.0, %v4191_v39  ;;  %v1526_v61 = vrot.slane %v1525_v28, 1  ;;  %v375_v20 = vpop.permute.xlu1 %374 }
  0xfc   :  { %v1566_v10 = vrot.slane %v1565_v59, 2  ;;  %v1571_v31 = vadd.f32 %v3441_v13, %v1570_v42  ;;  %v1528_v5 = vrot.slane %v3434_v6, 4  ;;  %v1593_v48 = vadd.f32 %v1592_v62, %v1591_v52  ;;  %v417_v52 = vpop.permute.xlu0 %416 }
  0xfd   :  { %v1632_v57 = vrot.slane %v1631_v18, 2  ;;  %vm1048_vm4 = vcmp.eq.s32.totalorder %v410_v21, %v4525_v60  ;;  %vm1041_vm5 = vcmp.eq.s32.totalorder %v361_v34, %v4525_v60  ;;  %v5820_v40 = vrot.slane %v4603_v38, %v4283_v4 }
  0xfe   :  { %v5821_v54 = vrot.slane %v4603_v38, %v4280_v3  ;;  %v1599_v9 = vadd.f32 %v1598_v25, %v1597_v26  ;;  %v1572_v27 = vrot.slane %v1571_v31, 2  ;;  %v1529_v19 = vadd.f32 %v3434_v6, %v1528_v5 }
  0xff   :  { %850 = vbcast.lane.b32.xlu1 %v5820_v40, 256  ;;  %v3453_v55 = vsel %vm1048_vm4, 1.0, %v4191_v39  ;;  %v1639_v7 = vadd.f32 %v1638_v24, %v1637_v46  ;;  %v1633_v36 = vadd.f32 %v1632_v57, %v1631_v18  ;;  %v3446_v34 = vsel %vm1041_vm5, 1.0, %v4191_v39 }
 0x100   :  { %843 = vbcast.lane.b32.xlu0 %v5821_v54, 256  ;;  %v1642_v21 = vrot.slane %v3453_v55, 4  ;;  %v1567_v62 = vadd.f32 %v1566_v10, %v1565_v59  ;;  %v1530_v37 = vrot.slane %v1529_v19, 2  ;;  %v1600_v13 = vrot.slane %v3446_v34, 4 }
 0x101   :  { %vm1042_vm6 = vcmp.eq.s32.totalorder %v368_v30, %v4525_v60  ;;  %v4927_v16 = vadd.f32 %v1556_v49, %v4879_v0  ;;  %v1573_v26 = vadd.f32 %v1572_v27, %v1571_v31  ;;  %v5822_v42 = vrot.slane %v4549_v8, %v4334_v23  ;;  %v452_v0 = vpop.permute.xlu1 %451  ;;  %v424_v49 = vpop.permute.xlu0 %423 }
 0x102   :  { %v1643_v22 = vadd.f32 %v3453_v55, %v1642_v21  ;;  %v3447_v25 = vsel %vm1042_vm6, 1.0, %v4191_v39  ;;  %v5823_v46 = vrot.slane %v4536_v1, %v4369_v41  ;;  %v4936_v59 = vadd.f32 %v1562_v58, %v1561_v43 }
 0x103   :  { %773 = vbcast.lane.b32.xlu1 %v5822_v42, 256  ;;  %v2353_v24 = vsel %vm2318_vm8, %v1593_v48, %v1587_v63  ;;  %v1531_v30 = vadd.f32 %v1530_v37, %v1529_v19  ;;  %v1601_v18 = vadd.f32 %v3446_v34, %v1600_v13  ;;  %v1640_v6 = vrot.slane %v1639_v7, 1 }
 0x104   :  { %724 = vbcast.lane.b32.xlu0 %v5823_v46, 256  ;;  %v1634_v10 = vrot.slane %v1633_v36, 1  ;;  %vm1037_vm7 = vcmp.eq.s32.totalorder %v333_v12, %v4525_v60  ;;  %vm1043_vm9 = vcmp.eq.s32.totalorder %v375_v20, %v4525_v60  ;;  %v1527_v31 = vadd.f32 %v1526_v61, %v1525_v28 }
 0x105   :  { %v4942_v5 = vsel %vm2320_vm13, %v1599_v9, %v2353_v24  ;;  %v1568_v1 = vrot.slane %v1567_v62, 1  ;;  %v1606_v57 = vrot.slane %v3447_v25, 4  ;;  %v1574_v43 = vrot.slane %v1573_v26, 1  ;;  %v382_v27 = vpop.permute.xlu1 %381  ;;  %v459_v19 = vpop.permute.xlu0 %458 }
 0x106   :  { %v1644_v58 = vrot.slane %v1643_v22, 2  ;;  %v3442_v63 = vsel %vm1037_vm7, 1.0, %v4191_v39  ;;  %v3448_v48 = vsel %vm1043_vm9, 1.0, %v4191_v39  ;;  %v5824_v40 = vrot.slane %v4603_v38, %v4277_v2 }
 0x107   :  { %v5825_v12 = vrot.slane %v4584_v29, %v4304_v11  ;;  %v1532_v28 = vrot.slane %v1531_v30, 1  ;;  %v1602_v61 = vrot.slane %v1601_v18, 2  ;;  %v1576_v54 = vrot.slane %v3442_v63, 4 }
 0x108   :  { %857 = vbcast.lane.b32.xlu1 %v5824_v40, 256  ;;  %v1612_v9 = vrot.slane %v3448_v48, 4  ;;  %v1641_v55 = vadd.f32 %v1640_v6, %v1639_v7  ;;  %v1635_v20 = vadd.f32 %v1634_v10, %v1633_v36  ;;  %vm1049_vm14 = vcmp.eq.s32.totalorder %v417_v52, %v4525_v60 }
 0x109   :  { %808 = vbcast.lane.b32.xlu0 %v5825_v12, 256  ;;  %vm1054_vm1 = vcmp.eq.s32.totalorder %v452_v0, %v4525_v60  ;;  %v4954_v21 = vadd.f32 %v1568_v1, %v1567_v62  ;;  %v1607_v34 = vadd.f32 %v3447_v25, %v1606_v57  ;;  %v1577_v37 = vadd.f32 %v3442_v63, %v1576_v54  ;;  %v431_v0 = vpop.permute.xlu0 %430 }
 0x10a   :  { %v1613_v13 = vadd.f32 %v3448_v48, %v1612_v9  ;;  %v4956_v42 = vadd.f32 %v1574_v43, %v1573_v26  ;;  %v1645_v46 = vadd.f32 %v1644_v58, %v1643_v22  ;;  %v3454_v24 = vsel %vm1049_vm14, 1.0, %v4191_v39  ;;  %v466_v22 = vpop.permute.xlu1 %465 }
 0x10b   :  { %v3459_v40 = vsel %vm1054_vm1, 1.0, %v4191_v39  ;;  %v5826_v7 = vrot.slane %v4584_v29, %v4311_v14  ;;  %v5827_v52 = vrot.slane %v4549_v8, %v4369_v41  ;;  %v1603_v36 = vadd.f32 %v1602_v61, %v1601_v18 }
 0x10c   :  { %v1578_v62 = vrot.slane %v1577_v37, 2  ;;  %v1533_v25 = vadd.f32 %v1532_v28, %v1531_v30  ;;  %v2341_v26 = vsel %vm2322_vm10, %v4864_v45, %v4821_v47  ;;  %v4970_v6 = vsel %vm2318_vm8, %v1641_v55, %v1635_v20 }
 0x10d   :  { %815 = vbcast.lane.b32.xlu1 %v5826_v7, 256  ;;  %780 = vbcast.lane.b32.xlu0 %v5827_v52, 256  ;;  %v1648_v10 = vrot.slane %v3454_v24, 4  ;;  %v1678_v1 = vrot.slane %v3459_v40, 4  ;;  %v2342_v57 = vsel %vm2324_vm11, %v4867_v35, %v2341_v26  ;;  %v1608_v43 = vrot.slane %v1607_v34, 2  ;;  %v4988_v54 = vpop.permute.xlu0 %507 }
 0x10e   :  { %v1579_v8 = vadd.f32 %v1578_v62, %v1577_v37  ;;  %v1614_v58 = vrot.slane %v1613_v13, 2  ;;  %v2343_v30 = vsel %vm2326_vm12, %v4897_v15, %v2342_v57  ;;  %vm1050_vm2 = vcmp.eq.s32.totalorder %v424_v49, %v4525_v60  ;;  %v515_v61 = vpop.permute.xlu1 %514 }
 0x10f   :  { %v1649_v18 = vadd.f32 %v3454_v24, %v1648_v10  ;;  %v1679_v63 = vadd.f32 %v3459_v40, %v1678_v1  ;;  %v2344_v47 = vsel %vm2328_vm15, %v1527_v31, %v2343_v30  ;;  %v5828_v45 = vrot.slane %v4584_v29, %v4318_v17 }
 0x110   :  { %v1646_v48 = vrot.slane %v1645_v46, 1  ;;  %v1604_v12 = vrot.slane %v1603_v36, 1  ;;  %v4982_v35 = vsel %vm2330_vm0, %v1533_v25, %v2344_v47  ;;  %v3455_v28 = vsel %vm1050_vm2, 1.0, %v4191_v39 }
 0x111   :  { %822 = vbcast.lane.b32.xlu1 %v5828_v45, 256  ;;  %v5829_v15 = vrot.slane %v4603_v38, %v4304_v11  ;;  %v1580_v31 = vrot.slane %v1579_v8, 1  ;;  %v1650_v49 = vrot.slane %v1649_v18, 2  ;;  %3753 = vmatprep.mubr.f32.mxu0 %v4982_v35  ;;  %v1654_v9 = vrot.slane %v3455_v28, 4 }
 0x112   :  { %3809 = vmatprep.mubr.f32.mxu1 %v4982_v35  ;;  %vm1044_vm3 = vcmp.eq.s32.totalorder %v382_v27, %v4525_v60  ;;  %v1609_v55 = vadd.f32 %v1608_v43, %v1607_v34  ;;  %vm1055_vm4 = vcmp.eq.s32.totalorder %v459_v19, %v4525_v60  ;;  %vm1056_vm5 = vcmp.eq.s32.totalorder %v466_v22, %v4525_v60  ;;  %v438_v26 = vpop.permute.xlu1 %437 }
 0x113   :  { %864 = vbcast.lane.b32.xlu0 %v5829_v15, 256  ;;  %v3449_v20 = vsel %vm1044_vm3, 1.0, %v4191_v39  ;;  %v1615_v37 = vadd.f32 %v1614_v58, %v1613_v13  ;;  %v1680_v24 = vrot.slane %v1679_v63, 2  ;;  %v1655_v40 = vadd.f32 %v3455_v28, %v1654_v9  ;;  %v5006_v13 = vpop.permute.xlu0 %388 }
 0x114   :  { %v1618_v7 = vrot.slane %v3449_v20, 4  ;;  %v5830_v52 = vrot.slane %v4642_v51, %v4280_v3  ;;  %v1647_v62 = vadd.f32 %v1646_v48, %v1645_v46  ;;  %v4999_v25 = vadd.f32 %v1604_v12, %v1603_v36 }
 0x115   :  { %v3460_v27 = vsel %vm1055_vm4, 1.0, %v4191_v39  ;;  %v3461_v34 = vsel %vm1056_vm5, 1.0, %v4191_v39  ;;  %v5831_v19 = vrot.slane %v4603_v38, %v4311_v14  ;;  %v1651_v22 = vadd.f32 %v1650_v49, %v1649_v18 }
 0x116   :  { %899 = vbcast.lane.b32.xlu1 %v5830_v52, 256  ;;  %v1656_v10 = vrot.slane %v1655_v40, 2  ;;  %v1581_v1 = vadd.f32 %v1580_v31, %v1579_v8  ;;  %v2348_v46 = vsel %vm2322_vm10, %v4927_v16, %v4861_v32  ;;  %v1619_v36 = vadd.f32 %v3449_v20, %v1618_v7  ;;  %v522_v12 = vpop.permute.xlu1 %521 }
 0x117   :  { %871 = vbcast.lane.b32.xlu0 %v5831_v19, 256  ;;  %v1684_v57 = vrot.slane %v3460_v27, 4  ;;  %v1690_v43 = vrot.slane %v3461_v34, 4  ;;  %vm1051_vm6 = vcmp.eq.s32.totalorder %v431_v0, %v4525_v60  ;;  %v1610_v58 = vrot.slane %v1609_v55, 1 }
 0x118   :  { %v1616_v30 = vrot.slane %v1615_v37, 1  ;;  %v1681_v47 = vadd.f32 %v1680_v24, %v1679_v63  ;;  %v2349_v45 = vsel %vm2324_vm11, %v4936_v59, %v2348_v46  ;;  %v5832_v18 = vrot.slane %v4584_v29, %v4334_v23  ;;  %v5023_v63 = vpop.permute.xlu0 %472 }
 0x119   :  { %v1685_v8 = vadd.f32 %v3460_v27, %v1684_v57  ;;  %v1691_v48 = vadd.f32 %v3461_v34, %v1690_v43  ;;  %v2350_v32 = vsel %vm2326_vm12, %v4954_v21, %v2349_v45  ;;  %v3456_v16 = vsel %vm1051_vm6, 1.0, %v4191_v39 }
 0x11a   :  { %829 = vbcast.lane.b32.xlu1 %v5832_v18, 256  ;;  %v5833_v0 = vrot.slane %v4642_v51, %v4283_v4  ;;  %v5027_v59 = vsel %vm2320_vm13, %v1647_v62, %v4970_v6  ;;  %v1652_v28 = vrot.slane %v1651_v22, 1  ;;  %v2351_v15 = vsel %vm2328_vm15, %v4956_v42, %v2350_v32 }
 0x11b   :  { %v1660_v31 = vrot.slane %v3456_v16, 4  ;;  %v1657_v49 = vadd.f32 %v1656_v10, %v1655_v40  ;;  %v1620_v21 = vrot.slane %v1619_v36, 2  ;;  %v5032_v9 = vsel %vm2330_vm0, %v1581_v1, %v2351_v15 }
 0x11c   :  { %906 = vbcast.lane.b32.xlu0 %v5833_v0, 256  ;;  %vm1063_vm7 = vcmp.eq.s32.totalorder %v515_v61, %v4525_v60  ;;  %v5035_v20 = vadd.f32 %v1610_v58, %v1609_v55  ;;  %v5037_v24 = vadd.f32 %v1616_v30, %v1615_v37  ;;  %v1686_v7 = vrot.slane %v1685_v8, 2  ;;  %3754 = vmatmul.mubr.f32.gmra.mxu0 %v5032_v9  ;;  %v480_v37 = vpop.permute.xlu1 %479  ;;  %v5050_v62 = vpop.permute.xlu0 %444 }
 0x11d   :  { %3810 = vmatmul.mubr.f32.gmra.mxu1 %v5032_v9  ;;  %v3468_v6 = vsel %vm1063_vm7, 1.0, %v4191_v39  ;;  %v1682_v42 = vrot.slane %v1681_v47, 1  ;;  %v1692_v52 = vrot.slane %v1691_v48, 2  ;;  %vm1062_vm9 = vcmp.eq.s32.totalorder %v4988_v54, %v4525_v60 }
 0x11e   :  { %v1732_v40 = vrot.slane %v3468_v6, 4  ;;  %v5834_v61 = vrot.slane %v4642_v51, %v4277_v2  ;;  %v5835_v55 = vrot.slane %v4603_v38, %v4318_v17  ;;  %v5052_v27 = vadd.f32 %v1652_v28, %v1651_v22 }
 0x11f   :  { %v1661_v34 = vadd.f32 %v3456_v16, %v1660_v31  ;;  %v3467_v19 = vsel %vm1062_vm9, 1.0, %v4191_v39  ;;  %vm1052_vm14 = vcmp.eq.s32.totalorder %v438_v26, %v4525_v60  ;;  %v1658_v10 = vrot.slane %v1657_v49, 1 }
 0x120   :  { %913 = vbcast.lane.b32.xlu1 %v5834_v61, 256  ;;  %878 = vbcast.lane.b32.xlu0 %v5835_v55, 256  ;;  %v1621_v54 = vadd.f32 %v1620_v21, %v1619_v36  ;;  %v1733_v1 = vadd.f32 %v3468_v6, %v1732_v40  ;;  %v1726_v46 = vrot.slane %v3467_v19, 4  ;;  %v1687_v51 = vadd.f32 %v1686_v7, %v1685_v8  ;;  %v487_v45 = vpop.permute.xlu1 %486  ;;  %v529_v18 = vpop.permute.xlu0 %528 }
 0x121   :  { %v3457_v57 = vsel %vm1052_vm14, 1.0, %v4191_v39  ;;  %vm1045_vm1 = vcmp.eq.s32.totalorder %v5006_v13, %v4525_v60  ;;  %vm1064_vm2 = vcmp.eq.s32.totalorder %v522_v12, %v4525_v60  ;;  %v5060_v43 = vadd.f32 %v1682_v42, %v1681_v47 }
 0x122   :  { %v1693_v22 = vadd.f32 %v1692_v52, %v1691_v48  ;;  %v1734_v58 = vrot.slane %v1733_v1, 2  ;;  %v1727_v30 = vadd.f32 %v3467_v19, %v1726_v46  ;;  %v5836_v26 = vrot.slane %v4659_v44, %v4283_v4 }
 0x123   :  { %v5837_v36 = vrot.slane %v4659_v44, %v4280_v3  ;;  %v1662_v8 = vrot.slane %v1661_v34, 2  ;;  %v1666_v32 = vrot.slane %v3457_v57, 4  ;;  %v3450_v13 = vsel %vm1045_vm1, 1.0, %v4191_v39 }
 0x124   :  { %962 = vbcast.lane.b32.xlu1 %v5836_v26, 256  ;;  %v3469_v47 = vsel %vm1064_vm2, 1.0, %v4191_v39  ;;  %v5070_v16 = vadd.f32 %v1658_v10, %v1657_v49  ;;  %v1735_v48 = vadd.f32 %v1734_v58, %v1733_v1  ;;  %v1728_v0 = vrot.slane %v1727_v30, 2  ;;  %v564_v49 = vpop.permute.xlu1 %563  ;;  %v5080_v42 = vpop.permute.xlu0 %535 }
 0x125   :  { %955 = vbcast.lane.b32.xlu0 %v5837_v36, 256  ;;  %v1624_v12 = vrot.slane %v3450_v13, 4  ;;  %v1622_v28 = vrot.slane %v1621_v54, 1  ;;  %v1688_v4 = vrot.slane %v1687_v51, 1  ;;  %v1667_v15 = vadd.f32 %v3457_v57, %v1666_v32 }
 0x126   :  { %v1738_v31 = vrot.slane %v3469_v47, 4  ;;  %v1694_v21 = vrot.slane %v1693_v22, 1  ;;  %v1729_v3 = vadd.f32 %v1728_v0, %v1727_v30  ;;  %vm1057_vm3 = vcmp.eq.s32.totalorder %v5023_v63, %v4525_v60 }
 0x127   :  { %v1625_v7 = vadd.f32 %v3450_v13, %v1624_v12  ;;  %v5838_v6 = vrot.slane %v4603_v38, %v4334_v23  ;;  %v1663_v52 = vadd.f32 %v1662_v8, %v1661_v34  ;;  %v3462_v61 = vsel %vm1057_vm3, 1.0, %v4191_v39 }
 0x128   :  { %v1739_v40 = vadd.f32 %v3469_v47, %v1738_v31  ;;  %vm1058_vm4 = vcmp.eq.s32.totalorder %v480_v37, %v4525_v60  ;;  %v1736_v55 = vrot.slane %v1735_v48, 1  ;;  %v1668_v19 = vrot.slane %v1667_v15, 2  ;;  %v5090_v37 = vpop.permute.xlu1 %493  ;;  %v5092_v58 = vpop.permute.xlu0 %570 }
 0x129   :  { %885 = vbcast.lane.b32.xlu1 %v5838_v6, 256  ;;  %836 = vbcast.lane.b32.xlu0 %v834_v50, 256  ;;  %v1626_v63 = vrot.slane %v1625_v7, 2  ;;  %v1696_v10 = vrot.slane %v3462_v61, 4  ;;  %v1730_v1 = vrot.slane %v1729_v3, 1  ;;  %v3463_v46 = vsel %vm1058_vm4, 1.0, %v4191_v39 }
 0x12a   :  { %v1740_v38 = vrot.slane %v1739_v40, 2  ;;  %vm1053_vm5 = vcmp.eq.s32.totalorder %v5050_v62, %v4525_v60  ;;  %v1623_v29 = vadd.f32 %v1622_v28, %v1621_v54  ;;  %v1689_v50 = vadd.f32 %v1688_v4, %v1687_v51 }
 0x12b   :  { %v1697_v57 = vadd.f32 %v3462_v61, %v1696_v10  ;;  %v1702_v34 = vrot.slane %v3463_v46, 4  ;;  %v1627_v30 = vadd.f32 %v1626_v63, %v1625_v7  ;;  %v3458_v36 = vsel %vm1053_vm5, 1.0, %v4191_v39 }
 0x12c   :  { %v1741_v26 = vadd.f32 %v1740_v38, %v1739_v40  ;;  %vm1059_vm6 = vcmp.eq.s32.totalorder %v487_v45, %v4525_v60  ;;  %v1695_v8 = vadd.f32 %v1694_v21, %v1693_v22  ;;  %v1664_v62 = vrot.slane %v1663_v52, 1  ;;  %v5098_v12 = vpop.permute.xlu1 %577  ;;  %v5100_v28 = vpop.permute.xlu0 %542 }
 0x12d   :  { %969 = vbcast.lane.b32.xlu1 %v967_v56, 256  ;;  %v1737_v54 = vadd.f32 %v1736_v55, %v1735_v48  ;;  %v1669_v51 = vadd.f32 %v1668_v19, %v1667_v15  ;;  %v1731_v32 = vadd.f32 %v1730_v1, %v1729_v3  ;;  %v1698_v13 = vrot.slane %v1697_v57, 2 }
 0x12e   :  { %v1672_v47 = vrot.slane %v3458_v36, 4  ;;  %v3464_v2 = vsel %vm1059_vm6, 1.0, %v4191_v39  ;;  %v1742_v44 = vrot.slane %v1741_v26, 1  ;;  %v1703_v56 = vadd.f32 %v3463_v46, %v1702_v34 }
 0x12f   :  { %v1708_v0 = vrot.slane %v3464_v2, 4  ;;  %vm1065_vm7 = vcmp.eq.s32.totalorder %v529_v18, %v4525_v60  ;;  %v1628_v4 = vrot.slane %v1627_v30, 1  ;;  %vm1070_vm9 = vcmp.eq.s32.totalorder %v564_v49, %v4525_v60 }
 0x130   :  { %v1673_v45 = vadd.f32 %v3458_v36, %v1672_v47  ;;  %v3470_v22 = vsel %vm1065_vm7, 1.0, %v4191_v39  ;;  %v2367_v48 = vsel %vm2318_vm8, %v1689_v50, %v5060_v43  ;;  %v1670_v15 = vrot.slane %v1669_v51, 1  ;;  %v5113_v49 = vpop.permute.xlu1 %626  ;;  %v5115_v63 = vpop.permute.xlu0 %619 }
 0x131   :  { %v1709_v31 = vadd.f32 %v3464_v2, %v1708_v0  ;;  %v1744_v21 = vrot.slane %v3470_v22, 4  ;;  %v5107_v3 = vsel %vm2320_vm13, %v1695_v8, %v2367_v48  ;;  %v1699_v18 = vadd.f32 %v1698_v13, %v1697_v57 }
 0x132   :  { %v1674_v7 = vrot.slane %v1673_v45, 2  ;;  %v3475_v6 = vsel %vm1070_vm9, 1.0, %v4191_v39  ;;  %v5110_v40 = vadd.f32 %v1664_v62, %v1663_v52  ;;  %v2374_v61 = vsel %vm2318_vm8, %v1737_v54, %v1731_v32 }
 0x133   :  { %v1743_v55 = vadd.f32 %v1742_v44, %v1741_v26  ;;  %v1704_v19 = vrot.slane %v1703_v56, 2  ;;  %v1710_v43 = vrot.slane %v1709_v31, 2  ;;  %v1629_v10 = vadd.f32 %v1628_v4, %v1627_v30 }
 0x134   :  { %v2355_v1 = vsel %vm2322_vm10, %v4999_v25, %v4942_v5  ;;  %vm1066_vm14 = vcmp.eq.s32.totalorder %v5080_v42, %v4525_v60  ;;  %v5122_v38 = vadd.f32 %v1670_v15, %v1669_v51  ;;  %v1745_v52 = vadd.f32 %v3470_v22, %v1744_v21  ;;  %v5133_v8 = vpop.permute.xlu1 %549  ;;  %v5135_v62 = vpop.permute.xlu0 %500 }
 0x135   :  { %v1774_v46 = vrot.slane %v3475_v6, 4  ;;  %v2356_v50 = vsel %vm2324_vm11, %v5035_v20, %v2355_v1  ;;  %v1700_v57 = vrot.slane %v1699_v18, 1  ;;  %v1675_v34 = vadd.f32 %v1674_v7, %v1673_v45  ;;  %v4075_v45 = vld [vmem:[%s5796_s0 + $0x68] sm:$0xff] }
 0x136   :  { %v2357_v26 = vsel %vm2326_vm12, %v5037_v24, %v2356_v50  ;;  %v3471_v30 = vsel %vm1066_vm14, 1.0, %v4191_v39  ;;  %v5130_v36 = vsel %vm2320_vm13, %v1743_v55, %v2374_v61  ;;  %v1705_v5 = vadd.f32 %v1704_v19, %v1703_v56  ;;  %v5143_v24 = vld [vmem:[%s5796_s0 + $0x70] sm:$0xff] }
 0x137   :  { %v2358_v25 = vsel %vm2328_vm15, %v1623_v29, %v2357_v26  ;;  %v1750_v42 = vrot.slane %v3471_v30, 4  ;;  %v1711_v54 = vadd.f32 %v1710_v43, %v1709_v31  ;;  %v918_v51 = vrot.slane %v5143_v24, %v4304_v11 }
 0x138   :  { %v5138_v20 = vsel %vm2330_vm0, %v1629_v10, %v2358_v25  ;;  %vm1060_vm1 = vcmp.eq.s32.totalorder %v5090_v37, %v4525_v60  ;;  %v1746_v29 = vrot.slane %v1745_v52, 2  ;;  %v1775_v32 = vadd.f32 %v3475_v6, %v1774_v46  ;;  %v5163_v48 = vpop.permute.xlu1 %633  ;;  %v5165_v15 = vpop.permute.xlu0 %584 }
 0x139   :  { %3756 = vmatprep.mubr.f32.mxu0 %v5138_v20  ;;  %3812 = vmatprep.mubr.f32.mxu1 %v5138_v20  ;;  %v1751_v13 = vadd.f32 %v3471_v30, %v1750_v42  ;;  %v3465_v47 = vsel %vm1060_vm1, 1.0, %v4191_v39  ;;  %v1676_v2 = vrot.slane %v1675_v34, 1  ;;  %vm1071_vm2 = vcmp.eq.s32.totalorder %v5092_v58, %v4525_v60  ;;  %v5195_v30 = vld [vmem:[%s5796_s0 + $0x78] sm:$0xff] }
 0x13a   :  { %920 = vbcast.lane.b32.xlu0 %v918_v51, 256  ;;  %v1714_v44 = vrot.slane %v3465_v47, 4  ;;  %v925_v56 = vrot.slane %v5143_v24, %v4311_v14  ;;  %v5156_v0 = vadd.f32 %v1700_v57, %v1699_v18  ;;  %v1706_v37 = vrot.slane %v1705_v5, 1 }
 0x13b   :  { %v3476_v4 = vsel %vm1071_vm2, 1.0, %v4191_v39  ;;  %v890_v22 = vrot.slane %v4075_v45, %v4369_v41  ;;  %v1712_v31 = vrot.slane %v1711_v54, 1  ;;  %vm1072_vm3 = vcmp.eq.s32.totalorder %v5098_v12, %v4525_v60 }
 0x13c   :  { %v1715_v58 = vadd.f32 %v3465_v47, %v1714_v44  ;;  %v1780_v21 = vrot.slane %v3476_v4, 4  ;;  %927 = vbcast.lane.b32.xlu1 %v925_v56, 256  ;;  %v1747_v18 = vadd.f32 %v1746_v29, %v1745_v52  ;;  %v1776_v7 = vrot.slane %v1775_v32, 2  ;;  %v5181_v52 = vpop.permute.xlu1 %591 }
 0x13d   :  { %v1752_v6 = vrot.slane %v1751_v13, 2  ;;  %v3477_v61 = vsel %vm1072_vm3, 1.0, %v4191_v39  ;;  %v1677_v43 = vadd.f32 %v1676_v2, %v1675_v34  ;;  %v2362_v10 = vsel %vm2322_vm10, %v5052_v27, %v5027_v59  ;;  %v5185_v59 = vpop.permute.xlu0 %556 }
 0x13e   :  { %v1781_v55 = vadd.f32 %v3476_v4, %v1780_v21  ;;  %892 = vbcast.lane.b32.xlu0 %v890_v22, 256  ;;  %v1786_v19 = vrot.slane %v3477_v61, 4  ;;  %v5173_v1 = vadd.f32 %v1706_v37, %v1705_v5  ;;  %v2363_v46 = vsel %vm2324_vm11, %v5070_v16, %v2362_v10 }
 0x13f   :  { %vm1067_vm4 = vcmp.eq.s32.totalorder %v5100_v28, %v4525_v60  ;;  %v932_v12 = vrot.slane %v5143_v24, %v4318_v17  ;;  %v1716_v50 = vrot.slane %v1715_v58, 2  ;;  %v2364_v26 = vsel %vm2326_vm12, %v5110_v40, %v2363_v46 }
 0x140   :  { %v1782_v57 = vrot.slane %v1781_v55, 2  ;;  %v1787_v34 = vadd.f32 %v3477_v61, %v1786_v19  ;;  %v5187_v27 = vadd.f32 %v1712_v31, %v1711_v54  ;;  %v2365_v16 = vsel %vm2328_vm15, %v5122_v38, %v2364_v26  ;;  %v5210_v51 = vpop.permute.xlu1 %598 }
 0x141   :  { %v3472_v28 = vsel %vm1067_vm4, 1.0, %v4191_v39  ;;  %934 = vbcast.lane.b32.xlu1 %v932_v12, 256  ;;  %v974_v5 = vrot.slane %v5195_v30, %v4304_v11  ;;  %v1748_v25 = vrot.slane %v1747_v18, 1  ;;  %v1777_v40 = vadd.f32 %v1776_v7, %v1775_v32  ;;  %v5213_v2 = vpop.permute.xlu0 %640 }
 0x142   :  { %v1753_v42 = vadd.f32 %v1752_v6, %v1751_v13  ;;  %v5200_v54 = vsel %vm2330_vm0, %v1677_v43, %v2365_v16  ;;  %v1756_v38 = vrot.slane %v3472_v28, 4  ;;  %vm1079_vm5 = vcmp.eq.s32.totalorder %v5113_v49, %v4525_v60 }
 0x143   :  { %3757 = vmatmul.mubr.f32.gmra.mxu0 %v5200_v54  ;;  %3813 = vmatmul.mubr.f32.gmra.mxu1 %v5200_v54  ;;  %vm1078_vm6 = vcmp.eq.s32.totalorder %v5115_v63, %v4525_v60  ;;  %v939_v11 = vrot.slane %v5143_v24, %v4334_v23  ;;  %v1717_v29 = vadd.f32 %v1716_v50, %v1715_v58  ;;  %v1788_v13 = vrot.slane %v1787_v34, 2 }
 0x144   :  { %v1783_v32 = vadd.f32 %v1782_v57, %v1781_v55  ;;  %976 = vbcast.lane.b32.xlu0 %v974_v5, 256  ;;  %v3484_v47 = vsel %vm1079_vm5, 1.0, %v4191_v39  ;;  %v1757_v44 = vadd.f32 %v3472_v28, %v1756_v38  ;;  %v3483_v49 = vsel %vm1078_vm6, 1.0, %v4191_v39  ;;  %v5225_v21 = vpop.permute.xlu1 %675  ;;  %v2758_v55 = vld [vmem:[#allocation6 + $0x78] sm:$0xff]  ;;  %v2757_v38 = vld [vmem:[#allocation6 + $0x70] sm:$0xff] }
 0x145   :  { %v1828_v56 = vrot.slane %v3484_v47, 4  ;;  %941 = vbcast.lane.b32.xlu1 %v939_v11, 256  ;;  %v981_v63 = vrot.slane %v5195_v30, %v4311_v14  ;;  %v5218_v37 = vadd.f32 %v1748_v25, %v1747_v18  ;;  %v1778_v4 = vrot.slane %v1777_v40, 1  ;;  %v5227_v18 = vpop.permute.xlu0 %647  ;;  %3830 = vmatprep.subr.mxu0 %v2758_v55 }
 0x146   :  { %v1822_v45 = vrot.slane %v3483_v49, 4  ;;  %vm1068_vm7 = vcmp.eq.s32.totalorder %v5133_v8, %v4525_v60  ;;  %v1754_v22 = vrot.slane %v1753_v42, 1  ;;  %vm1061_vm9 = vcmp.eq.s32.totalorder %v5135_v62, %v4525_v60  ;;  %3831 = vmatpush3.msra.mxu0 %v2758_v55 }
 0x147   :  { %v1829_v31 = vadd.f32 %v3484_v47, %v1828_v56  ;;  %v3473_v58 = vsel %vm1068_vm7, 1.0, %v4191_v39  ;;  %v1784_v7 = vrot.slane %v1783_v32, 1  ;;  %v1789_v6 = vadd.f32 %v1788_v13, %v1787_v34  ;;  %3832 = vmatprep.subr.mxu0 %v2757_v38 }
 0x148   :  { %v1823_v61 = vadd.f32 %v3483_v49, %v1822_v45  ;;  %983 = vbcast.lane.b32.xlu0 %v981_v63, 256  ;;  %v1762_v14 = vrot.slane %v3473_v58, 4  ;;  %v1718_v19 = vrot.slane %v1717_v29, 1  ;;  %v1758_v43 = vrot.slane %v1757_v44, 2  ;;  %v5238_v16 = vpop.permute.xlu1 %605  ;;  %3833 = vmatpush3.msra.mxu0 %v2757_v38 }
 0x149   :  { %v3466_v8 = vsel %vm1061_vm9, 1.0, %v4191_v39  ;;  %v946_v10 = vrot.slane %v5143_v24, %v4369_v41  ;;  %v1779_v46 = vadd.f32 %v1778_v4, %v1777_v40  ;;  %v1830_v62 = vrot.slane %v1829_v31, 2  ;;  %v5241_v40 = vpop.permute.xlu0 %682 }
 0x14a   :  { %v1824_v12 = vrot.slane %v1823_v61, 2  ;;  %v1720_v50 = vrot.slane %v3466_v8, 4  ;;  %v5232_v57 = vadd.f32 %v1754_v22, %v1753_v42  ;;  %v1763_v34 = vadd.f32 %v3473_v58, %v1762_v14 }
 0x14b   :  { %948 = vbcast.lane.b32.xlu1 %v946_v10, 256  ;;  %v988_v26 = vrot.slane %v5195_v30, %v4318_v17  ;;  %vm1080_vm14 = vcmp.eq.s32.totalorder %v5163_v48, %v4525_v60  ;;  %v1785_v28 = vadd.f32 %v1784_v7, %v1783_v32  ;;  %v1790_v24 = vrot.slane %v1789_v6, 1  ;;  %v2756_v17 = vld [vmem:[#allocation6 + $0x68] sm:$0xff]  ;;  %v2755_v10 = vld [vmem:[#allocation6 + $0x60] sm:$0xff] }
 0x14c   :  { %v1721_v5 = vadd.f32 %v3466_v8, %v1720_v50  ;;  %v3485_v25 = vsel %vm1080_vm14, 1.0, %v4191_v39  ;;  %v5243_v42 = vadd.f32 %v1718_v19, %v1717_v29  ;;  %v5245_v11 = vadd.f32 %v1758_v43, %v1757_v44  ;;  %v5252_v44 = vpop.permute.xlu1 %689  ;;  %3834 = vmatprep.subr.mxu0 %v2756_v17 }
 0x14d   :  { %990 = vbcast.lane.b32.xlu0 %v988_v26, 256  ;;  %v1834_v13 = vrot.slane %v3485_v25, 4  ;;  %vm1073_vm1 = vcmp.eq.s32.totalorder %v5165_v15, %v4525_v60  ;;  %v1831_v48 = vadd.f32 %v1830_v62, %v1829_v31  ;;  %v1825_v32 = vadd.f32 %v1824_v12, %v1823_v61  ;;  %v5257_v58 = vpop.permute.xlu0 %654  ;;  %3835 = vmatpush3.msra.mxu0 %v2756_v17  ;;  %v2752_v17 = vld [vmem:[#allocation6 + $0x48] sm:$0xff] }
 0x14e   :  { %v1722_v47 = vrot.slane %v1721_v5, 2  ;;  %v3478_v56 = vsel %vm1073_vm1, 1.0, %v4191_v39  ;;  %v1764_v49 = vrot.slane %v1763_v34, 2  ;;  %v1002_v29 = vrot.slane %v5195_v30, %v4369_v41  ;;  %3836 = vmatprep.subr.mxu0 %v2755_v10 }
 0x14f   :  { %v1835_v63 = vadd.f32 %v3485_v25, %v1834_v13  ;;  %v1792_v4 = vrot.slane %v3478_v56, 4  ;;  %v2381_v45 = vsel %vm2318_vm8, %v1785_v28, %v1779_v46  ;;  %v1791_v15 = vadd.f32 %v1790_v24, %v1789_v6  ;;  %v2754_v46 = vld [vmem:[#allocation6 + $0x58] sm:$0xff]  ;;  %3837 = vmatpush3.msra.mxu0 %v2755_v10 }
 0x150   :  { %v1723_v22 = vadd.f32 %v1722_v47, %v1721_v5  ;;  %v995_v31 = vrot.slane %v5195_v30, %v4334_v23  ;;  %1004 = vbcast.lane.b32.xlu1 %v1002_v29, 256  ;;  %vm1074_vm2 = vcmp.eq.s32.totalorder %v5181_v52, %v4525_v60  ;;  %vm1069_vm3 = vcmp.eq.s32.totalorder %v5185_v59, %v4525_v60  ;;  %v5266_v8 = vpop.permute.xlu1 %738 }
 0x151   :  { %v1836_v7 = vrot.slane %v1835_v63, 2  ;;  %v1793_v61 = vadd.f32 %v3478_v56, %v1792_v4  ;;  %v1760_v41 = vrot.slane %v5245_v11, 1  ;;  %v1832_v14 = vrot.slane %v1831_v48, 1  ;;  %v5274_v59 = vpop.permute.xlu0 %731  ;;  %3838 = vmatprep.subr.mxu0 %v2754_v46 }
 0x152   :  { %v1826_v6 = vrot.slane %v1825_v32, 1  ;;  %997 = vbcast.lane.b32.xlu0 %v995_v31, 256  ;;  %v3479_v55 = vsel %vm1074_vm2, 1.0, %v4191_v39  ;;  %v1765_v23 = vadd.f32 %v1764_v49, %v1763_v34  ;;  %v3474_v43 = vsel %vm1069_vm3, 1.0, %v4191_v39  ;;  %3839 = vmatpush3.msra.mxu0 %v2754_v46 }
 0x153   :  { %v1837_v30 = vadd.f32 %v1836_v7, %v1835_v63  ;;  %v1798_v19 = vrot.slane %v3479_v55, 4  ;;  %v1768_v52 = vrot.slane %v3474_v43, 4  ;;  %vm1075_vm4 = vcmp.eq.s32.totalorder %v5210_v51, %v4525_v60 }
 0x154   :  { %vm1081_vm5 = vcmp.eq.s32.totalorder %v5213_v2, %v4525_v60  ;;  %vm1086_vm6 = vcmp.eq.s32.totalorder %v5225_v21, %v4525_v60  ;;  %v1724_v62 = vrot.slane %v1723_v22, 1  ;;  %v1794_v12 = vrot.slane %v1793_v61, 2  ;;  %v2753_v2 = vld [vmem:[#allocation6 + $0x50] sm:$0xff]  ;;  %v5279_v13 = vpop.permute.xlu1 %661 }
 0x155   :  { %v1799_v50 = vadd.f32 %v3479_v55, %v1798_v19  ;;  %v3480_v34 = vsel %vm1075_vm4, 1.0, %v4191_v39  ;;  %v1769_v26 = vadd.f32 %v3474_v43, %v1768_v52  ;;  %v3486_v24 = vsel %vm1081_vm5, 1.0, %v4191_v39  ;;  %v5281_v4 = vpop.permute.xlu0 %612  ;;  %3840 = vmatprep.subr.mxu0 %v2753_v2 }
 0x156   :  { %v1804_v28 = vrot.slane %v3480_v34, 4  ;;  %v3491_v51 = vsel %vm1086_vm6, 1.0, %v4191_v39  ;;  %v1833_v5 = vadd.f32 %v1832_v14, %v1831_v48  ;;  %v1827_v25 = vadd.f32 %v1826_v6, %v1825_v32  ;;  %3841 = vmatpush3.msra.mxu0 %v2753_v2 }
 0x157   :  { %v1766_v21 = vrot.slane %v1765_v23, 1  ;;  %v1840_v38 = vrot.slane %v3486_v24, 4  ;;  %v1838_v47 = vrot.slane %v1837_v30, 1  ;;  %v1800_v56 = vrot.slane %v1799_v50, 2  ;;  %3842 = vmatprep.subr.mxu0 %v2752_v17 }
 0x158   :  { %v1770_v49 = vrot.slane %v1769_v26, 2  ;;  %v1805_v63 = vadd.f32 %v3480_v34, %v1804_v28  ;;  %v5284_v29 = vsel %vm2320_vm13, %v1791_v15, %v2381_v45  ;;  %v5287_v31 = vadd.f32 %v1760_v41, %v5245_v11  ;;  %v5299_v11 = vpop.permute.xlu1 %745  ;;  %3843 = vmatpush3.msra.mxu0 %v2752_v17  ;;  %v2751_v15 = vld [vmem:[#allocation6 + $0x40] sm:$0xff] }
 0x159   :  { %v5289_v48 = vadd.f32 %v1794_v12, %v1793_v61  ;;  %v1870_v32 = vrot.slane %v3491_v51, 4  ;;  %v1841_v14 = vadd.f32 %v3486_v24, %v1840_v38  ;;  %v1725_v6 = vadd.f32 %v1724_v62, %v1723_v22  ;;  %v2750_v61 = vld [vmem:[#allocation6 + $0x38] sm:$0xff]  ;;  %3844 = vmatprep.subr.mxu0 %v2751_v15 }
 0x15a   :  { %v1806_v7 = vrot.slane %v1805_v63, 2  ;;  %v2369_v55 = vsel %vm2322_vm10, %v5156_v0, %v5107_v3  ;;  %v2388_v19 = vsel %vm2318_vm8, %v1833_v5, %v1827_v25  ;;  %v1771_v43 = vadd.f32 %v1770_v49, %v1769_v26  ;;  %v5307_v0 = vpop.permute.xlu0 %696  ;;  %3845 = vmatpush3.msra.mxu0 %v2751_v15 }
 0x15b   :  { %v2370_v45 = vsel %vm2324_vm11, %v5173_v1, %v2369_v55  ;;  %vm1082_vm7 = vcmp.eq.s32.totalorder %v5227_v18, %v4525_v60  ;;  %v5301_v22 = vadd.f32 %v1766_v21, %v1765_v23  ;;  %v1839_v41 = vadd.f32 %v1838_v47, %v1837_v30  ;;  %3846 = vmatprep.subr.mxu0 %v2750_v61  ;;  %v2747_v47 = vld [vmem:[#allocation6 + $0x20] sm:$0xff] }
 0x15c   :  { %v5303_v10 = vadd.f32 %v1800_v56, %v1799_v50  ;;  %v2371_v3 = vsel %vm2326_vm12, %v5187_v27, %v2370_v45  ;;  %v1796_v1 = vrot.slane %v5289_v48, 1  ;;  %v1871_v46 = vadd.f32 %v3491_v51, %v1870_v32  ;;  %v2749_v27 = vld [vmem:[#allocation6 + $0x30] sm:$0xff]  ;;  %3847 = vmatpush3.msra.mxu0 %v2750_v61 }
 0x15d   :  { %v2372_v18 = vsel %vm2328_vm15, %v5243_v42, %v2371_v3  ;;  %v3487_v52 = vsel %vm1082_vm7, 1.0, %v4191_v39  ;;  %v5313_v23 = vadd.f32 %v1806_v7, %v1805_v63  ;;  %v1842_v30 = vrot.slane %v1841_v14, 2  ;;  %v5326_v42 = vpop.permute.xlu1 %703  ;;  %3848 = vmatprep.subr.mxu0 %v2749_v27 }
 0x15e   :  { %v5316_v62 = vsel %vm2330_vm0, %v1725_v6, %v2372_v18  ;;  %v1846_v12 = vrot.slane %v3487_v52, 4  ;;  %v1772_v50 = vrot.slane %v1771_v43, 1  ;;  %vm1076_vm9 = vcmp.eq.s32.totalorder %v5238_v16, %v4525_v60  ;;  %v5333_v51 = vpop.permute.xlu0 %668  ;;  %v2748_v16 = vld [vmem:[#allocation6 + $0x28] sm:$0xff]  ;;  %3849 = vmatpush3.msra.mxu0 %v2749_v27  ;;  %v2745_v18 = vld [vmem:[#allocation6 + $0x10] sm:$0xff] }
 0x15f   :  { %3759 = vmatprep.mubr.f32.mxu0 %v5316_v62  ;;  %3815 = vmatprep.mubr.f32.mxu1 %v5316_v62  ;;  %vm1087_vm14 = vcmp.eq.s32.totalorder %v5241_v40, %v4525_v60  ;;  %vm1088_vm1 = vcmp.eq.s32.totalorder %v5252_v44, %v4525_v60  ;;  %v5329_v34 = vsel %vm2320_vm13, %v1839_v41, %v2388_v19  ;;  %v1802_v26 = vrot.slane %v5303_v10, 1 }
 0x160   :  { %v1847_v28 = vadd.f32 %v3487_v52, %v1846_v12  ;;  %v3481_v24 = vsel %vm1076_vm9, 1.0, %v4191_v39  ;;  %v1872_v2 = vrot.slane %v1871_v46, 2  ;;  %v3492_v40 = vsel %vm1087_vm14, 1.0, %v4191_v39  ;;  %3850 = vmatprep.subr.mxu0 %v2748_v16 }
 0x161   :  { %v1810_v5 = vrot.slane %v3481_v24, 4  ;;  %v3493_v44 = vsel %vm1088_vm1, 1.0, %v4191_v39  ;;  %v1808_v25 = vrot.slane %v5313_v23, 1  ;;  %v1843_v21 = vadd.f32 %v1842_v30, %v1841_v14  ;;  %v5345_v55 = vpop.permute.xlu1 %710  ;;  %3851 = vmatpush3.msra.mxu0 %v2748_v16 }
 0x162   :  { %v1876_v38 = vrot.slane %v3492_v40, 4  ;;  %v1882_v17 = vrot.slane %v3493_v44, 4  ;;  %v1848_v56 = vrot.slane %v1847_v28, 2  ;;  %v1773_v49 = vadd.f32 %v1772_v50, %v1771_v43  ;;  %v5347_v19 = vpop.permute.xlu0 %752  ;;  %v2746_v43 = vld [vmem:[#allocation6 + $0x18] sm:$0xff]  ;;  %3852 = vmatprep.subr.mxu0 %v2747_v47 }
 0x163   :  { %v2376_v63 = vsel %vm2322_vm10, %v5218_v37, %v5130_v36  ;;  %vm1083_vm2 = vcmp.eq.s32.totalorder %v5257_v58, %v4525_v60  ;;  %v1811_v32 = vadd.f32 %v3481_v24, %v1810_v5  ;;  %v1873_v45 = vadd.f32 %v1872_v2, %v1871_v46  ;;  %3853 = vmatpush3.msra.mxu0 %v2747_v47 }
 0x164   :  { %v1877_v7 = vadd.f32 %v3492_v40, %v1876_v38  ;;  %v1883_v6 = vadd.f32 %v3493_v44, %v1882_v17  ;;  %v2377_v14 = vsel %vm2324_vm11, %v5232_v57, %v2376_v63  ;;  %v3488_v37 = vsel %vm1083_vm2, 1.0, %v4191_v39  ;;  %3854 = vmatprep.subr.mxu0 %v2746_v43  ;;  %v2743_v40 = vld [vmem:[#allocation6] sm:$0xff] }
 0x165   :  { %v2378_v36 = vsel %vm2326_vm12, %v5287_v31, %v2377_v14  ;;  %vm1095_vm3 = vcmp.eq.s32.totalorder %v5266_v8, %v4525_v60  ;;  %v5355_v58 = vadd.f32 %v1796_v1, %v5289_v48  ;;  %v1844_v57 = vrot.slane %v1843_v21, 1  ;;  %v5368_v52 = vpop.permute.xlu1 %787  ;;  %3855 = vmatpush3.msra.mxu0 %v2746_v43 }
 0x166   :  { %v1878_v15 = vrot.slane %v1877_v7, 2  ;;  %v2379_v61 = vsel %vm2328_vm15, %v5301_v22, %v2378_v36  ;;  %v1849_v41 = vadd.f32 %v1848_v56, %v1847_v28  ;;  %v1852_v31 = vrot.slane %v3488_v37, 4  ;;  %v5370_v30 = vpop.permute.xlu0 %759  ;;  %3856 = vmatprep.subr.mxu0 %v2745_v18 }
 0x167   :  { %v5360_v3 = vsel %vm2330_vm0, %v1773_v49, %v2379_v61  ;;  %v3500_v46 = vsel %vm1095_vm3, 1.0, %v4191_v39  ;;  %v5364_v8 = vadd.f32 %v1802_v26, %v5303_v10  ;;  %v1812_v48 = vrot.slane %v1811_v32, 2  ;;  %v2744_v10 = vld [vmem:[#allocation6 + $0x8] sm:$0xff]  ;;  %3857 = vmatpush3.msra.mxu0 %v2745_v18 }
 0x168   :  { %v1884_v1 = vrot.slane %v1883_v6, 2  ;;  %3760 = vmatmul.mubr.f32.gmra.mxu0 %v5360_v3  ;;  %3816 = vmatmul.mubr.f32.gmra.mxu1 %v5360_v3  ;;  %v1924_v22 = vrot.slane %v3500_v46, 4  ;;  %v5373_v12 = vadd.f32 %v1808_v25, %v5313_v23  ;;  %v1874_v27 = vrot.slane %v1873_v45, 1 }
 0x169   :  { %vm1094_vm4 = vcmp.eq.s32.totalorder %v5274_v59, %v4525_v60  ;;  %vm1084_vm5 = vcmp.eq.s32.totalorder %v5279_v13, %v4525_v60  ;;  %v1879_v50 = vadd.f32 %v1878_v15, %v1877_v7  ;;  %v1853_v26 = vadd.f32 %v3488_v37, %v1852_v31  ;;  %v5385_v38 = vpop.permute.xlu1 %717  ;;  %3858 = vmatprep.subr.mxu0 %v2744_v10 }
 0x16a   :  { %v1925_v28 = vadd.f32 %v3500_v46, %v1924_v22  ;;  %v3499_v24 = vsel %vm1094_vm4, 1.0, %v4191_v39  ;;  %v5380_v16 = vadd.f32 %v1844_v57, %v1843_v21  ;;  %v1850_v2 = vrot.slane %v1849_v41, 1  ;;  %v5387_v17 = vpop.permute.xlu0 %794  ;;  %3859 = vmatpush3.msra.mxu0 %v2744_v10 }
 0x16b   :  { %v1918_v23 = vrot.slane %v3499_v24, 4  ;;  %v3489_v5 = vsel %vm1084_vm5, 1.0, %v4191_v39  ;;  %v5383_v59 = vadd.f32 %v1812_v48, %v1811_v32  ;;  %v1885_v44 = vadd.f32 %v1884_v1, %v1883_v6  ;;  %3860 = vmatprep.subr.mxu0 %v2743_v40 }
 0x16c   :  { %v1926_v13 = vrot.slane %v1925_v28, 2  ;;  %v1858_v25 = vrot.slane %v3489_v5, 4  ;;  %v5389_v47 = vadd.f32 %v1874_v27, %v1873_v45  ;;  %vm1077_vm6 = vcmp.eq.s32.totalorder %v5281_v4, %v4525_v60  ;;  %3861 = vmatpush3.msra.mxu0 %v2743_v40 }
 0x16d   :  { %v1919_v21 = vadd.f32 %v3499_v24, %v1918_v23  ;;  %vm1096_vm7 = vcmp.eq.s32.totalorder %v5299_v11, %v4525_v60  ;;  %v1880_v56 = vrot.slane %v1879_v50, 1  ;;  %v1854_v49 = vrot.slane %v1853_v26, 2  ;;  %v5402_v11 = vpop.permute.xlu1 %801 }
 0x16e   :  { %v1859_v63 = vadd.f32 %v3489_v5, %v1858_v25  ;;  %v3482_v32 = vsel %vm1077_vm6, 1.0, %v4191_v39  ;;  %v5396_v7 = vadd.f32 %v1850_v2, %v1849_v41  ;;  %v1927_v6 = vadd.f32 %v1926_v13, %v1925_v28  ;;  %v5404_v37 = vpop.permute.xlu0 %766 }
 0x16f   :  { %v1920_v14 = vrot.slane %v1919_v21, 2  ;;  %v1816_v43 = vrot.slane %v3482_v32, 4  ;;  %v1814_v45 = vrot.slane %v5383_v59, 1  ;;  %v1886_v36 = vrot.slane %v1885_v44, 1 }
 0x170   :  { %v3501_v4 = vsel %vm1096_vm7, 1.0, %v4191_v39  ;;  %vm1089_vm9 = vcmp.eq.s32.totalorder %v5307_v0, %v4525_v60  ;;  %v1860_v15 = vrot.slane %v1859_v63, 2  ;;  %v1881_v31 = vadd.f32 %v1880_v56, %v1879_v50 }
 0x171   :  { %v1921_v57 = vadd.f32 %v1920_v14, %v1919_v21  ;;  %v1817_v61 = vadd.f32 %v3482_v32, %v1816_v43  ;;  %v1930_v41 = vrot.slane %v3501_v4, 4  ;;  %v1855_v46 = vadd.f32 %v1854_v49, %v1853_v26  ;;  %v5414_v50 = vpop.permute.xlu1 %850 }
 0x172   :  { %v3494_v18 = vsel %vm1089_vm9, 1.0, %v4191_v39  ;;  %vm1090_vm14 = vcmp.eq.s32.totalorder %v5326_v42, %v4525_v60  ;;  %v1928_v48 = vrot.slane %v1927_v6, 1  ;;  %v1887_v0 = vadd.f32 %v1886_v36, %v1885_v44  ;;  %v5416_v26 = vpop.permute.xlu0 %843 }
 0x173   :  { %v1818_v1 = vrot.slane %v1817_v61, 2  ;;  %v1931_v22 = vadd.f32 %v3501_v4, %v1930_v41  ;;  %v1888_v27 = vrot.slane %v3494_v18, 4  ;;  %v3495_v10 = vsel %vm1090_vm14, 1.0, %v4191_v39 }
 0x174   :  { %vm1085_vm1 = vcmp.eq.s32.totalorder %v5333_v51, %v4525_v60  ;;  %vm1091_vm2 = vcmp.eq.s32.totalorder %v5345_v55, %v4525_v60  ;;  %v1922_v28 = vrot.slane %v1921_v57, 1  ;;  %v1861_v24 = vadd.f32 %v1860_v15, %v1859_v63 }
 0x175   :  { %v1932_v42 = vrot.slane %v1931_v22, 2  ;;  %v1889_v2 = vadd.f32 %v3494_v18, %v1888_v27  ;;  %v1819_v23 = vadd.f32 %v1818_v1, %v1817_v61  ;;  %v1894_v5 = vrot.slane %v3495_v10, 4  ;;  %v5422_v32 = vpop.permute.xlu1 %773 }
 0x176   :  { %v3490_v40 = vsel %vm1085_vm1, 1.0, %v4191_v39  ;;  %v3496_v44 = vsel %vm1091_vm2, 1.0, %v4191_v39  ;;  %v1856_v13 = vrot.slane %v1855_v46, 1  ;;  %v1929_v25 = vadd.f32 %v1928_v48, %v1927_v6  ;;  %v5424_v63 = vpop.permute.xlu0 %724 }
 0x177   :  { %v1933_v51 = vadd.f32 %v1932_v42, %v1931_v22  ;;  %v1890_v21 = vrot.slane %v1889_v2, 2  ;;  %v1895_v56 = vadd.f32 %v3495_v10, %v1894_v5  ;;  %v1864_v55 = vrot.slane %v3490_v40, 4 }
 0x178   :  { %v1900_v49 = vrot.slane %v3496_v44, 4  ;;  %vm1097_vm3 = vcmp.eq.s32.totalorder %v5347_v19, %v4525_v60  ;;  %v1862_v14 = vrot.slane %v1861_v24, 1  ;;  %vm1102_vm4 = vcmp.eq.s32.totalorder %v5368_v52, %v4525_v60 }
 0x179   :  { %v1934_v43 = vrot.slane %v1933_v51, 1  ;;  %v3502_v36 = vsel %vm1097_vm3, 1.0, %v4191_v39  ;;  %v1923_v6 = vadd.f32 %v1922_v28, %v1921_v57  ;;  %v1820_v4 = vrot.slane %v1819_v23, 1 }
 0x17a   :  { %v1865_v15 = vadd.f32 %v3490_v40, %v1864_v55  ;;  %v1901_v61 = vadd.f32 %v3496_v44, %v1900_v49  ;;  %v1815_v41 = vadd.f32 %v1814_v45, %v5383_v59  ;;  %v2395_v19 = vsel %vm2318_vm8, %v1881_v31, %v5389_v47  ;;  %v5436_v42 = vpop.permute.xlu1 %857 }
 0x17b   :  { %v1936_v18 = vrot.slane %v3502_v36, 4  ;;  %v3507_v48 = vsel %vm1102_vm4, 1.0, %v4191_v39  ;;  %v5434_v1 = vsel %vm2320_vm13, %v1887_v0, %v2395_v19  ;;  %v1891_v22 = vadd.f32 %v1890_v21, %v1889_v2  ;;  %v5439_v31 = vpop.permute.xlu0 %808 }
 0x17c   :  { %v1896_v27 = vrot.slane %v1895_v56, 2  ;;  %v1866_v10 = vrot.slane %v1865_v15, 2  ;;  %v1857_v52 = vadd.f32 %v1856_v13, %v1855_v46  ;;  %v1863_v57 = vadd.f32 %v1862_v14, %v1861_v24 }
 0x17d   :  { %v1935_v28 = vadd.f32 %v1934_v43, %v1933_v51  ;;  %v1966_v5 = vrot.slane %v3507_v48, 4  ;;  %v2402_v59 = vsel %vm2318_vm8, %v1929_v25, %v1923_v6  ;;  %v1902_v40 = vrot.slane %v1901_v61, 2 }
 0x17e   :  { %v1867_v45 = vadd.f32 %v1866_v10, %v1865_v15  ;;  %v1821_v47 = vadd.f32 %v1820_v4, %v1819_v23  ;;  %v1937_v44 = vadd.f32 %v3502_v36, %v1936_v18  ;;  %v2383_v0 = vsel %vm2322_vm10, %v5355_v58, %v5284_v29 }
 0x17f   :  { %vm1098_vm5 = vcmp.eq.s32.totalorder %v5370_v30, %v4525_v60  ;;  %vm1092_vm6 = vcmp.eq.s32.totalorder %v5385_v38, %v4525_v60  ;;  %v1892_v46 = vrot.slane %v1891_v22, 1  ;;  %v1897_v24 = vadd.f32 %v1896_v27, %v1895_v56  ;;  %v5450_v23 = vpop.permute.xlu1 %815  ;;  %v5470_v36 = vpop.permute.xlu0 %780 }
 0x180   :  { %v1967_v2 = vadd.f32 %v3507_v48, %v1966_v5  ;;  %v2384_v13 = vsel %vm2324_vm11, %v5364_v8, %v2383_v0  ;;  %v5453_v25 = vsel %vm2320_vm13, %v1935_v28, %v2402_v59  ;;  %v3503_v58 = vsel %vm1098_vm5, 1.0, %v4191_v39 }
 0x181   :  { %v2385_v29 = vsel %vm2326_vm12, %v5373_v12, %v2384_v13  ;;  %v3497_v30 = vsel %vm1092_vm6, 1.0, %v4191_v39  ;;  %v1868_v51 = vrot.slane %v1867_v45, 1  ;;  %v1903_v38 = vadd.f32 %v1902_v40, %v1901_v61 }
 0x182   :  { %v2386_v21 = vsel %vm2328_vm15, %v1815_v41, %v2385_v29  ;;  %v1942_v56 = vrot.slane %v3503_v58, 4  ;;  %v1938_v55 = vrot.slane %v1937_v44, 2  ;;  %v1906_v49 = vrot.slane %v3497_v30, 4 }
 0x183   :  { %v5461_v8 = vsel %vm2330_vm0, %v1821_v47, %v2386_v21  ;;  %vm1103_vm7 = vcmp.eq.s32.totalorder %v5387_v17, %v4525_v60  ;;  %v1968_v14 = vrot.slane %v1967_v2, 2  ;;  %vm1104_vm9 = vcmp.eq.s32.totalorder %v5402_v11, %v4525_v60  ;;  %v5476_v48 = vpop.permute.xlu1 %822 }
 0x184   :  { %3762 = vmatprep.mubr.f32.mxu0 %v5461_v8  ;;  %3818 = vmatprep.mubr.f32.mxu1 %v5461_v8  ;;  %v1943_v12 = vadd.f32 %v3503_v58, %v1942_v56  ;;  %v3508_v43 = vsel %vm1103_vm7, 1.0, %v4191_v39  ;;  %v1898_v6 = vrot.slane %v1897_v24, 1  ;;  %v1907_v4 = vadd.f32 %v3497_v30, %v1906_v49 }
 0x185   :  { %v1972_v15 = vrot.slane %v3508_v43, 4  ;;  %v3509_v61 = vsel %vm1104_vm9, 1.0, %v4191_v39  ;;  %v1869_v19 = vadd.f32 %v1868_v51, %v1867_v45  ;;  %v2390_v18 = vsel %vm2322_vm10, %v5380_v16, %v5329_v34 }
 0x186   :  { %v1944_v41 = vrot.slane %v1943_v12, 2  ;;  %v1978_v17 = vrot.slane %v3509_v61, 4  ;;  %v1904_v27 = vrot.slane %v1903_v38, 1  ;;  %v1939_v10 = vadd.f32 %v1938_v55, %v1937_v44 }
 0x187   :  { %v1973_v28 = vadd.f32 %v3508_v43, %v1972_v15  ;;  %v2391_v11 = vsel %vm2324_vm11, %v5396_v7, %v2390_v18  ;;  %v1969_v5 = vadd.f32 %v1968_v14, %v1967_v2  ;;  %v1908_v59 = vrot.slane %v1907_v4, 2  ;;  %v5490_v2 = vpop.permute.xlu0 %864 }
 0x188   :  { %v2392_v40 = vsel %vm2326_vm12, %v1857_v52, %v2391_v11  ;;  %vm1099_vm14 = vcmp.eq.s32.totalorder %v5404_v37, %v4525_v60  ;;  %v1945_v45 = vadd.f32 %v1944_v41, %v1943_v12  ;;  %v1979_v47 = vadd.f32 %v3509_v61, %v1978_v17  ;;  %v5503_v58 = vpop.permute.xlu1 %899 }
 0x189   :  { %v2393_v0 = vsel %vm2328_vm15, %v1863_v57, %v2392_v40  ;;  %v3504_v34 = vsel %vm1099_vm14, 1.0, %v4191_v39  ;;  %v5485_v16 = vadd.f32 %v1892_v46, %v1891_v22  ;;  %v1974_v44 = vrot.slane %v1973_v28, 2 }
 0x18a   :  { %v5488_v13 = vsel %vm2330_vm0, %v1869_v19, %v2393_v0  ;;  %v1948_v7 = vrot.slane %v3504_v34, 4  ;;  %v5492_v29 = vadd.f32 %v1898_v6, %v1897_v24  ;;  %v1940_v52 = vrot.slane %v1939_v10, 1 }
 0x18b   :  { %3763 = vmatmul.mubr.f32.gmra.mxu0 %v5488_v13  ;;  %3819 = vmatmul.mubr.f32.gmra.mxu1 %v5488_v13  ;;  %vm1111_vm1 = vcmp.eq.s32.totalorder %v5414_v50, %v4525_v60  ;;  %vm1110_vm2 = vcmp.eq.s32.totalorder %v5416_v26, %v4525_v60  ;;  %v5500_v37 = vadd.f32 %v1904_v27, %v1903_v38  ;;  %v1970_v22 = vrot.slane %v1969_v5, 1 }
 0x18c   :  { %v1909_v57 = vadd.f32 %v1908_v59, %v1907_v4  ;;  %v3516_v46 = vsel %vm1111_vm1, 1.0, %v4191_v39  ;;  %v1946_v24 = vrot.slane %v1945_v45, 1  ;;  %v1980_v30 = vrot.slane %v1979_v47, 2  ;;  %v5513_v4 = vpop.permute.xlu0 %871  ;;  %v5520_v27 = vpop.permute.xlu1 %829 }
 0x18d   :  { %v2020_v51 = vrot.slane %v3516_v46, 4  ;;  %v3515_v21 = vsel %vm1110_vm2, 1.0, %v4191_v39  ;;  %v1975_v56 = vadd.f32 %v1974_v44, %v1973_v28  ;;  %v1949_v55 = vadd.f32 %v3504_v34, %v1948_v7 }
 0x18e   :  { %v2014_v49 = vrot.slane %v3515_v21, 4  ;;  %vm1100_vm3 = vcmp.eq.s32.totalorder %v5422_v32, %v4525_v60  ;;  %v5508_v50 = vadd.f32 %v1940_v52, %v1939_v10  ;;  %vm1093_vm4 = vcmp.eq.s32.totalorder %v5424_v63, %v4525_v60 }
 0x18f   :  { %v2021_v26 = vadd.f32 %v3516_v46, %v2020_v51  ;;  %v3505_v38 = vsel %vm1100_vm3, 1.0, %v4191_v39  ;;  %v1971_v14 = vadd.f32 %v1970_v22, %v1969_v5  ;;  %v1910_v12 = vrot.slane %v1909_v57, 1 }
 0x190   :  { %v2015_v43 = vadd.f32 %v3515_v21, %v2014_v49  ;;  %v1954_v6 = vrot.slane %v3505_v38, 4  ;;  %v1981_v15 = vadd.f32 %v1980_v30, %v1979_v47  ;;  %v3498_v41 = vsel %vm1093_vm4, 1.0, %v4191_v39  ;;  %v5530_v52 = vpop.permute.xlu0 %906 }
 0x191   :  { %v2022_v61 = vrot.slane %v2021_v26, 2  ;;  %vm1112_vm5 = vcmp.eq.s32.totalorder %v5436_v42, %v4525_v60  ;;  %v5518_v32 = vadd.f32 %v1946_v24, %v1945_v45  ;;  %v1976_v17 = vrot.slane %v1975_v56, 1 }
 0x192   :  { %v1950_v19 = vrot.slane %v1949_v55, 2  ;;  %v2016_v18 = vrot.slane %v2015_v43, 2  ;;  %v1955_v63 = vadd.f32 %v3505_v38, %v1954_v6  ;;  %v1912_v10 = vrot.slane %v3498_v41, 4  ;;  %v5535_v21 = vpop.permute.xlu1 %913 }
 0x193   :  { %v3517_v28 = vsel %vm1112_vm5, 1.0, %v4191_v39  ;;  %vm1105_vm6 = vcmp.eq.s32.totalorder %v5439_v31, %v4525_v60  ;;  %v5525_v11 = vadd.f32 %v1910_v12, %v1909_v57  ;;  %v2023_v5 = vadd.f32 %v2022_v61, %v2021_v26 }
 0x194   :  { %v2017_v59 = vadd.f32 %v2016_v18, %v2015_v43  ;;  %v2026_v40 = vrot.slane %v3517_v28, 4  ;;  %v1982_v42 = vrot.slane %v1981_v15, 1  ;;  %v1913_v45 = vadd.f32 %v3498_v41, %v1912_v10 }
 0x195   :  { %v3510_v47 = vsel %vm1105_vm6, 1.0, %v4191_v39  ;;  %vm1106_vm7 = vcmp.eq.s32.totalorder %v5450_v23, %v4525_v60  ;;  %v1977_v0 = vadd.f32 %v1976_v17, %v1975_v56  ;;  %v1951_v34 = vadd.f32 %v1950_v19, %v1949_v55 }
 0x196   :  { %v2027_v44 = vadd.f32 %v3517_v28, %v2026_v40  ;;  %v1984_v7 = vrot.slane %v3510_v47, 4  ;;  %v1956_v22 = vrot.slane %v1955_v63, 2  ;;  %v1914_v31 = vrot.slane %v1913_v45, 2 }
 0x197   :  { %v3511_v57 = vsel %vm1106_vm7, 1.0, %v4191_v39  ;;  %vm1101_vm9 = vcmp.eq.s32.totalorder %v5470_v36, %v4525_v60  ;;  %v2024_v46 = vrot.slane %v2023_v5, 1  ;;  %v2018_v24 = vrot.slane %v2017_v59, 1 }
 0x198   :  { %v2028_v30 = vrot.slane %v2027_v44, 2  ;;  %v1985_v51 = vadd.f32 %v3510_v47, %v1984_v7  ;;  %v1983_v23 = vadd.f32 %v1982_v42, %v1981_v15  ;;  %v1915_v56 = vadd.f32 %v1914_v31, %v1913_v45  ;;  %v5544_v15 = vpop.permute.xlu0 %878 }
 0x199   :  { %v3506_v55 = vsel %vm1101_vm9, 1.0, %v4191_v39  ;;  %vm1107_vm14 = vcmp.eq.s32.totalorder %v5476_v48, %v4525_v60  ;;  %v2409_v49 = vsel %vm2318_vm8, %v1977_v0, %v1971_v14  ;;  %v1952_v26 = vrot.slane %v1951_v34, 1 }
 0x19a   :  { %v2029_v38 = vadd.f32 %v2028_v30, %v2027_v44  ;;  %v1990_v12 = vrot.slane %v3511_v57, 4  ;;  %v1957_v43 = vadd.f32 %v1956_v22, %v1955_v63  ;;  %v1986_v36 = vrot.slane %v1985_v51, 2 }
 0x19b   :  { %v1960_v6 = vrot.slane %v3506_v55, 4  ;;  %v3512_v61 = vsel %vm1107_vm14, 1.0, %v4191_v39  ;;  %v2025_v41 = vadd.f32 %v2024_v46, %v2023_v5  ;;  %v2019_v17 = vadd.f32 %v2018_v24, %v2017_v59  ;;  %v5552_v59 = vpop.permute.xlu1 %962 }
 0x19c   :  { %v1996_v19 = vrot.slane %v3512_v61, 4  ;;  %vm1113_vm1 = vcmp.eq.s32.totalorder %v5490_v2, %v4525_v60  ;;  %v1916_v18 = vrot.slane %v1915_v56, 1  ;;  %vm1118_vm2 = vcmp.eq.s32.totalorder %v5503_v58, %v4525_v60 }
 0x19d   :  { %v1961_v48 = vadd.f32 %v3506_v55, %v1960_v6  ;;  %v3518_v14 = vsel %vm1113_vm1, 1.0, %v4191_v39  ;;  %v5550_v63 = vsel %vm2320_vm13, %v1983_v23, %v2409_v49  ;;  %v2030_v10 = vrot.slane %v2029_v38, 1 }
 0x19e   :  { %v1991_v28 = vadd.f32 %v3511_v57, %v1990_v12  ;;  %v2032_v5 = vrot.slane %v3518_v14, 4  ;;  %v1958_v40 = vrot.slane %v1957_v43, 1  ;;  %v1987_v42 = vadd.f32 %v1986_v36, %v1985_v51 }
 0x19f   :  { %v1962_v2 = vrot.slane %v1961_v48, 2  ;;  %v3523_v45 = vsel %vm1118_vm2, 1.0, %v4191_v39  ;;  %v1953_v47 = vadd.f32 %v1952_v26, %v1951_v34  ;;  %v2416_v0 = vsel %vm2318_vm8, %v2025_v41, %v2019_v17  ;;  %v5563_v34 = vpop.permute.xlu0 %955 }
 0x1a0   :  { %v1997_v44 = vadd.f32 %v3512_v61, %v1996_v19  ;;  %v2033_v7 = vadd.f32 %v3518_v14, %v2032_v5  ;;  %v2062_v58 = vrot.slane %v3523_v45, 4  ;;  %v1917_v31 = vadd.f32 %v1916_v18, %v1915_v56 }
 0x1a1   :  { %v1963_v22 = vadd.f32 %v1962_v2, %v1961_v48  ;;  %v2397_v57 = vsel %vm2322_vm10, %v5485_v16, %v5434_v1  ;;  %v2031_v46 = vadd.f32 %v2030_v10, %v2029_v38  ;;  %v1992_v24 = vrot.slane %v1991_v28, 2  ;;  %v5570_v38 = vpop.permute.xlu1 %885 }
 0x1a2   :  { %v2398_v30 = vsel %vm2324_vm11, %v5492_v29, %v2397_v57  ;;  %vm1114_vm3 = vcmp.eq.s32.totalorder %v5513_v4, %v4525_v60  ;;  %v1959_v51 = vadd.f32 %v1958_v40, %v1957_v43  ;;  %v1988_v23 = vrot.slane %v1987_v42, 1 }
 0x1a3   :  { %v2063_v55 = vadd.f32 %v3523_v45, %v2062_v58  ;;  %v2399_v56 = vsel %vm2326_vm12, %v5500_v37, %v2398_v30  ;;  %v1998_v49 = vrot.slane %v1997_v44, 2  ;;  %v2034_v26 = vrot.slane %v2033_v7, 2  ;;  %v837_v18 = vpop.permute.xlu0 %836 }
 0x1a4   :  { %v2400_v1 = vsel %vm2328_vm15, %v5525_v11, %v2399_v56  ;;  %v3519_v16 = vsel %vm1114_vm3, 1.0, %v4191_v39  ;;  %v1964_v29 = vrot.slane %v1963_v22, 1  ;;  %vm1108_vm4 = vcmp.eq.s32.totalorder %v5520_v27, %v4525_v60 }
 0x1a5   :  { %v5573_v4 = vsel %vm2330_vm0, %v1917_v31, %v2400_v1  ;;  %v2038_v12 = vrot.slane %v3519_v16, 4  ;;  %v5578_v43 = vsel %vm2320_vm13, %v2031_v46, %v2416_v0  ;;  %v1993_v37 = vadd.f32 %v1992_v24, %v1991_v28 }
 0x1a6   :  { %3765 = vmatprep.mubr.f32.mxu0 %v5573_v4  ;;  %3821 = vmatprep.mubr.f32.mxu1 %v5573_v4  ;;  %v3513_v11 = vsel %vm1108_vm4, 1.0, %v4191_v39  ;;  %vm1119_vm5 = vcmp.eq.s32.totalorder %v5530_v52, %v4525_v60  ;;  %v2064_v36 = vrot.slane %v2063_v55, 2  ;;  %v5586_v17 = vadd.f32 %v1988_v23, %v1987_v42  ;;  %v970_v42 = vpop.permute.xlu1 %969 }
 0x1a7   :  { %v2039_v6 = vadd.f32 %v3519_v16, %v2038_v12  ;;  %v2002_v61 = vrot.slane %v3513_v11, 4  ;;  %v3524_v41 = vsel %vm1119_vm5, 1.0, %v4191_v39  ;;  %v1999_v27 = vadd.f32 %v1998_v49, %v1997_v44 }
 0x1a8   :  { %v2068_v19 = vrot.slane %v3524_v41, 4  ;;  %vm1120_vm6 = vcmp.eq.s32.totalorder %v5535_v21, %v4525_v60  ;;  %v2035_v48 = vadd.f32 %v2034_v26, %v2033_v7  ;;  %v1965_v28 = vadd.f32 %v1964_v29, %v1963_v22 }
 0x1a9   :  { %v2040_v14 = vrot.slane %v2039_v6, 2  ;;  %v3525_v10 = vsel %vm1120_vm6, 1.0, %v4191_v39  ;;  %v2404_v40 = vsel %vm2322_vm10, %v5508_v50, %v5453_v25  ;;  %vm1115_vm7 = vcmp.eq.s32.totalorder %v5544_v15, %v4525_v60 }
 0x1aa   :  { %v2069_v5 = vadd.f32 %v3524_v41, %v2068_v19  ;;  %v2074_v52 = vrot.slane %v3525_v10, 4  ;;  %v1994_v2 = vrot.slane %v1993_v37, 1  ;;  %v2065_v45 = vadd.f32 %v2064_v36, %v2063_v55 }
 0x1ab   :  { %v2003_v0 = vadd.f32 %v3513_v11, %v2002_v61  ;;  %v2405_v21 = vsel %vm2324_vm11, %v5518_v32, %v2404_v40  ;;  %v3520_v58 = vsel %vm1115_vm7, 1.0, %v4191_v39  ;;  %v2000_v31 = vrot.slane %v1999_v27, 1 }
 0x1ac   :  { %v2070_v44 = vrot.slane %v2069_v5, 2  ;;  %v2075_v7 = vadd.f32 %v3525_v10, %v2074_v52  ;;  %v2406_v22 = vsel %vm2326_vm12, %v1953_v47, %v2405_v21  ;;  %v2036_v57 = vrot.slane %v2035_v48, 1  ;;  %v921_v32 = vpop.permute.xlu0 %920 }
 0x1ad   :  { %v2407_v25 = vsel %vm2328_vm15, %v1959_v51, %v2406_v22  ;;  %v2044_v50 = vrot.slane %v3520_v58, 4  ;;  %v2041_v46 = vadd.f32 %v2040_v14, %v2039_v6  ;;  %vm1127_vm9 = vcmp.eq.s32.totalorder %v5552_v59, %v4525_v60 }
 0x1ae   :  { %v2076_v15 = vrot.slane %v2075_v7, 2  ;;  %v5602_v24 = vsel %vm2330_vm0, %v1965_v28, %v2407_v25  ;;  %v2066_v30 = vrot.slane %v2065_v45, 1  ;;  %v2004_v23 = vrot.slane %v2003_v0, 2  ;;  %v928_v26 = vpop.permute.xlu1 %927 }
 0x1af   :  { %3766 = vmatmul.mubr.f32.gmra.mxu0 %v5602_v24  ;;  %3822 = vmatmul.mubr.f32.gmra.mxu1 %v5602_v24  ;;  %v2045_v47 = vadd.f32 %v3520_v58, %v2044_v50  ;;  %v3532_v55 = vsel %vm1127_vm9, 1.0, %v4191_v39  ;;  %v2071_v51 = vadd.f32 %v2070_v44, %v2069_v5  ;;  %vm1126_vm14 = vcmp.eq.s32.totalorder %v5563_v34, %v4525_v60 }
 0x1b0   :  { %v2077_v56 = vadd.f32 %v2076_v15, %v2075_v7  ;;  %v2116_v49 = vrot.slane %v3532_v55, 4  ;;  %v5611_v1 = vadd.f32 %v1994_v2, %v1993_v37  ;;  %v3531_v16 = vsel %vm1126_vm14, 1.0, %v4191_v39  ;;  %v893_v14 = vpop.permute.xlu0 %892 }
 0x1b1   :  { %v2046_v59 = vrot.slane %v2045_v47, 2  ;;  %vm1116_vm1 = vcmp.eq.s32.totalorder %v5570_v38, %v4525_v60  ;;  %v5616_v29 = vadd.f32 %v2000_v31, %v1999_v27  ;;  %v2042_v12 = vrot.slane %v2041_v46, 1 }
 0x1b2   :  { %v2117_v11 = vadd.f32 %v3532_v55, %v2116_v49  ;;  %v2110_v36 = vrot.slane %v3531_v16, 4  ;;  %v2005_v6 = vadd.f32 %v2004_v23, %v2003_v0  ;;  %v3521_v61 = vsel %vm1116_vm1, 1.0, %v4191_v39 }
 0x1b3   :  { %vm1109_vm2 = vcmp.eq.s32.totalorder %v837_v18, %v4525_v60  ;;  %vm1128_vm3 = vcmp.eq.s32.totalorder %v970_v42, %v4525_v60  ;;  %v5621_v34 = vadd.f32 %v2036_v57, %v2035_v48  ;;  %v2067_v37 = vadd.f32 %v2066_v30, %v2065_v45  ;;  %v935_v18 = vpop.permute.xlu1 %934 }
 0x1b4   :  { %v2072_v41 = vrot.slane %v2071_v51, 1  ;;  %v2078_v19 = vrot.slane %v2077_v56, 1  ;;  %v2047_v10 = vadd.f32 %v2046_v59, %v2045_v47  ;;  %v2050_v38 = vrot.slane %v3521_v61, 4 }
 0x1b5   :  { %v3514_v27 = vsel %vm1109_vm2, 1.0, %v4191_v39  ;;  %v3533_v28 = vsel %vm1128_vm3, 1.0, %v4191_v39  ;;  %v5625_v5 = vadd.f32 %v2042_v12, %v2041_v46  ;;  %v2118_v52 = vrot.slane %v2117_v11, 2 }
 0x1b6   :  { %v2111_v40 = vadd.f32 %v3531_v16, %v2110_v36  ;;  %v2008_v2 = vrot.slane %v3514_v27, 4  ;;  %v2006_v0 = vrot.slane %v2005_v6, 1  ;;  %v2051_v42 = vadd.f32 %v3521_v61, %v2050_v38  ;;  %v977_v15 = vpop.permute.xlu0 %976 }
 0x1b7   :  { %v2122_v48 = vrot.slane %v3533_v28, 4  ;;  %vm1121_vm4 = vcmp.eq.s32.totalorder %v921_v32, %v4525_v60  ;;  %v2073_v45 = vadd.f32 %v2072_v41, %v2071_v51  ;;  %v2079_v21 = vadd.f32 %v2078_v19, %v2077_v56  ;;  %v942_v56 = vpop.permute.xlu1 %941 }
 0x1b8   :  { %v2009_v44 = vadd.f32 %v3514_v27, %v2008_v2  ;;  %v3526_v7 = vsel %vm1121_vm4, 1.0, %v4191_v39  ;;  %v2048_v22 = vrot.slane %v2047_v10, 1  ;;  %v2052_v58 = vrot.slane %v2051_v42, 2 }
 0x1b9   :  { %v2080_v31 = vrot.slane %v3526_v7, 4  ;;  %vm1122_vm5 = vcmp.eq.s32.totalorder %v928_v26, %v4525_v60  ;;  %v2119_v57 = vadd.f32 %v2118_v52, %v2117_v11  ;;  %v2112_v25 = vrot.slane %v2111_v40, 2 }
 0x1ba   :  { %v2010_v50 = vrot.slane %v2009_v44, 2  ;;  %v3527_v46 = vsel %vm1122_vm5, 1.0, %v4191_v39  ;;  %v2053_v30 = vadd.f32 %v2052_v58, %v2051_v42  ;;  %v2123_v23 = vadd.f32 %v3533_v28, %v2122_v48  ;;  %v984_v27 = vpop.permute.xlu0 %983 }
 0x1bb   :  { %v2081_v47 = vadd.f32 %v3526_v7, %v2080_v31  ;;  %v2086_v32 = vrot.slane %v3527_v46, 4  ;;  %v2007_v55 = vadd.f32 %v2006_v0, %v2005_v6  ;;  %v2423_v51 = vsel %vm2318_vm8, %v2073_v45, %v2067_v37 }
 0x1bc   :  { %vm1117_vm6 = vcmp.eq.s32.totalorder %v893_v14, %v4525_v60  ;;  %vm1123_vm7 = vcmp.eq.s32.totalorder %v935_v18, %v4525_v60  ;;  %v5635_v49 = vsel %vm2320_vm13, %v2079_v21, %v2423_v51  ;;  %v2011_v26 = vadd.f32 %v2010_v50, %v2009_v44 }
 0x1bd   :  { %v2082_v59 = vrot.slane %v2081_v47, 2  ;;  %v2087_v16 = vadd.f32 %v3527_v46, %v2086_v32  ;;  %v5637_v12 = vadd.f32 %v2048_v22, %v2047_v10  ;;  %v2120_v11 = vrot.slane %v2119_v57, 1  ;;  %v949_v48 = vpop.permute.xlu1 %948 }
 0x1be   :  { %v3522_v36 = vsel %vm1117_vm6, 1.0, %v4191_v39  ;;  %v3528_v6 = vsel %vm1123_vm7, 1.0, %v4191_v39  ;;  %v5641_v61 = vadd.f32 %v2112_v25, %v2111_v40  ;;  %v2054_v37 = vrot.slane %v2053_v30, 1 }
 0x1bf   :  { %v2124_v41 = vrot.slane %v2123_v23, 2  ;;  %v2088_v19 = vrot.slane %v2087_v16, 2  ;;  %v2056_v14 = vrot.slane %v3522_v36, 4  ;;  %v2092_v38 = vrot.slane %v3528_v6, 4  ;;  %v991_v51 = vpop.permute.xlu0 %990 }
 0x1c0   :  { %vm1129_vm9 = vcmp.eq.s32.totalorder %v977_v15, %v4525_v60  ;;  %vm1124_vm14 = vcmp.eq.s32.totalorder %v942_v56, %v4525_v60  ;;  %v2012_v28 = vrot.slane %v2011_v26, 1  ;;  %v2083_v10 = vadd.f32 %v2082_v59, %v2081_v47 }
 0x1c1   :  { %v2089_v52 = vadd.f32 %v2088_v19, %v2087_v16  ;;  %v3534_v2 = vsel %vm1129_vm9, 1.0, %v4191_v39  ;;  %v2057_v18 = vadd.f32 %v3522_v36, %v2056_v14  ;;  %v2093_v0 = vadd.f32 %v3528_v6, %v2092_v38 }
 0x1c2   :  { %v2128_v42 = vrot.slane %v3534_v2, 4  ;;  %v3529_v40 = vsel %vm1124_vm14, 1.0, %v4191_v39  ;;  %v5647_v45 = vadd.f32 %v2120_v11, %v2119_v57  ;;  %v2114_v21 = vrot.slane %v5641_v61, 1  ;;  %v1005_v11 = vpop.permute.xlu1 %1004 }
 0x1c3   :  { %v5650_v44 = vadd.f32 %v2124_v41, %v2123_v23  ;;  %v2098_v7 = vrot.slane %v3529_v40, 4  ;;  %v2055_v22 = vadd.f32 %v2054_v37, %v2053_v30  ;;  %v2058_v58 = vrot.slane %v2057_v18, 2 }
 0x1c4   :  { %v2094_v31 = vrot.slane %v2093_v0, 2  ;;  %v2129_v25 = vadd.f32 %v3534_v2, %v2128_v42  ;;  %v2013_v46 = vadd.f32 %v2012_v28, %v2011_v26  ;;  %v2411_v15 = vsel %vm2322_vm10, %v5586_v17, %v5550_v63 }
 0x1c5   :  { %v2099_v50 = vadd.f32 %v3529_v40, %v2098_v7  ;;  %vm1130_vm1 = vcmp.eq.s32.totalorder %v984_v27, %v4525_v60  ;;  %v2084_v47 = vrot.slane %v2083_v10, 1  ;;  %v2090_v57 = vrot.slane %v2089_v52, 1 }
 0x1c6   :  { %v2059_v32 = vadd.f32 %v2058_v58, %v2057_v18  ;;  %v2412_v23 = vsel %vm2324_vm11, %v5611_v1, %v2411_v15  ;;  %v3535_v59 = vsel %vm1130_vm1, 1.0, %v4191_v39  ;;  %vm1125_vm2 = vcmp.eq.s32.totalorder %v949_v48, %v4525_v60 }
 0x1c7   :  { %v2100_v56 = vrot.slane %v2099_v50, 2  ;;  %v2413_v30 = vsel %vm2326_vm12, %v5616_v29, %v2412_v23  ;;  %v2126_v26 = vrot.slane %v5650_v44, 1  ;;  %v2095_v63 = vadd.f32 %v2094_v31, %v2093_v0 }
 0x1c8   :  { %v2130_v17 = vrot.slane %v2129_v25, 2  ;;  %v2414_v16 = vsel %vm2328_vm15, %v2007_v55, %v2413_v30  ;;  %v2134_v1 = vrot.slane %v3535_v59, 4  ;;  %v3530_v37 = vsel %vm1125_vm2, 1.0, %v4191_v39 }
 0x1c9   :  { %v2101_v36 = vadd.f32 %v2100_v56, %v2099_v50  ;;  %v5665_v6 = vsel %vm2330_vm0, %v2013_v46, %v2414_v16  ;;  %v2085_v41 = vadd.f32 %v2084_v47, %v2083_v10  ;;  %v2060_v29 = vrot.slane %v2059_v32, 1  ;;  %v998_v10 = vpop.permute.xlu0 %997 }
 0x1ca   :  { %3768 = vmatprep.mubr.f32.mxu0 %v5665_v6  ;;  %3824 = vmatprep.mubr.f32.mxu1 %v5665_v6  ;;  %v2104_v19 = vrot.slane %v3530_v37, 4  ;;  %vm1131_vm3 = vcmp.eq.s32.totalorder %v991_v51, %v4525_v60  ;;  %v2091_v14 = vadd.f32 %v2090_v57, %v2089_v52  ;;  %v2135_v38 = vadd.f32 %v3535_v59, %v2134_v1 }
 0x1cb   :  { %v3536_v55 = vsel %vm1131_vm3, 1.0, %v4191_v39  ;;  %vm1133_vm4 = vcmp.eq.s32.totalorder %v1005_v11, %v4525_v60  ;;  %v2096_v27 = vrot.slane %v2095_v63, 1  ;;  %v2131_v0 = vadd.f32 %v2130_v17, %v2129_v25 }
 0x1cc   :  { %v2105_v28 = vadd.f32 %v3530_v37, %v2104_v19  ;;  %v2140_v2 = vrot.slane %v3536_v55, 4  ;;  %v3538_v18 = vsel %vm1133_vm4, 1.0, %v4191_v39  ;;  %v2102_v42 = vrot.slane %v2101_v36, 1 }
 0x1cd   :  { %v2136_v40 = vrot.slane %v2135_v38, 2  ;;  %v2152_v48 = vrot.slane %v3538_v18, 4  ;;  %v2061_v31 = vadd.f32 %v2060_v29, %v2059_v32  ;;  %v2418_v52 = vsel %vm2322_vm10, %v5621_v34, %v5578_v43 }
 0x1ce   :  { %v2106_v7 = vrot.slane %v2105_v28, 2  ;;  %v2141_v58 = vadd.f32 %v3536_v55, %v2140_v2  ;;  %v2419_v15 = vsel %vm2324_vm11, %v5625_v5, %v2418_v52  ;;  %vm1132_vm5 = vcmp.eq.s32.totalorder %v998_v10, %v4525_v60  ;;  %v3149_v52 = vld [vmem:[#allocation9 + $0x68] sm:$0xff] }
 0x1cf   :  { %v2137_v50 = vadd.f32 %v2136_v40, %v2135_v38  ;;  %v2153_v46 = vadd.f32 %v3538_v18, %v2152_v48  ;;  %v2420_v25 = vsel %vm2326_vm12, %v5637_v12, %v2419_v15  ;;  %v3537_v23 = vsel %vm1132_vm5, 1.0, %v4191_v39  ;;  %v2954_v40 = vld [vmem:[#allocation8 + $0x10] sm:$0xff]  ;;  %v2953_v48 = vld [vmem:[#allocation8 + $0x8] sm:$0xff] }
 0x1d0   :  { %v2107_v47 = vadd.f32 %v2106_v7, %v2105_v28  ;;  %v2142_v57 = vrot.slane %v2141_v58, 2  ;;  %v2097_v51 = vadd.f32 %v2096_v27, %v2095_v63  ;;  %v2421_v56 = vsel %vm2328_vm15, %v2055_v22, %v2420_v25  ;;  %v2952_v7 = vld [vmem:[#allocation8] sm:$0xff]  ;;  %v3146_v15 = vld [vmem:[#allocation9 + $0x50] sm:$0xff]  ;;  %v3143_v25 = vld [vmem:[#allocation9 + $0x38] sm:$0xff] }
 0x1d1   :  { %v2154_v32 = vrot.slane %v2153_v46, 2  ;;  %v2146_v30 = vrot.slane %v3537_v23, 4  ;;  %v2132_v43 = vrot.slane %v2131_v0, 1  ;;  %v2422_v17 = vsel %vm2330_vm0, %v2061_v31, %v2421_v56  ;;  %v3150_v31 = vld [vmem:[#allocation9 + $0x70] sm:$0xff]  ;;  %v3139_v56 = vld [vmem:[#allocation9 + $0x18] sm:$0xff] }
 0x1d2   :  { %v2108_v34 = vrot.slane %v2107_v47, 1  ;;  %v2143_v59 = vadd.f32 %v2142_v57, %v2141_v58  ;;  %v2103_v5 = vadd.f32 %v2102_v42, %v2101_v36  ;;  %v2138_v16 = vrot.slane %v2137_v50, 1  ;;  %3769 = vmatmul.mubr.f32.gmra.mxu0 %v2422_v17  ;;  %3825 = vmatmul.mubr.f32.gmra.mxu1 %v2422_v17  ;;  %v3151_v58 = vld [vmem:[#allocation9 + $0x78] sm:$0xff]  ;;  %v3144_v57 = vld [vmem:[#allocation9 + $0x40] sm:$0xff] }
 0x1d3   :  { %v2155_v60 = vadd.f32 %v2154_v32, %v2153_v46  ;;  %v2147_v11 = vadd.f32 %v3537_v23, %v2146_v30  ;;  %v2115_v12 = vadd.f32 %v2114_v21, %v5641_v61  ;;  %v2425_v22 = vsel %vm2322_vm10, %v2085_v41, %v5635_v49  ;;  %3942 = vmatprep.subr.mxu0 %v3151_v58  ;;  %v3147_v46 = vld [vmem:[#allocation9 + $0x58] sm:$0xff]  ;;  %v3142_v23 = vld [vmem:[#allocation9 + $0x30] sm:$0xff]  ;;  %v3140_v32 = vld [vmem:[#allocation9 + $0x20] sm:$0xff]  ;;  %v3752_v30 = vpop.f32.mrf.mxu0 }
 0x1d4   :  { %v2144_v63 = vrot.slane %v2143_v59, 1  ;;  %v2109_v1 = vadd.f32 %v2108_v34, %v2107_v47  ;;  %v2127_v37 = vadd.f32 %v2126_v26, %v5650_v44  ;;  %v2426_v19 = vsel %vm2324_vm11, %v2091_v14, %v2425_v22  ;;  %v3145_v47 = vld [vmem:[#allocation9 + $0x48] sm:$0xff] }
 0x1d5   :  { %v2148_v29 = vrot.slane %v2147_v11, 2  ;;  %v2133_v36 = vadd.f32 %v2132_v43, %v2131_v0  ;;  %v2156_v38 = vrot.slane %v2155_v60, 1  ;;  %v2427_v55 = vsel %vm2326_vm12, %v2097_v51, %v2426_v19  ;;  %v3141_v51 = vld [vmem:[#allocation9 + $0x28] sm:$0xff]  ;;  %v2519_v43 = vpop.f32.mrf.mxu0 }
 0x1d6   :  { %v2139_v27 = vadd.f32 %v2138_v16, %v2137_v50  ;;  %v2428_v2 = vsel %vm2328_vm15, %v2103_v5, %v2427_v55  ;;  %v2430_v61 = vsel %vm2318_vm8, %v5647_v45, %v2115_v12  ;;  %v2145_v21 = vadd.f32 %v2144_v63, %v2143_v59  ;;  %v3148_v50 = vld [vmem:[#allocation9 + $0x60] sm:$0xff] }
 0x1d7   :  { %v2149_v28 = vadd.f32 %v2148_v29, %v2147_v11  ;;  %v2429_v18 = vsel %vm2330_vm0, %v2109_v1, %v2428_v2  ;;  %v2431_v49 = vsel %vm2320_vm13, %v2127_v37, %v2430_v61  ;;  %v2157_v26 = vadd.f32 %v2156_v38, %v2155_v60  ;;  %v3808_v29 = vpop.f32.mrf.mxu1 }
 0x1d8   :  { %3771 = vmatprep.mubr.f32.mxu0 %v2429_v18  ;;  %3827 = vmatprep.mubr.f32.mxu1 %v2429_v18  ;;  %v2432_v41 = vsel %vm2322_vm10, %v2133_v36, %v2431_v49  ;;  %vm4192_vm8 = vmmov 0  }
 0x1d9   :  { %v2150_v44 = vrot.slane %v2149_v28, 1  ;;  %v2433_v10 = vsel %vm2324_vm11, %v2139_v27, %v2432_v41  ;;  %v2664_v38 = vpop.f32.mrf.mxu1 }
 0x1da   :  { %v2434_v0 = vsel %vm2326_vm12, %v2145_v21, %v2433_v10 }
 0x1db   :  { %v2151_v14 = vadd.f32 %v2150_v44, %v2149_v28 }
 0x1dc   :  { %v5717_v34 = vpop.f32.mrf.mxu0 }
 0x1dd   :  { %v2435_v42 = vsel %vm2328_vm15, %v2151_v14, %v2434_v0  ;;  %v3811_v28 = vpop.f32.mrf.mxu1 }
 0x1de   :  { %v2436_v45 = vsel %vm2330_vm0, %v2157_v26, %v2435_v42  ;;  %v2529_v59 = vpop.f32.mrf.mxu0 }
 0x1df   :  { %3772 = vmatmul.mubr.f32.gmra.mxu0 %v2436_v45  ;;  %3828 = vmatmul.mubr.f32.gmra.mxu1 %v2436_v45  ;;  %v2674_v49 = vpop.f32.mrf.mxu1 }
 0x1e0   :  { %3862 = vmatprep.mubr.f32.mxu0 %v4845_v53  ;;  %v2967_v53 = vld [vmem:[#allocation8 + $0x78] sm:$0xff] }
 0x1e1   :  { %3886 = vmatprep.subr.mxu1 %v2967_v53 }
 0x1e2   :  { %3887 = vmatpush3.msra.mxu1 %v2967_v53 }
 0x1e3   :  { %3863 = vmatmul.mubr.f32.vlgmr.msra.gmra.mxu0 %v4888_v33  ;;  %v2966_v33 = vld [vmem:[#allocation8 + $0x70] sm:$0xff] }
 0x1e4   :  { %3865 = vmatprep.mubr.f32.mxu0 %v4982_v35  ;;  %v2965_v35 = vld [vmem:[#allocation8 + $0x68] sm:$0xff]  ;;  %3888 = vmatprep.subr.mxu1 %v2966_v33 }
 0x1e5   :  { %3889 = vmatpush3.msra.mxu1 %v2966_v33  ;;  %3943 = vmatpush3.msra.mxu0 %v3151_v58 }
 0x1e6   :  { %3890 = vmatprep.subr.mxu1 %v2965_v35  ;;  %3944 = vmatprep.subr.mxu0 %v3150_v31 }
 0x1e7   :  { %3866 = vmatmul.mubr.f32.gmra.mxu0 %v5032_v9  ;;  %v2964_v9 = vld [vmem:[#allocation8 + $0x60] sm:$0xff]  ;;  %3891 = vmatpush3.msra.mxu1 %v2965_v35 }
 0x1e8   :  { %3868 = vmatprep.mubr.f32.mxu0 %v5138_v20  ;;  %3892 = vmatprep.subr.mxu1 %v2964_v9  ;;  %v2963_v20 = vld [vmem:[#allocation8 + $0x58] sm:$0xff] }
 0x1e9   :  { %3893 = vmatpush3.msra.mxu1 %v2964_v9  ;;  %3945 = vmatpush3.msra.mxu0 %v3150_v31 }
 0x1ea   :  { %3894 = vmatprep.subr.mxu1 %v2963_v20  ;;  %3946 = vmatprep.subr.mxu0 %v3149_v52 }
 0x1eb   :  { %3869 = vmatmul.mubr.f32.gmra.mxu0 %v5200_v54  ;;  %3895 = vmatpush3.msra.mxu1 %v2963_v20  ;;  %v2962_v54 = vld [vmem:[#allocation8 + $0x50] sm:$0xff] }
 0x1ec   :  { %3871 = vmatprep.mubr.f32.mxu0 %v5316_v62  ;;  %3896 = vmatprep.subr.mxu1 %v2962_v54  ;;  %v2961_v62 = vld [vmem:[#allocation8 + $0x48] sm:$0xff] }
 0x1ed   :  { %3897 = vmatpush3.msra.mxu1 %v2962_v54  ;;  %3947 = vmatpush3.msra.mxu0 %v3149_v52 }
 0x1ee   :  { %3898 = vmatprep.subr.mxu1 %v2961_v62  ;;  %3948 = vmatprep.subr.mxu0 %v3148_v50 }
 0x1ef   :  { %3872 = vmatmul.mubr.f32.gmra.mxu0 %v5360_v3  ;;  %3899 = vmatpush3.msra.mxu1 %v2961_v62  ;;  %v2960_v3 = vld [vmem:[#allocation8 + $0x40] sm:$0xff] }
 0x1f0   :  { %3874 = vmatprep.mubr.f32.mxu0 %v5461_v8  ;;  %3900 = vmatprep.subr.mxu1 %v2960_v3  ;;  %v2959_v8 = vld [vmem:[#allocation8 + $0x38] sm:$0xff] }
 0x1f1   :  { %3901 = vmatpush3.msra.mxu1 %v2960_v3  ;;  %3949 = vmatpush3.msra.mxu0 %v3148_v50  ;;  %v2665_v3 = vadd.f32 %v2664_v38, %v2519_v43  ;;  %v2675_v50 = vadd.f32 %v2674_v49, %v2529_v59 }
 0x1f2   :  { %3902 = vmatprep.subr.mxu1 %v2959_v8  ;;  %3950 = vmatprep.subr.mxu0 %v3147_v46 }
 0x1f3   :  { %3875 = vmatmul.mubr.f32.gmra.mxu0 %v5488_v13  ;;  %3903 = vmatpush3.msra.mxu1 %v2959_v8  ;;  %v2958_v13 = vld [vmem:[#allocation8 + $0x30] sm:$0xff] }
 0x1f4   :  { %3877 = vmatprep.mubr.f32.mxu0 %v5573_v4  ;;  %3904 = vmatprep.subr.mxu1 %v2958_v13  ;;  %v2957_v4 = vld [vmem:[#allocation8 + $0x28] sm:$0xff] }
 0x1f5   :  { %3905 = vmatpush3.msra.mxu1 %v2958_v13  ;;  %3951 = vmatpush3.msra.mxu0 %v3147_v46 }
 0x1f6   :  { %3906 = vmatprep.subr.mxu1 %v2957_v4  ;;  %3952 = vmatprep.subr.mxu0 %v3146_v15 }
 0x1f7   :  { %3878 = vmatmul.mubr.f32.gmra.mxu0 %v5602_v24  ;;  %3907 = vmatpush3.msra.mxu1 %v2957_v4  ;;  %v2956_v24 = vld [vmem:[#allocation8 + $0x20] sm:$0xff]  ;;  %v2670_v4 = vadd.f32 %v3808_v29, %v3752_v30 }
 0x1f8   :  { %3880 = vmatprep.mubr.f32.mxu0 %v5665_v6  ;;  %3908 = vmatprep.subr.mxu1 %v2956_v24  ;;  %v2955_v6 = vld [vmem:[#allocation8 + $0x18] sm:$0xff] }
 0x1f9   :  { %3909 = vmatpush3.msra.mxu1 %v2956_v24  ;;  %3953 = vmatpush3.msra.mxu0 %v3146_v15 }
 0x1fa   :  { %3910 = vmatprep.subr.mxu1 %v2955_v6  ;;  %3954 = vmatprep.subr.mxu0 %v3145_v47 }
 0x1fb   :  { %3881 = vmatmul.mubr.f32.gmra.mxu0 %v2422_v17  ;;  %3911 = vmatpush3.msra.mxu1 %v2955_v6 }
 0x1fc   :  { %3883 = vmatprep.mubr.f32.mxu0 %v2429_v18  ;;  %3912 = vmatprep.subr.mxu1 %v2954_v40 }
 0x1fd   :  { %3913 = vmatpush3.msra.mxu1 %v2954_v40  ;;  %3955 = vmatpush3.msra.mxu0 %v3145_v47  ;;  %v2680_v47 = vadd.f32 %v3811_v28, %v5717_v34 }
 0x1fe   :  { %3914 = vmatprep.subr.mxu1 %v2953_v48  ;;  %3956 = vmatprep.subr.mxu0 %v3144_v57 }
 0x1ff   :  { %3884 = vmatmul.mubr.f32.gmra.mxu0 %v2436_v45  ;;  %3915 = vmatpush3.msra.mxu1 %v2953_v48 }
 0x200   :  { %3916 = vmatprep.subr.mxu1 %v2952_v7  ;;  %3957 = vmatpush3.msra.mxu0 %v3144_v57 }
 0x201   :  { %3917 = vmatpush3.msra.mxu1 %v2952_v7  ;;  %3958 = vmatprep.subr.mxu0 %v3143_v25 }
 0x202   :  { %3998 = vmatprep.subr.mxu1 %v4191_v39  ;;  %3959 = vmatpush3.msra.mxu0 %v3143_v25 }
 0x203   :  { %3960 = vmatprep.subr.mxu0 %v3142_v23  ;;  %v5719_v17 = vpop.f32.mrf.mxu0  ;;  %v3814_v41 = vpop.f32.mrf.mxu1 }
 0x204   :  { %3961 = vmatpush3.msra.mxu0 %v3142_v23  ;;  %v2690_v38 = vadd.f32 %v3814_v41, %v5719_v17 }
 0x205   :  { %3962 = vmatprep.subr.mxu0 %v3141_v51  ;;  %v5721_v5 = vpop.f32.mrf.mxu0  ;;  %v2684_v45 = vpop.f32.mrf.mxu1 }
 0x206   :  { %3963 = vmatpush3.msra.mxu0 %v3141_v51  ;;  %v2685_v43 = vadd.f32 %v2684_v45, %v5721_v5 }
 0x207   :  { %3964 = vmatprep.subr.mxu0 %v3140_v32 }
 0x208   :  { %3965 = vmatpush3.msra.mxu0 %v3140_v32 }
 0x209   :  { %3966 = vmatprep.subr.mxu0 %v3139_v56 }
 0x20a   :  { %3967 = vmatpush3.msra.mxu0 %v3139_v56 }
 0x228   :  { %v5723_v16 = vpop.f32.mrf.mxu0  ;;  %v3817_v35 = vpop.f32.mrf.mxu1 }
 0x22a   :  { %v5725_v60 = vpop.f32.mrf.mxu0  ;;  %v2694_v24 = vpop.f32.mrf.mxu1 }
 0x24b   :  { %v5727_v11 = vpop.f32.mrf.mxu0  ;;  %v3820_v7 = vpop.f32.mrf.mxu1 }
 0x24d   :  { %v5729_v12 = vpop.f32.mrf.mxu0  ;;  %v2704_v51 = vpop.f32.mrf.mxu1 }
 0x24e   :  { %v2705_v45 = vadd.f32 %v2704_v51, %v5729_v12 }
 0x26f   :  { %v5731_v63 = vpop.f32.mrf.mxu0 }
 0x271   :  { %v5733_v1 = vpop.f32.mrf.mxu0 }
 0x292   :  { %v5735_v22 = vpop.f32.mrf.mxu0 }
 0x294   :  { %v5737_v37 = vpop.f32.mrf.mxu0 }
 0x29f   :  { %v5739_v19 = vpop.f32.mrf.mxu0 }
 0x2a1   :  { %v5741_v36 = vpop.f32.mrf.mxu0 }
 0x2a3   :  { %v3864_v55 = vpop.f32.mrf.mxu0 }
 0x2a4   :  { %v2905_v27 = vmax.f32 %v3864_v55, 1.0  ;;  %v3823_v55 = vpop.f32.mrf.mxu1 }
 0x2a5   :  { %v2825_v2 = vpop.f32.mrf.mxu0 }
 0x2a6   :  { %v2904_v61 = vmax.f32 %v2825_v2, 1.0  ;;  %4042 = vrcp.f32 %v2905_v27 }
 0x2a7   :  { %v3867_v21 = vpop.f32.mrf.mxu0 }
 0x2a8   :  { %4044 = vrcp.f32 %v2904_v61  ;;  %v2907_v18 = vmax.f32 %v3867_v21, 1.0 }
 0x2a9   :  { %v2835_v44 = vpop.f32.mrf.mxu0 }
 0x2aa   :  { %v2906_v26 = vmax.f32 %v2835_v44, 1.0  ;;  %4046 = vrcp.f32 %v2907_v18  ;;  %v2695_v18 = vadd.f32 %v2694_v24, %v5725_v60  ;;  %v2700_v44 = vadd.f32 %v3817_v35, %v5723_v16 }
 0x2ab   :  { %v3870_v14 = vpop.f32.mrf.mxu0 }
 0x2ac   :  { %4048 = vrcp.f32 %v2906_v26  ;;  %v2909_v10 = vmax.f32 %v3870_v14, 1.0  ;;  %v2714_v26 = vpop.f32.mrf.mxu1 }
 0x2ad   :  { %v2845_v0 = vpop.f32.mrf.mxu0 }
 0x2ae   :  { %v2908_v42 = vmax.f32 %v2845_v0, 1.0  ;;  %4050 = vrcp.f32 %v2909_v10  ;;  %v3826_v10 = vpop.f32.mrf.mxu1 }
 0x2af   :  { %v3873_v53 = vpop.f32.mrf.mxu0  ;;  %v2730_v24 = vadd.f32 %v3826_v10, %v5735_v22  ;;  %v3137_v22 = vld [vmem:[#allocation9 + $0x8] sm:$0xff] }
 0x2b0   :  { %4052 = vrcp.f32 %v2908_v42  ;;  %v2911_v33 = vmax.f32 %v3873_v53, 1.0  ;;  %v2710_v53 = vadd.f32 %v3820_v7, %v5727_v11 }
 0x2b1   :  { %v2855_v9 = vpop.f32.mrf.mxu0 }
 0x2b2   :  { %v2910_v20 = vmax.f32 %v2855_v9, 1.0  ;;  %4054 = vrcp.f32 %v2911_v33  ;;  %v2724_v9 = vpop.f32.mrf.mxu1 }
 0x2b3   :  { %v3876_v54 = vpop.f32.mrf.mxu0  ;;  %v4043_v62 = vpop.eup %4042 }
 0x2b4   :  { %4056 = vrcp.f32 %v2910_v20  ;;  %v2913_v8 = vmax.f32 %v3876_v54, 1.0  ;;  %v2923_v31 = vmul.f32 %v4043_v62, %v2670_v4  ;;  %v2715_v20 = vadd.f32 %v2714_v26, %v5733_v1 }
 0x2b5   :  { %v4045_v13 = vpop.eup %4044  ;;  %v2865_v6 = vpop.f32.mrf.mxu0  ;;  %v2720_v62 = vadd.f32 %v3823_v55, %v5731_v63  ;;  %v2725_v4 = vadd.f32 %v2724_v9, %v5737_v37  ;;  %v3138_v37 = vld [vmem:[#allocation9 + $0x10] sm:$0xff] }
 0x2b6   :  { %v2912_v40 = vmax.f32 %v2865_v6, 1.0  ;;  %v2921_v48 = vmul.f32 %v4045_v13, %v2665_v3  ;;  %4058 = vrcp.f32 %v2913_v8  ;;  %v3829_v3 = vpop.f32.mrf.mxu1  ;;  %3968 = vmatprep.subr.mxu0 %v3138_v37 }
 0x2b7   :  { %v3879_v58 = vpop.f32.mrf.mxu0  ;;  %v4047_v52 = vpop.eup %4046  ;;  %3969 = vmatpush3.msra.mxu0 %v3138_v37 }
 0x2b8   :  { %4060 = vrcp.f32 %v2912_v40  ;;  %v2915_v46 = vmax.f32 %v3879_v58, 1.0  ;;  %3918 = vmatprep.mubr.f32.mxu1 %v2921_v48  ;;  %v2927_v56 = vmul.f32 %v4047_v52, %v2680_v47  ;;  %v2734_v6 = vpop.f32.mrf.mxu1  ;;  %v2740_v58 = vadd.f32 %v3829_v3, %v5739_v19  ;;  %3970 = vmatprep.subr.mxu0 %v3137_v22 }
 0x2b9   :  { %v4049_v15 = vpop.eup %4048  ;;  %v2875_v57 = vpop.f32.mrf.mxu0  ;;  %3919 = vmatmul.mubr.f32.vlgmr.msra.gmra.mxu1 %v2923_v31  ;;  %v2735_v7 = vadd.f32 %v2734_v6, %v5741_v36  ;;  %3971 = vmatpush3.msra.mxu0 %v3137_v22  ;;  %v3539_v36 = vld [vmem:[%s5801_s5] ss:$0 sm:$0xff] }
 0x2ba   :  { %v2914_v25 = vmax.f32 %v2875_v57, 1.0  ;;  %v2925_v23 = vmul.f32 %v4049_v15, %v2675_v50  ;;  %4062 = vrcp.f32 %v2915_v46  ;;  %v3136_v50 = vld [vmem:[#allocation9] sm:$0xff] }
 0x2bb   :  { %v3882_v32 = vpop.f32.mrf.mxu0  ;;  %v4051_v30 = vpop.eup %4050  ;;  %3972 = vmatprep.subr.mxu0 %v3136_v50 }
 0x2bc   :  { %4064 = vrcp.f32 %v2914_v25  ;;  %v2917_v29 = vmax.f32 %v3882_v32, 1.0  ;;  %3921 = vmatprep.mubr.f32.mxu1 %v2925_v23  ;;  %v2931_v61 = vmul.f32 %v4051_v30, %v2690_v38  ;;  %3973 = vmatpush3.msra.mxu0 %v3136_v50 }
 0x2bd   :  { %v4053_v59 = vpop.eup %4052  ;;  %v2885_v27 = vpop.f32.mrf.mxu0  ;;  %3922 = vmatmul.mubr.f32.gmra.mxu1 %v2927_v56 }
 0x2be   :  { %v2916_v34 = vmax.f32 %v2885_v27, 1.0  ;;  %v2929_v28 = vmul.f32 %v4053_v59, %v2685_v43  ;;  %4066 = vrcp.f32 %v2917_v29 }
 0x2bf   :  { %v3885_v2 = vpop.f32.mrf.mxu0  ;;  %v4055_v21 = vpop.eup %4054 }
 0x2c0   :  { %4068 = vrcp.f32 %v2916_v34  ;;  %v2919_v49 = vmax.f32 %v3885_v2, 1.0  ;;  %3924 = vmatprep.mubr.f32.mxu1 %v2929_v28  ;;  %v2935_v0 = vmul.f32 %v4055_v21, %v2700_v44 }
 0x2c1   :  { %v4057_v5 = vpop.eup %4056  ;;  %v2895_v14 = vpop.f32.mrf.mxu0  ;;  %3925 = vmatmul.mubr.f32.gmra.mxu1 %v2931_v61 }
 0x2c2   :  { %v2918_v17 = vmax.f32 %v2895_v14, 1.0  ;;  %v2933_v41 = vmul.f32 %v4057_v5, %v2695_v18  ;;  %4070 = vrcp.f32 %v2919_v49 }
 0x2c3   :  { %v4059_v42 = vpop.eup %4058 }
 0x2c4   :  { %4072 = vrcp.f32 %v2918_v17  ;;  %3927 = vmatprep.mubr.f32.mxu1 %v2933_v41  ;;  %v2939_v16 = vmul.f32 %v4059_v42, %v2710_v53 }
 0x2c5   :  { %v4061_v60 = vpop.eup %4060  ;;  %3928 = vmatmul.mubr.f32.gmra.mxu1 %v2935_v0 }
 0x2c6   :  { %v2937_v33 = vmul.f32 %v4061_v60, %v2705_v45 }
 0x2c7   :  { %v4063_v35 = vpop.eup %4062 }
 0x2c8   :  { %3930 = vmatprep.mubr.f32.mxu1 %v2937_v33  ;;  %v2943_v12 = vmul.f32 %v4063_v35, %v2720_v62 }
 0x2c9   :  { %v4065_v54 = vpop.eup %4064  ;;  %3931 = vmatmul.mubr.f32.gmra.mxu1 %v2939_v16 }
 0x2ca   :  { %v2941_v8 = vmul.f32 %v4065_v54, %v2715_v20 }
 0x2cb   :  { %v4067_v13 = vpop.eup %4066 }
 0x2cc   :  { %3933 = vmatprep.mubr.f32.mxu1 %v2941_v8  ;;  %v2947_v48 = vmul.f32 %v4067_v13, %v2730_v24 }
 0x2cd   :  { %v4069_v11 = vpop.eup %4068  ;;  %3934 = vmatmul.mubr.f32.gmra.mxu1 %v2943_v12 }
 0x2ce   :  { %v2945_v40 = vmul.f32 %v4069_v11, %v2725_v4 }
 0x2cf   :  { %v4071_v1 = vpop.eup %4070 }
 0x2d0   :  { %3936 = vmatprep.mubr.f32.mxu1 %v2945_v40  ;;  %v2951_v52 = vmul.f32 %v4071_v1, %v2740_v58 }
 0x2d1   :  { %v4073_v63 = vpop.eup %4072  ;;  %3937 = vmatmul.mubr.f32.gmra.mxu1 %v2947_v48 }
 0x2d2   :  { %v2949_v31 = vmul.f32 %v4073_v63, %v2735_v7 }
 0x2d4   :  { %3939 = vmatprep.mubr.f32.mxu1 %v2949_v31 }
 0x2d5   :  { %3940 = vmatmul.mubr.f32.gmra.mxu1 %v2951_v52 }
 0x2d6   :  { %4030 = vmatprep.mubr.msk.f32.mxu1 %vm4192_vm8, %v4191_v39 }
 0x379   :  { %v3920_v46 = vpop.f32.mrf.mxu1 }
 0x37a   :  { %v3047_v19 = vadd.f32 %v3920_v46, %v3539_v36 }
 0x37b   :  { %v3041_v15 = vpop.f32.mrf.mxu1 }
 0x37c   :  { %v3042_v47 = vadd.f32 %v3539_v36, %v3041_v15  ;;  %v3121_v23 = vmax.f32 %v3047_v19, 0.0 }
 0x37d   :  { %v3923_v57 = vpop.f32.mrf.mxu1 }
 0x37e   :  { %v3120_v25 = vmax.f32 %v3042_v47, 0.0  ;;  %v3057_v51 = vadd.f32 %v3923_v57, %v3539_v36 }
 0x37f   :  { %v3051_v32 = vpop.f32.mrf.mxu1 }
 0x380   :  { %v3052_v56 = vadd.f32 %v3539_v36, %v3051_v32  ;;  %3974 = vmatprep.mubr.f32.mxu0 %v3120_v25  ;;  %v3123_v29 = vmax.f32 %v3057_v51, 0.0 }
 0x381   :  { %v3926_v30 = vpop.f32.mrf.mxu1  ;;  %3975 = vmatmul.mubr.f32.vlgmr.msra.gmra.mxu0 %v3121_v23 }
 0x382   :  { %v3122_v43 = vmax.f32 %v3052_v56, 0.0  ;;  %v3067_v59 = vadd.f32 %v3926_v30, %v3539_v36 }
 0x383   :  { %v3061_v38 = vpop.f32.mrf.mxu1 }
 0x384   :  { %v3062_v55 = vadd.f32 %v3539_v36, %v3061_v38  ;;  %3977 = vmatprep.mubr.f32.mxu0 %v3122_v43  ;;  %v3125_v28 = vmax.f32 %v3067_v59, 0.0 }
 0x385   :  { %v3929_v27 = vpop.f32.mrf.mxu1  ;;  %3978 = vmatmul.mubr.f32.gmra.mxu0 %v3123_v29 }
 0x386   :  { %v3124_v34 = vmax.f32 %v3062_v55, 0.0  ;;  %v3077_v2 = vadd.f32 %v3929_v27, %v3539_v36 }
 0x387   :  { %v3071_v61 = vpop.f32.mrf.mxu1 }
 0x388   :  { %v3072_v21 = vadd.f32 %v3539_v36, %v3071_v61  ;;  %3980 = vmatprep.mubr.f32.mxu0 %v3124_v34  ;;  %v3127_v5 = vmax.f32 %v3077_v2, 0.0 }
 0x389   :  { %v3932_v18 = vpop.f32.mrf.mxu1  ;;  %3981 = vmatmul.mubr.f32.gmra.mxu0 %v3125_v28 }
 0x38a   :  { %v3126_v49 = vmax.f32 %v3072_v21, 0.0  ;;  %v3087_v44 = vadd.f32 %v3932_v18, %v3539_v36 }
 0x38b   :  { %v3081_v26 = vpop.f32.mrf.mxu1 }
 0x38c   :  { %v3082_v14 = vadd.f32 %v3539_v36, %v3081_v26  ;;  %3983 = vmatprep.mubr.f32.mxu0 %v3126_v49  ;;  %v3129_v10 = vmax.f32 %v3087_v44, 0.0 }
 0x38d   :  { %v3935_v17 = vpop.f32.mrf.mxu1  ;;  %3984 = vmatmul.mubr.f32.gmra.mxu0 %v3127_v5 }
 0x38e   :  { %v3128_v41 = vmax.f32 %v3082_v14, 0.0  ;;  %v3097_v0 = vadd.f32 %v3935_v17, %v3539_v36 }
 0x38f   :  { %v3091_v42 = vpop.f32.mrf.mxu1 }
 0x390   :  { %v3092_v45 = vadd.f32 %v3539_v36, %v3091_v42  ;;  %3986 = vmatprep.mubr.f32.mxu0 %v3128_v41  ;;  %v3131_v33 = vmax.f32 %v3097_v0, 0.0 }
 0x391   :  { %v3938_v60 = vpop.f32.mrf.mxu1  ;;  %3987 = vmatmul.mubr.f32.gmra.mxu0 %v3129_v10 }
 0x392   :  { %v3130_v53 = vmax.f32 %v3092_v45, 0.0  ;;  %v3107_v9 = vadd.f32 %v3938_v60, %v3539_v36  ;;  %v3320_v60 = vld [vmem:[%s5804_s8] sm:$0xff] }
 0x393   :  { %v3101_v16 = vpop.f32.mrf.mxu1 }
 0x394   :  { %v3102_v35 = vadd.f32 %v3539_v36, %v3101_v16  ;;  %3989 = vmatprep.mubr.f32.mxu0 %v3130_v53  ;;  %v3133_v62 = vmax.f32 %v3107_v9, 0.0  ;;  %v3322_v53 = vstv %s5805_s9 }
 0x395   :  { %v3941_v20 = vpop.f32.mrf.mxu1  ;;  %3990 = vmatmul.mubr.f32.gmra.mxu0 %v3131_v33 }
 0x396   :  { %v3132_v54 = vmax.f32 %v3102_v35, 0.0  ;;  %v3117_v3 = vadd.f32 %v3941_v20, %v3539_v36 }
 0x397   :  { %v3111_v8 = vpop.f32.mrf.mxu1 }
 0x398   :  { %v3112_v12 = vadd.f32 %v3539_v36, %v3111_v8  ;;  %3992 = vmatprep.mubr.f32.mxu0 %v3132_v54  ;;  %v3135_v4 = vmax.f32 %v3117_v3, 0.0  ;;  %v3540_v36 = vld [vmem:[%s5803_s7] ss:$0 sm:$0xff] }
 0x399   :  { %3993 = vmatmul.mubr.f32.gmra.mxu0 %v3133_v62 }
 0x39a   :  { %v3134_v13 = vmax.f32 %v3112_v12, 0.0 }
 0x39c   :  { %3995 = vmatprep.mubr.f32.mxu0 %v3134_v13 }
 0x39d   :  { %3996 = vmatmul.mubr.f32.gmra.mxu0 %v3135_v4 }
 0x441   :  { %v5760_v11 = vpop.f32.mrf.mxu0 }
 0x442   :  { %v3231_v41 = vadd.f32 %v5760_v11, %v3540_v36 }
 0x443   :  { %v5762_v24 = vpop.f32.mrf.mxu0 }
 0x444   :  { %v3305_v0 = vmax.f32 %v3231_v41, 0.0  ;;  %v3226_v42 = vadd.f32 %v3540_v36, %v5762_v24 }
 0x445   :  { %v3979_v6 = vpop.f32.mrf.mxu0 }
 0x446   :  { %v3241_v44 = vadd.f32 %v3979_v6, %v3540_v36  ;;  %v3304_v45 = vmax.f32 %v3226_v42, 0.0 }
 0x447   :  { %v5764_v40 = vpop.f32.mrf.mxu0 }
 0x448   :  { %v3307_v14 = vmax.f32 %v3241_v44, 0.0  ;;  %v3236_v17 = vadd.f32 %v3540_v36, %v5764_v40 }
 0x449   :  { %v3982_v48 = vpop.f32.mrf.mxu0 }
 0x44a   :  { %v3251_v21 = vadd.f32 %v3982_v48, %v3540_v36  ;;  %v3306_v10 = vmax.f32 %v3236_v17, 0.0 }
 0x44b   :  { %v3245_v1 = vpop.f32.mrf.mxu0 }
 0x44c   :  { %v3309_v49 = vmax.f32 %v3251_v21, 0.0  ;;  %v3246_v5 = vadd.f32 %v3540_v36, %v3245_v1 }
 0x44d   :  { %v3985_v7 = vpop.f32.mrf.mxu0 }
 0x44e   :  { %v3261_v34 = vadd.f32 %v3985_v7, %v3540_v36  ;;  %v3308_v26 = vmax.f32 %v3246_v5, 0.0 }
 0x44f   :  { %v3255_v63 = vpop.f32.mrf.mxu0 }
 0x450   :  { %v3311_v2 = vmax.f32 %v3261_v34, 0.0  ;;  %v3256_v61 = vadd.f32 %v3540_v36, %v3255_v63 }
 0x451   :  { %v3988_v58 = vpop.f32.mrf.mxu0 }
 0x452   :  { %v3271_v59 = vadd.f32 %v3988_v58, %v3540_v36  ;;  %v3310_v18 = vmax.f32 %v3256_v61, 0.0 }
 0x453   :  { %v3265_v31 = vpop.f32.mrf.mxu0 }
 0x454   :  { %v3313_v55 = vmax.f32 %v3271_v59, 0.0  ;;  %v3266_v27 = vadd.f32 %v3540_v36, %v3265_v31 }
 0x455   :  { %v3991_v52 = vpop.f32.mrf.mxu0 }
 0x456   :  { %v3281_v56 = vadd.f32 %v3991_v52, %v3540_v36  ;;  %v3312_v28 = vmax.f32 %v3266_v27, 0.0 }
 0x457   :  { %v3275_v37 = vpop.f32.mrf.mxu0 }
 0x458   :  { %v3315_v43 = vmax.f32 %v3281_v56, 0.0  ;;  %v3276_v29 = vadd.f32 %v3540_v36, %v3275_v37 }
 0x459   :  { %v3994_v22 = vpop.f32.mrf.mxu0 }
 0x45a   :  { %v3291_v25 = vadd.f32 %v3994_v22, %v3540_v36  ;;  %v3314_v38 = vmax.f32 %v3276_v29, 0.0 }
 0x45b   :  { %v3285_v50 = vpop.f32.mrf.mxu0 }
 0x45c   :  { %v3317_v51 = vmax.f32 %v3291_v25, 0.0  ;;  %v3286_v32 = vadd.f32 %v3540_v36, %v3285_v50 }
 0x45d   :  { %v3997_v46 = vpop.f32.mrf.mxu0 }
 0x45e   :  { %v3301_v19 = vadd.f32 %v3997_v46, %v3540_v36  ;;  %v3316_v30 = vmax.f32 %v3286_v32, 0.0 }
 0x45f   :  { %v3295_v15 = vpop.f32.mrf.mxu0 }
 0x460   :  { %v3319_v47 = vmax.f32 %v3301_v19, 0.0  ;;  %v3296_v57 = vadd.f32 %v3540_v36, %v3295_v15 }
 0x462   :  { %3999 = vmatpush3.xpose.msra.mxu1 %v3319_v47  ;;  %v3318_v23 = vmax.f32 %v3296_v57, 0.0 }
 0x463   :  { %4000 = vmatprep.subr.mxu1 %v4191_v39 }
 0x466   :  { %4001 = vmatpush3.xpose.msra.mxu1 %v3318_v23 }
 0x467   :  { %4002 = vmatprep.subr.mxu1 %v4191_v39 }
 0x46a   :  { %4003 = vmatpush3.xpose.msra.mxu1 %v3317_v51 }
 0x46b   :  { %4004 = vmatprep.subr.mxu1 %v4191_v39 }
 0x46e   :  { %4005 = vmatpush3.xpose.msra.mxu1 %v3316_v30 }
 0x46f   :  { %4006 = vmatprep.subr.mxu1 %v4191_v39 }
 0x472   :  { %4007 = vmatpush3.xpose.msra.mxu1 %v3315_v43 }
 0x473   :  { %4008 = vmatprep.subr.mxu1 %v4191_v39 }
 0x476   :  { %4009 = vmatpush3.xpose.msra.mxu1 %v3314_v38 }
 0x477   :  { %4010 = vmatprep.subr.mxu1 %v4191_v39 }
 0x47a   :  { %4011 = vmatpush3.xpose.msra.mxu1 %v3313_v55 }
 0x47b   :  { %4012 = vmatprep.subr.mxu1 %v4191_v39 }
 0x47e   :  { %4013 = vmatpush3.xpose.msra.mxu1 %v3312_v28 }
 0x47f   :  { %4014 = vmatprep.subr.mxu1 %v4191_v39 }
 0x482   :  { %4015 = vmatpush3.xpose.msra.mxu1 %v3311_v2 }
 0x483   :  { %4016 = vmatprep.subr.mxu1 %v4191_v39 }
 0x486   :  { %4017 = vmatpush3.xpose.msra.mxu1 %v3310_v18 }
 0x487   :  { %4018 = vmatprep.subr.mxu1 %v4191_v39 }
 0x48a   :  { %4019 = vmatpush3.xpose.msra.mxu1 %v3309_v49 }
 0x48b   :  { %4020 = vmatprep.subr.mxu1 %v4191_v39 }
 0x48e   :  { %4021 = vmatpush3.xpose.msra.mxu1 %v3308_v26 }
 0x48f   :  { %4022 = vmatprep.subr.mxu1 %v4191_v39 }
 0x492   :  { %4023 = vmatpush3.xpose.msra.mxu1 %v3307_v14 }
 0x493   :  { %4024 = vmatprep.subr.mxu1 %v4191_v39 }
 0x496   :  { %4025 = vmatpush3.xpose.msra.mxu1 %v3306_v10 }
 0x497   :  { %4026 = vmatprep.subr.mxu1 %v4191_v39 }
 0x49a   :  { %4027 = vmatpush3.xpose.msra.mxu1 %v3305_v0 }
 0x49b   :  { %4028 = vmatprep.subr.mxu1 %v4191_v39 }
 0x49e   :  { %4029 = vmatpush3.xpose.msra.mxu1 %v3304_v45 }
 0x4a1   :  { %4031 = vmatmul.mubr.f32.vlgmr.msra.gmra.mxu1 %v3320_v60 }
 0x561   :  { %v3389_v33 = vpop.f32.mrf.mxu1 }
 0x562   :  { %v3390_v9 = vadd.f32 %v3389_v33, %v3322_v53 }
 0x563   :  { %v4032_v16 = vpop.f32.mrf.mxu1 }
 0x564   :  { %3393 = vst [vmem:[#allocation11] sm:$0xff] %v3390_v9 }
 0x565   :  { %4168 = shalt.err (!%p4165_p10)
}
 0x566   :  { %3403 = dma.vmem_to_hbm [thread:$0]  %s3401_s13, 128, %s5806_s10, [#allocation5]  }
 0x567   :  { %4183 = dma.done.wait [#allocation5], 128  }
 0x568   :  { %4184 = vsyncadd [#allocation5], 4294967168 }
 0x569   :  { %3407 = vsyncpa [#allocation4], 1 }
 0x56a   :  { %3408 = vsyncpa [#allocation7], 1 }
 0x56b   :  { %3409 = vsyncpa [#allocation10], 1 }
 0x56c   :  { %3410 = vsyncpa [#allocation5], 1 }

</bundles_post_ra>
